<compile_context>
chip_gen: v7x
topology: tpu7x:2x2x1
jax: 0.10.0
libtpu: 0.0.40
codegen_flags: <defaults>
</compile_context>

<pallas_src>
import jax
import jax.numpy as jnp
from jax.experimental import pallas as pl
from jax.experimental.pallas import tpu as pltpu

# ----- synthetic MLP config -----
D_IN = 32     # neuron_list[0]
H0   = 64     # neuron_list[1]
H1   = 48     # neuron_list[2]  (output dim of the forward pass)
EPS  = 1e-8

# ----- batch-fold / tiling parameters -----
G     = 8            # batch rows folded into the lane dim (block-diagonal weights)
NW    = 128          # width of the narrow "per-group statistics" lane block (1 full vreg lane dim)
FD_IN = G * D_IN     # 256  folded input lanes
FH0   = G * H0       # 512  folded hidden lanes
FH1   = G * H1       # 384  folded output lanes

MAX_TBF    = 1024               # folded rows per grid step (= 8192 original rows)
MIN_TBF    = 128                # keep >= ~8 grid steps before growing the tile
VMEM_LIMIT = 32 * 1024 * 1024   # > v5e 16 MiB scoped default, <= v7x 64 MiB physical


def _round_up(x, m):
    return ((x + m - 1) // m) * m


def _choose_tile(nf):
    """Folded rows per grid step.

    Target >= 8 grid steps when the batch allows (keeps both v7x TensorCores fed AND
    lets each core pipeline its own DMAs); clamp to [MIN_TBF, MAX_TBF] (multiple of 8).
    Tiny batches use a single full-extent block (exact, no ragged handling needed).
    """
    if nf <= MIN_TBF:
        return nf
    tb = _round_up(pl.cdiv(nf, 8), 8)
    return max(MIN_TBF, min(MAX_TBF, tb))


def mlp_kernel(x_ref, w0_ref, b0_ref, s0_ref, s0t_ref,
               w1_ref, b1_ref, s1_ref, s1t_ref, o_ref):
    """One grid step over TBF folded rows (each folded row = G original batch rows).

    x_ref : (TBF, 256) f32      w0_ref: (256, 512) bf16   b0_ref: (1, 512) f32
    s0_ref: (512, 128) bf16     s0t_ref:(128, 512) bf16
    w1_ref: (512, 384) bf16     b1_ref: (1, 384) f32
    s1_ref: (384, 128) bf16     s1t_ref:(128, 384) bf16   o_ref : (TBF, 384) f32
    """
    x = x_ref[...].astype(jnp.bfloat16)             # cast at the dot input only (no wrapper pass)

    # layer 0: Linear(32 -> 64) applied to each of the G folded row groups (block-diag weights)
    h = jnp.dot(x, w0_ref[...], preferred_element_type=jnp.float32) + b0_ref[...]

    # PixelNorm per original row = per 64-lane group: segment mean on the MXU (narrow result),
    # rsqrt on the EUP, broadcast back over the group with a 0/1 matrix, scale in f32 on the VPU.
    m0 = jnp.dot((h * h).astype(jnp.bfloat16), s0_ref[...],
                 preferred_element_type=jnp.float32)        # (TBF, 128): cols 0..G-1 = group means
    sc0 = jax.lax.rsqrt(m0 + EPS)
    h = h * jnp.dot(sc0.astype(jnp.bfloat16), s0t_ref[...],
                    preferred_element_type=jnp.float32)     # broadcast over 64-lane groups

    # layer 1: Linear(64 -> 48) + PixelNorm per 48-lane group
    y = jnp.dot(h.astype(jnp.bfloat16), w1_ref[...],
                preferred_element_type=jnp.float32) + b1_ref[...]
    m1 = jnp.dot((y * y).astype(jnp.bfloat16), s1_ref[...],
                 preferred_element_type=jnp.float32)
    sc1 = jax.lax.rsqrt(m1 + EPS)
    y = y * jnp.dot(sc1.astype(jnp.bfloat16), s1t_ref[...],
                    preferred_element_type=jnp.float32)

    # lane-dense (384-wide) unmasked f32 stores; output keeps the module's f32 dtype.
    o_ref[...] = y.astype(o_ref.dtype)


def _seg_matrices(d):
    """Segment matrices for per-d-lane-group PixelNorm in the folded layout.

    reduce : (G*d, NW)  column g (g < G) holds 1/d over group g  -> h2 @ reduce = group means
    bcast  : (NW, G*d)  row g (g < G) holds 1 over group g       -> scale @ bcast = broadcast
    Columns/rows >= G are zero, so the junk rsqrt(eps) values they produce never contribute.
    """
    sel = jnp.eye(G, NW, dtype=jnp.float32)                               # (G, NW) group selector
    reduce = jnp.kron(sel, jnp.full((d, 1), 1.0 / d, jnp.float32))        # (G*d, NW)
    bcast = jnp.kron(sel.T, jnp.ones((1, d), jnp.float32))                # (NW, G*d)
    return reduce.astype(jnp.bfloat16), bcast.astype(jnp.bfloat16)


def prepare_params(w0, b0, w1, b1):
    """One-time (hoisted out of the hot path) parameter prep.

    torch layout: w0 (H0, D_IN), b0 (H0,), w1 (H1, H0), b1 (H1,).
    Builds block-diagonal fold-by-G weights (bf16 for the MXU), lane-tiled f32 biases,
    and the PixelNorm segment matrices.
    """
    eye = jnp.eye(G, dtype=jnp.float32)
    w0t = jnp.asarray(w0, jnp.float32).T                                  # (D_IN, H0)
    w1t = jnp.asarray(w1, jnp.float32).T                                  # (H0, H1)
    w0b = jnp.kron(eye, w0t).astype(jnp.bfloat16)                         # (256, 512)
    w1b = jnp.kron(eye, w1t).astype(jnp.bfloat16)                         # (512, 384)
    b0b = jnp.tile(jnp.asarray(b0, jnp.float32).reshape(1, H0), (1, G))   # (1, 512)
    b1b = jnp.tile(jnp.asarray(b1, jnp.float32).reshape(1, H1), (1, G))   # (1, 384)
    s0, s0t = _seg_matrices(H0)                                           # (512,128), (128,512)
    s1, s1t = _seg_matrices(H1)                                           # (384,128), (128,384)
    return w0b, b0b, s0, s0t, w1b, b1b, s1, s1t


@jax.jit
def mlp_forward(x, params):
    """x: (N, D_IN) float32; params from prepare_params(). Returns (N, H1) float32."""
    w0b, b0b, s0, s0t, w1b, b1b, s1, s1t = params
    x = jnp.asarray(x, jnp.float32)
    n = x.shape[0]
    n8 = _round_up(n, G)
    if n8 != n:                       # rare ragged batch: pad at most G-1 rows
        x = jnp.pad(x, ((0, n8 - n), (0, 0)))
    nf = n8 // G
    xf = x.reshape(nf, FD_IN)         # free: contiguous row-major merge, no data movement
    tbf = _choose_tile(nf)
    grid = (pl.cdiv(nf, tbf),)

    out = pl.pallas_call(
        mlp_kernel,
        out_shape=jax.ShapeDtypeStruct((nf, FH1), jnp.float32),
        grid_spec=pltpu.PrefetchScalarGridSpec(
            num_scalar_prefetch=0,
            grid=grid,
            in_specs=[
                pl.BlockSpec((tbf, FD_IN), lambda i: (i, 0)),   # x: streamed, lane-dense 256-wide
                pl.BlockSpec((FD_IN, FH0), lambda i: (0, 0)),   # params: VMEM-resident full blocks
                pl.BlockSpec((1, FH0),     lambda i: (0, 0)),
                pl.BlockSpec((FH0, NW),    lambda i: (0, 0)),
                pl.BlockSpec((NW, FH0),    lambda i: (0, 0)),
                pl.BlockSpec((FH0, FH1),   lambda i: (0, 0)),
                pl.BlockSpec((1, FH1),     lambda i: (0, 0)),
                pl.BlockSpec((FH1, NW),    lambda i: (0, 0)),
                pl.BlockSpec((NW, FH1),    lambda i: (0, 0)),
            ],
            out_specs=pl.BlockSpec((tbf, FH1), lambda i: (i, 0)),  # lane-dense 384-wide stores
        ),
        compiler_params=pltpu.CompilerParams(
            dimension_semantics=("parallel",),
            vmem_limit_bytes=VMEM_LIMIT),
    )(xf, w0b, b0b, s0, s0t, w1b, b1b, s1, s1t)

    y = out.reshape(n8, H1)           # free: contiguous split of the folded lanes
    return y if n8 == n else y[:n]


# ----------------------------- test / reference ------------------------------

def _torch_linear_init(key, out_f, in_f):
    # nn.Linear default init: U(-1/sqrt(in_f), 1/sqrt(in_f)) for weight and bias
    kw, kb = jax.random.split(key)
    bound = 1.0 / jnp.sqrt(jnp.float32(in_f))
    w = jax.random.uniform(kw, (out_f, in_f), jnp.float32, -bound, bound)
    b = jax.random.uniform(kb, (out_f,), jnp.float32, -bound, bound)
    return w, b


def _pixel_norm_f32(x):
    return x * jax.lax.rsqrt(jnp.mean(x * x, axis=-1, keepdims=True) + EPS)


def _ref_folded(x, params):
    """Pure-JAX replica of the kernel math (same bf16 dots / segment matrices) for tight checks."""
    w0b, b0b, s0, s0t, w1b, b1b, s1, s1t = params
    n = x.shape[0]
    n8 = _round_up(n, G)
    xp = jnp.pad(x, ((0, n8 - n), (0, 0))) if n8 != n else x
    xf = xp.reshape(n8 // G, FD_IN).astype(jnp.bfloat16)
    h = jnp.dot(xf, w0b, preferred_element_type=jnp.float32) + b0b
    sc0 = jax.lax.rsqrt(jnp.dot((h * h).astype(jnp.bfloat16), s0,
                                preferred_element_type=jnp.float32) + EPS)
    h = h * jnp.dot(sc0.astype(jnp.bfloat16), s0t, preferred_element_type=jnp.float32)
    y = jnp.dot(h.astype(jnp.bfloat16), w1b, preferred_element_type=jnp.float32) + b1b
    sc1 = jax.lax.rsqrt(jnp.dot((y * y).astype(jnp.bfloat16), s1,
                                preferred_element_type=jnp.float32) + EPS)
    y = y * jnp.dot(sc1.astype(jnp.bfloat16), s1t, preferred_element_type=jnp.float32)
    return y.reshape(n8, H1)[:n]


if __name__ == "__main__":
    key = jax.random.PRNGKey(0)
    kx, k0, k1 = jax.random.split(key, 3)

    w0, b0 = _torch_linear_init(k0, H0, D_IN)   # Linear(32, 64)
    w1, b1 = _torch_linear_init(k1, H1, H0)     # Linear(64, 48)
    # NOTE: self.layers[-1] (Linear(48,24)) and self.final_linear are constructed by
    # __init__ but never used by forward(), so they are intentionally not created here.

    params = prepare_params(w0, b0, w1, b1)     # hoisted one-time parameter prep

    # N=2048: multi-step grid (2 blocks of 128 folded rows).  N=22: ragged batch (pad to 24,
    # 3 folded rows in a single full-extent block).
    for n in (2048, 22):
        x = jax.random.normal(kx, (n, D_IN), jnp.float32)
        out = jax.block_until_ready(mlp_forward(x, params))
        assert out.shape == (n, H1)
        assert out.dtype == jnp.float32

        # reference #1: identical bf16 / segment-matmul math in pure JAX (tight tolerance)
        ref_b = _ref_folded(x, params)
        assert jnp.allclose(out, ref_b, atol=2e-3, rtol=2e-3), "mismatch vs bf16 reference"

        # reference #2: full-f32 module semantics (loose tolerance covers bf16 rounding)
        ref_f = _pixel_norm_f32(x @ w0.T + b0)
        ref_f = _pixel_norm_f32(ref_f @ w1.T + b1)
        assert jnp.allclose(out, ref_f, atol=5e-2, rtol=5e-2), "mismatch vs f32 reference"

    print("KERNEL_OK")
</pallas_src>

<mosaic_0001>
module attributes {stable_mosaic.version = 11 : i64} {
  func.func @mlp_kernel(%arg0: i32, %arg1: memref<128x256xf32, #tpu.memory_space<vmem>>, %arg2: memref<256x512xbf16, #tpu.memory_space<vmem>>, %arg3: memref<1x512xf32, #tpu.memory_space<vmem>>, %arg4: memref<512x128xbf16, #tpu.memory_space<vmem>>, %arg5: memref<128x512xbf16, #tpu.memory_space<vmem>>, %arg6: memref<512x384xbf16, #tpu.memory_space<vmem>>, %arg7: memref<1x384xf32, #tpu.memory_space<vmem>>, %arg8: memref<384x128xbf16, #tpu.memory_space<vmem>>, %arg9: memref<128x384xbf16, #tpu.memory_space<vmem>>, %arg10: memref<128x384xf32, #tpu.memory_space<vmem>>) attributes {dimension_semantics = [#tpu.dimension_semantics<parallel>], iteration_bounds = array<i64: 2>, scalar_prefetch = 0 : i64, scratch_operands = 0 : i64, tpu.core_type = #tpu.core_type<tc>, window_params = [{transform_indices = @transform_0, window_bounds = array<i64: 128, 256>}, {pipeline_mode = #tpu.pipeline_mode<synchronous>, transform_indices = @transform_1, window_bounds = array<i64: 256, 512>}, {pipeline_mode = #tpu.pipeline_mode<synchronous>, transform_indices = @transform_2, window_bounds = array<i64: 1, 512>}, {pipeline_mode = #tpu.pipeline_mode<synchronous>, transform_indices = @transform_3, window_bounds = array<i64: 512, 128>}, {pipeline_mode = #tpu.pipeline_mode<synchronous>, transform_indices = @transform_4, window_bounds = array<i64: 128, 512>}, {pipeline_mode = #tpu.pipeline_mode<synchronous>, transform_indices = @transform_5, window_bounds = array<i64: 512, 384>}, {pipeline_mode = #tpu.pipeline_mode<synchronous>, transform_indices = @transform_6, window_bounds = array<i64: 1, 384>}, {pipeline_mode = #tpu.pipeline_mode<synchronous>, transform_indices = @transform_7, window_bounds = array<i64: 384, 128>}, {pipeline_mode = #tpu.pipeline_mode<synchronous>, transform_indices = @transform_8, window_bounds = array<i64: 128, 384>}, {transform_indices = @transform_9, window_bounds = array<i64: 128, 384>}]} {
    %c0 = arith.constant 0 : index
    %c0_0 = arith.constant 0 : index
    %0 = vector.load %arg1[%c0, %c0_0] : memref<128x256xf32, #tpu.memory_space<vmem>>, vector<128x256xf32>
    %1 = arith.truncf %0 : vector<128x256xf32> to vector<128x256xbf16>
    %c0_1 = arith.constant 0 : index
    %c0_2 = arith.constant 0 : index
    %2 = vector.load %arg2[%c0_1, %c0_2] : memref<256x512xbf16, #tpu.memory_space<vmem>>, vector<256x512xbf16>
    %cst = arith.constant dense<0.000000e+00> : vector<128x512xf32>
    %3 = tpu.matmul %1, %2, %cst {dimension_numbers = #tpu.dot_dimension_numbers<[1], [0], [0], [1], [0, 0, 1, 1], [], []>} : vector<128x256xbf16>, vector<256x512xbf16>, vector<128x512xf32> -> vector<128x512xf32>
    %c0_3 = arith.constant 0 : index
    %c0_4 = arith.constant 0 : index
    %4 = vector.load %arg3[%c0_3, %c0_4] : memref<1x512xf32, #tpu.memory_space<vmem>>, vector<1x512xf32>
    %5 = vector.broadcast %4 : vector<1x512xf32> to vector<128x512xf32>
    %6 = arith.addf %3, %5 : vector<128x512xf32>
    %7 = arith.mulf %6, %6 : vector<128x512xf32>
    %8 = arith.truncf %7 : vector<128x512xf32> to vector<128x512xbf16>
    %c0_5 = arith.constant 0 : index
    %c0_6 = arith.constant 0 : index
    %9 = vector.load %arg4[%c0_5, %c0_6] : memref<512x128xbf16, #tpu.memory_space<vmem>>, vector<512x128xbf16>
    %cst_7 = arith.constant dense<0.000000e+00> : vector<128x128xf32>
    %10 = tpu.matmul %8, %9, %cst_7 {dimension_numbers = #tpu.dot_dimension_numbers<[1], [0], [0], [1], [0, 0, 1, 1], [], []>} : vector<128x512xbf16>, vector<512x128xbf16>, vector<128x128xf32> -> vector<128x128xf32>
    %cst_8 = arith.constant 9.99999993E-9 : f32
    %11 = vector.broadcast %cst_8 : f32 to vector<128x128xf32>
    %12 = arith.addf %10, %11 : vector<128x128xf32>
    %13 = math.rsqrt %12 : vector<128x128xf32>
    %14 = arith.truncf %13 : vector<128x128xf32> to vector<128x128xbf16>
    %c0_9 = arith.constant 0 : index
    %c0_10 = arith.constant 0 : index
    %15 = vector.load %arg5[%c0_9, %c0_10] : memref<128x512xbf16, #tpu.memory_space<vmem>>, vector<128x512xbf16>
    %cst_11 = arith.constant dense<0.000000e+00> : vector<128x512xf32>
    %16 = tpu.matmul %14, %15, %cst_11 {dimension_numbers = #tpu.dot_dimension_numbers<[1], [0], [0], [1], [0, 0, 1, 1], [], []>} : vector<128x128xbf16>, vector<128x512xbf16>, vector<128x512xf32> -> vector<128x512xf32>
    %17 = arith.mulf %6, %16 : vector<128x512xf32>
    %18 = arith.truncf %17 : vector<128x512xf32> to vector<128x512xbf16>
    %c0_12 = arith.constant 0 : index
    %c0_13 = arith.constant 0 : index
    %19 = vector.load %arg6[%c0_12, %c0_13] : memref<512x384xbf16, #tpu.memory_space<vmem>>, vector<512x384xbf16>
    %cst_14 = arith.constant dense<0.000000e+00> : vector<128x384xf32>
    %20 = tpu.matmul %18, %19, %cst_14 {dimension_numbers = #tpu.dot_dimension_numbers<[1], [0], [0], [1], [0, 0, 1, 1], [], []>} : vector<128x512xbf16>, vector<512x384xbf16>, vector<128x384xf32> -> vector<128x384xf32>
    %c0_15 = arith.constant 0 : index
    %c0_16 = arith.constant 0 : index
    %21 = vector.load %arg7[%c0_15, %c0_16] : memref<1x384xf32, #tpu.memory_space<vmem>>, vector<1x384xf32>
    %22 = vector.broadcast %21 : vector<1x384xf32> to vector<128x384xf32>
    %23 = arith.addf %20, %22 : vector<128x384xf32>
    %24 = arith.mulf %23, %23 : vector<128x384xf32>
    %25 = arith.truncf %24 : vector<128x384xf32> to vector<128x384xbf16>
    %c0_17 = arith.constant 0 : index
    %c0_18 = arith.constant 0 : index
    %26 = vector.load %arg8[%c0_17, %c0_18] : memref<384x128xbf16, #tpu.memory_space<vmem>>, vector<384x128xbf16>
    %cst_19 = arith.constant dense<0.000000e+00> : vector<128x128xf32>
    %27 = tpu.matmul %25, %26, %cst_19 {dimension_numbers = #tpu.dot_dimension_numbers<[1], [0], [0], [1], [0, 0, 1, 1], [], []>} : vector<128x384xbf16>, vector<384x128xbf16>, vector<128x128xf32> -> vector<128x128xf32>
    %cst_20 = arith.constant 9.99999993E-9 : f32
    %28 = vector.broadcast %cst_20 : f32 to vector<128x128xf32>
    %29 = arith.addf %27, %28 : vector<128x128xf32>
    %30 = math.rsqrt %29 : vector<128x128xf32>
    %31 = arith.truncf %30 : vector<128x128xf32> to vector<128x128xbf16>
    %c0_21 = arith.constant 0 : index
    %c0_22 = arith.constant 0 : index
    %32 = vector.load %arg9[%c0_21, %c0_22] : memref<128x384xbf16, #tpu.memory_space<vmem>>, vector<128x384xbf16>
    %cst_23 = arith.constant dense<0.000000e+00> : vector<128x384xf32>
    %33 = tpu.matmul %31, %32, %cst_23 {dimension_numbers = #tpu.dot_dimension_numbers<[1], [0], [0], [1], [0, 0, 1, 1], [], []>} : vector<128x128xbf16>, vector<128x384xbf16>, vector<128x384xf32> -> vector<128x384xf32>
    %34 = arith.mulf %23, %33 : vector<128x384xf32>
    %c0_24 = arith.constant 0 : index
    %c0_25 = arith.constant 0 : index
    %35 = vector.load %arg10[%c0_24, %c0_25] : memref<128x384xf32, #tpu.memory_space<vmem>>, vector<128x384xf32>
    tpu.vector_store %arg10[%c0_24, %c0_25], %34 {strides = array<i32>} : memref<128x384xf32, #tpu.memory_space<vmem>>, vector<128x384xf32>,
    return
  }
  func.func @transform_0(%arg0: i32) -> (i32, i32) {
    %c0_i32 = arith.constant 0 : i32
    %c0_i32_0 = arith.constant 0 : i32
    return %arg0, %c0_i32 : i32, i32
  }
  func.func @transform_1(%arg0: i32) -> (i32, i32) {
    %c0_i32 = arith.constant 0 : i32
    %c0_i32_0 = arith.constant 0 : i32
    %c0_i32_1 = arith.constant 0 : i32
    return %c0_i32, %c0_i32_0 : i32, i32
  }
  func.func @transform_2(%arg0: i32) -> (i32, i32) {
    %c0_i32 = arith.constant 0 : i32
    %c0_i32_0 = arith.constant 0 : i32
    %c0_i32_1 = arith.constant 0 : i32
    return %c0_i32, %c0_i32_0 : i32, i32
  }
  func.func @transform_3(%arg0: i32) -> (i32, i32) {
    %c0_i32 = arith.constant 0 : i32
    %c0_i32_0 = arith.constant 0 : i32
    %c0_i32_1 = arith.constant 0 : i32
    return %c0_i32, %c0_i32_0 : i32, i32
  }
  func.func @transform_4(%arg0: i32) -> (i32, i32) {
    %c0_i32 = arith.constant 0 : i32
    %c0_i32_0 = arith.constant 0 : i32
    %c0_i32_1 = arith.constant 0 : i32
    return %c0_i32, %c0_i32_0 : i32, i32
  }
  func.func @transform_5(%arg0: i32) -> (i32, i32) {
    %c0_i32 = arith.constant 0 : i32
    %c0_i32_0 = arith.constant 0 : i32
    %c0_i32_1 = arith.constant 0 : i32
    return %c0_i32, %c0_i32_0 : i32, i32
  }
  func.func @transform_6(%arg0: i32) -> (i32, i32) {
    %c0_i32 = arith.constant 0 : i32
    %c0_i32_0 = arith.constant 0 : i32
    %c0_i32_1 = arith.constant 0 : i32
    return %c0_i32, %c0_i32_0 : i32, i32
  }
  func.func @transform_7(%arg0: i32) -> (i32, i32) {
    %c0_i32 = arith.constant 0 : i32
    %c0_i32_0 = arith.constant 0 : i32
    %c0_i32_1 = arith.constant 0 : i32
    return %c0_i32, %c0_i32_0 : i32, i32
  }
  func.func @transform_8(%arg0: i32) -> (i32, i32) {
    %c0_i32 = arith.constant 0 : i32
    %c0_i32_0 = arith.constant 0 : i32
    %c0_i32_1 = arith.constant 0 : i32
    return %c0_i32, %c0_i32_0 : i32, i32
  }
  func.func @transform_9(%arg0: i32) -> (i32, i32) {
    %c0_i32 = arith.constant 0 : i32
    %c0_i32_0 = arith.constant 0 : i32
    return %arg0, %c0_i32 : i32, i32
  }
}

</mosaic_0001>

<bundles_post_ra>
// kernel: mlp_forward.1
= control target key start
LH: loop header
LB: loop body
LE: loop exit
PB: predicated region body
PF: predicated region fallthrough
CT: control target
= control target key end

     0   :  { %s5447_s30 = smov 0   ;;  %s7213_s0 = inlined_call_operand.vmem [shape: f32[256,256], index: 0, kind: input, shape index: {}]   ;;  %s7214_s1 = inlined_call_operand.vmem [shape: bf16[256,512], index: 1, kind: input, shape index: {}]   ;;  %s7215_s2 = inlined_call_operand.vmem [shape: f32[1,512], index: 2, kind: input, shape index: {}]   ;;  %s7216_s3 = inlined_call_operand.vmem [shape: bf16[512,128], index: 3, kind: input, shape index: {}]   ;;  %s7217_s4 = inlined_call_operand.vmem [shape: bf16[128,512], index: 4, kind: input, shape index: {}]   ;;  %s7218_s5 = inlined_call_operand.vmem [shape: bf16[512,384], index: 5, kind: input, shape index: {}]   ;;  %s7219_s6 = inlined_call_operand.vmem [shape: f32[1,384], index: 6, kind: input, shape index: {}]   ;;  %s7220_s7 = inlined_call_operand.vmem [shape: bf16[384,128], index: 7, kind: input, shape index: {}]   ;;  %s7221_s8 = inlined_call_operand.vmem [shape: bf16[128,384], index: 8, kind: input, shape index: {}]   ;;  %s7222_s9 = inlined_call_operand.vmem [shape: f32[256,384], index: 9, kind: output, shape index: {}]  }
   0x1 LB: > { %s4189_s10 = sadd.s32 4294967295, %s5394_s30   ;;  %p4193_p0 = scmp.ge.s32.totalorder %s5394_s30, 1  ;;  %s5394_s30 = sphi %s5447_s30, %s19_s30  }
   0x2   : > { %p289_p1 = scmp.lt.s32.totalorder %s5394_s30, 3 }
   0x4   : > { %p290_p2 = pnand %p4193_p0, %p289_p1 }
   0x6   : > { %293 = sbr.rel (%p290_p2) target bundleno = 1554 (0x612), region = 56 }
   0xd   : > { %v4964_v0 = vld [vmem:[%s7214_s1 + $0x4] ss:$16 sps:$4 sm:$0xff]   ;;  %v4966_v1 = vld [vmem:[%s7214_s1 + $0xc] ss:$16 sps:$4 sm:$0xff]   ;;  %v4968_v2 = vld [vmem:[%s7214_s1] ss:$16 sps:$4 sm:$0xff]  }
   0xe   : > { %796 = vmatprep.subr.bf16.mxu0 %v4964_v0  ;;  %v4969_v3 = vld [vmem:[%s7214_s1 + $0x8] ss:$16 sps:$4 sm:$0xff]   ;;  %909 = vmatprep.subr.bf16.mxu1 %v4966_v1  ;;  %v4970_v4 = vld [vmem:[%s7214_s1 + $0x24] ss:$16 sps:$4 sm:$0xff]   ;;  %v4972_v5 = vld [vmem:[%s7214_s1 + $0x2c] ss:$16 sps:$4 sm:$0xff]  }
   0xf   : > { %797 = vmatpush1.bf16.msra.mxu0 %v4968_v2  ;;  %910 = vmatpush1.bf16.msra.mxu1 %v4969_v3  ;;  %v4974_v6 = vld [vmem:[%s7214_s1 + $0x20] ss:$16 sps:$4 sm:$0xff]   ;;  %v4975_v7 = vld [vmem:[%s7214_s1 + $0x28] ss:$16 sps:$4 sm:$0xff]   ;;  %v4976_v8 = vld [vmem:[%s7214_s1 + $0x44] ss:$16 sps:$4 sm:$0xff]  }
  0x10   : > { %798 = vmatprep.subr.bf16.mxu0 %v4970_v4  ;;  %911 = vmatprep.subr.bf16.mxu1 %v4972_v5  ;;  %v4978_v9 = vld [vmem:[%s7214_s1 + $0x4c] ss:$16 sps:$4 sm:$0xff]   ;;  %v4980_v10 = vld [vmem:[%s7214_s1 + $0x40] ss:$16 sps:$4 sm:$0xff]   ;;  %v4981_v11 = vld [vmem:[%s7214_s1 + $0x48] ss:$16 sps:$4 sm:$0xff]  }
  0x11   : > { %v4982_v12 = vld [vmem:[%s7214_s1 + $0x64] ss:$16 sps:$4 sm:$0xff]   ;;  %v4984_v13 = vld [vmem:[%s7214_s1 + $0x6c] ss:$16 sps:$4 sm:$0xff]   ;;  %v4986_v14 = vld [vmem:[%s7214_s1 + $0x60] ss:$16 sps:$4 sm:$0xff]  }
  0x12   : > { %v4987_v15 = vld [vmem:[%s7214_s1 + $0x68] ss:$16 sps:$4 sm:$0xff]   ;;  %v4988_v16 = vld [vmem:[%s7214_s1 + $0x84] ss:$16 sps:$4 sm:$0xff]   ;;  %v4990_v17 = vld [vmem:[%s7214_s1 + $0x8c] ss:$16 sps:$4 sm:$0xff]  }
  0x13   : > { %799 = vmatpush1.bf16.msra.mxu0 %v4974_v6  ;;  %912 = vmatpush1.bf16.msra.mxu1 %v4975_v7  ;;  %v4992_v18 = vld [vmem:[%s7214_s1 + $0x80] ss:$16 sps:$4 sm:$0xff]   ;;  %v4993_v19 = vld [vmem:[%s7214_s1 + $0x88] ss:$16 sps:$4 sm:$0xff]   ;;  %v4994_v20 = vld [vmem:[%s7214_s1 + $0xa4] ss:$16 sps:$4 sm:$0xff]  }
  0x14   : > { %800 = vmatprep.subr.bf16.mxu0 %v4976_v8  ;;  %913 = vmatprep.subr.bf16.mxu1 %v4978_v9  ;;  %v4996_v21 = vld [vmem:[%s7214_s1 + $0xac] ss:$16 sps:$4 sm:$0xff]   ;;  %v4998_v22 = vld [vmem:[%s7214_s1 + $0xa0] ss:$16 sps:$4 sm:$0xff]   ;;  %v4999_v23 = vld [vmem:[%s7214_s1 + $0xa8] ss:$16 sps:$4 sm:$0xff]  }
  0x15   : > { %v5000_v24 = vld [vmem:[%s7214_s1 + $0xc4] ss:$16 sps:$4 sm:$0xff]   ;;  %v5002_v25 = vld [vmem:[%s7214_s1 + $0xcc] ss:$16 sps:$4 sm:$0xff]   ;;  %v5004_v26 = vld [vmem:[%s7214_s1 + $0xc0] ss:$16 sps:$4 sm:$0xff]  }
  0x16   : > { %v5005_v27 = vld [vmem:[%s7214_s1 + $0xc8] ss:$16 sps:$4 sm:$0xff]   ;;  %v5006_v28 = vld [vmem:[%s7214_s1 + $0xe4] ss:$16 sps:$4 sm:$0xff]   ;;  %v5008_v29 = vld [vmem:[%s7214_s1 + $0xec] ss:$16 sps:$4 sm:$0xff]  }
  0x17   : > { %801 = vmatpush1.bf16.msra.mxu0 %v4980_v10  ;;  %914 = vmatpush1.bf16.msra.mxu1 %v4981_v11  ;;  %s4194_s14 = sshll.u32 %s4189_s10, 4  ;;  %v5010_v30 = vld [vmem:[%s7214_s1 + $0xe0] ss:$16 sps:$4 sm:$0xff]   ;;  %v5011_v31 = vld [vmem:[%s7214_s1 + $0xe8] ss:$16 sps:$4 sm:$0xff]  }
  0x18   : > { %802 = vmatprep.subr.bf16.mxu0 %v4982_v12  ;;  %915 = vmatprep.subr.bf16.mxu1 %v4984_v13  ;;  %v5012_v32 = vld [vmem:[%s7214_s1 + $0x104] ss:$16 sps:$4 sm:$0xff]   ;;  %p328_p3 = scmp.lt.s32.totalorder %s4194_s14, 31  ;;  %v5014_v33 = vld [vmem:[%s7214_s1 + $0x10c] ss:$16 sps:$4 sm:$0xff]  }
  0x19   : > { %v5016_v34 = vld [vmem:[%s7214_s1 + $0x100] ss:$16 sps:$4 sm:$0xff]   ;;  %v5017_v35 = vld [vmem:[%s7214_s1 + $0x108] ss:$16 sps:$4 sm:$0xff]   ;;  %v5018_v36 = vld [vmem:[%s7214_s1 + $0x124] ss:$16 sps:$4 sm:$0xff]  }
  0x1a   : > { %s7330_s14 = smov (!%p328_p3, %s4194_s14), 31  ;;  %v5020_v37 = vld [vmem:[%s7214_s1 + $0x12c] ss:$16 sps:$4 sm:$0xff]   ;;  %v5022_v38 = vld [vmem:[%s7214_s1 + $0x120] ss:$16 sps:$4 sm:$0xff]  }
  0x1b   : > { %803 = vmatpush1.bf16.msra.mxu0 %v4986_v14  ;;  %916 = vmatpush1.bf16.msra.mxu1 %v4987_v15  ;;  %v5023_v39 = vld [vmem:[%s7214_s1 + $0x128] ss:$16 sps:$4 sm:$0xff]   ;;  %v5024_v40 = vld [vmem:[%s7214_s1 + $0x144] ss:$16 sps:$4 sm:$0xff]   ;;  %s4473_s18 = sshll.u32 %s7330_s14, 4 }
  0x1c   : > { %804 = vmatprep.subr.bf16.mxu0 %v4988_v16  ;;  %917 = vmatprep.subr.bf16.mxu1 %v4990_v17  ;;  %v5026_v41 = vld [vmem:[%s7214_s1 + $0x14c] ss:$16 sps:$4 sm:$0xff]   ;;  %v5028_v42 = vld [vmem:[%s7214_s1 + $0x140] ss:$16 sps:$4 sm:$0xff]   ;;  %v5029_v43 = vld [vmem:[%s7214_s1 + $0x148] ss:$16 sps:$4 sm:$0xff]   ;;  %s5595_s26 = scalar_lea.vmem %s7213_s0, %s4473_s18 }
  0x1d   : > { %v5030_v44 = vld [vmem:[%s7214_s1 + $0x164] ss:$16 sps:$4 sm:$0xff]   ;;  %v5032_v45 = vld [vmem:[%s7214_s1 + $0x16c] ss:$16 sps:$4 sm:$0xff]   ;;  %v5034_v48 = vld [vmem:[%s7214_s1 + $0x160] ss:$16 sps:$4 sm:$0xff]  }
  0x1e   : > { %v343_v46 = vld [vmem:[%s5595_s26 + $0x8] sm:$0xff]  ;;  %v345_v47 = vld [vmem:[%s5595_s26 + $0x18] sm:$0xff]  ;;  %v5036_v51 = vld [vmem:[%s7214_s1 + $0x184] ss:$16 sps:$4 sm:$0xff]   ;;  %s4954_s18 = smul.u32 24, %s7330_s14 }
  0x1f   : > { %805 = vmatpush1.bf16.msra.mxu0 %v4992_v18  ;;  %918 = vmatpush1.bf16.msra.mxu1 %v4993_v19  ;;  %v5035_v49 = vld [vmem:[%s7214_s1 + $0x168] ss:$16 sps:$4 sm:$0xff]   ;;  %v375_v50 = vpack.c.bf16 %v345_v47, %v343_v46  ;;  %v5038_v52 = vld [vmem:[%s7214_s1 + $0x18c] ss:$16 sps:$4 sm:$0xff]   ;;  %v5040_v53 = vld [vmem:[%s7214_s1 + $0x180] ss:$16 sps:$4 sm:$0xff]  }
  0x20   : > { %806 = vmatprep.subr.bf16.mxu0 %v4994_v20  ;;  %919 = vmatprep.subr.bf16.mxu1 %v4996_v21  ;;  %v5041_v54 = vld [vmem:[%s7214_s1 + $0x188] ss:$16 sps:$4 sm:$0xff]   ;;  %v5042_v55 = vld [vmem:[%s7214_s1 + $0x1a4] ss:$16 sps:$4 sm:$0xff]   ;;  %v5044_v56 = vld [vmem:[%s7214_s1 + $0x1ac] ss:$16 sps:$4 sm:$0xff]  }
  0x21   : > { %828 = vmatprep.mubr.bf16.mxu0 %v375_v50  ;;  %941 = vmatprep.mubr.bf16.mxu1 %v375_v50  ;;  %v5046_v57 = vld [vmem:[%s7214_s1 + $0x1a0] ss:$16 sps:$4 sm:$0xff]   ;;  %v5047_v58 = vld [vmem:[%s7214_s1 + $0x1a8] ss:$16 sps:$4 sm:$0xff]   ;;  %v5048_v59 = vld [vmem:[%s7214_s1 + $0x1c4] ss:$16 sps:$4 sm:$0xff]  }
  0x22   : > { %v5050_v60 = vld [vmem:[%s7214_s1 + $0x1cc] ss:$16 sps:$4 sm:$0xff]   ;;  %v5052_v61 = vld [vmem:[%s7214_s1 + $0x1c0] ss:$16 sps:$4 sm:$0xff]   ;;  %v5053_v62 = vld [vmem:[%s7214_s1 + $0x1c8] ss:$16 sps:$4 sm:$0xff]  }
  0x23   : > { %807 = vmatpush1.bf16.msra.mxu0 %v4998_v22  ;;  %920 = vmatpush1.bf16.msra.mxu1 %v4999_v23  ;;  %v5054_v63 = vld [vmem:[%s7214_s1 + $0x1e4] ss:$16 sps:$4 sm:$0xff]   ;;  %v5056_v0 = vld [vmem:[%s7214_s1 + $0x1ec] ss:$16 sps:$4 sm:$0xff]   ;;  %v5058_v1 = vld [vmem:[%s7214_s1 + $0x1e0] ss:$16 sps:$4 sm:$0xff]  }
  0x24   : > { %808 = vmatprep.subr.bf16.mxu0 %v5000_v24  ;;  %921 = vmatprep.subr.bf16.mxu1 %v5002_v25  ;;  %v5059_v2 = vld [vmem:[%s7214_s1 + $0x1e8] ss:$16 sps:$4 sm:$0xff]   ;;  %v342_v3 = vld [vmem:[%s5595_s26] sm:$0xff]  ;;  %v344_v4 = vld [vmem:[%s5595_s26 + $0x10] sm:$0xff] }
  0x25   : > { %v347_v5 = vld [vmem:[%s5595_s26 + $0x28] sm:$0xff]  ;;  %v349_v6 = vld [vmem:[%s5595_s26 + $0x38] sm:$0xff]  ;;  %v5060_v7 = vld [vmem:[%s7216_s3 + $0x40] sm:$0xff]   ;;  %v374_v9 = vpack.c.bf16 %v344_v4, %v342_v3 }
  0x26   : > { %v5062_v8 = vld [vmem:[%s7216_s3 + $0xc0] sm:$0xff]   ;;  %v377_v11 = vpack.c.bf16 %v349_v6, %v347_v5  ;;  %v5064_v13 = vld [vmem:[%s7216_s3 + $0x48] sm:$0xff]   ;;  %v348_v15 = vld [vmem:[%s5595_s26 + $0x30] sm:$0xff] }
  0x27   : > { %809 = vmatpush1.bf16.msra.mxu0 %v5004_v26  ;;  %922 = vmatpush1.bf16.msra.mxu1 %v5005_v27  ;;  %v5061_v10 = vld [vmem:[%s7216_s3] sm:$0xff]   ;;  %v5066_v16 = vld [vmem:[%s7216_s3 + $0xc8] sm:$0xff]   ;;  %v353_v18 = vld [vmem:[%s5595_s26 + $0x58] sm:$0xff] }
  0x28   : > { %810 = vmatprep.subr.bf16.mxu0 %v5006_v28  ;;  %923 = vmatprep.subr.bf16.mxu1 %v5008_v29  ;;  %v5063_v12 = vld [vmem:[%s7216_s3 + $0x80] sm:$0xff]   ;;  %v351_v17 = vld [vmem:[%s5595_s26 + $0x48] sm:$0xff]  ;;  %v5068_v21 = vld [vmem:[%s7216_s3 + $0x50] sm:$0xff]  }
  0x29   : > { %v346_v14 = vld [vmem:[%s5595_s26 + $0x20] sm:$0xff]  ;;  %v5065_v19 = vld [vmem:[%s7216_s3 + $0x8] sm:$0xff]   ;;  %v5070_v22 = vld [vmem:[%s7216_s3 + $0xd0] sm:$0xff]   ;;  %v379_v25 = vpack.c.bf16 %v353_v18, %v351_v17  ;;  %v456_v18 = vlaneseq }
  0x2a   : > { %v5067_v20 = vld [vmem:[%s7216_s3 + $0x88] sm:$0xff]   ;;  %v376_v23 = vpack.c.bf16 %v348_v15, %v346_v14  ;;  %v5069_v24 = vld [vmem:[%s7216_s3 + $0x10] sm:$0xff]   ;;  %v5072_v27 = vld [vmem:[%s7216_s3 + $0x58] sm:$0xff]  }
  0x2b   : > { %811 = vmatpush1.bf16.msra.mxu0 %v5010_v30  ;;  %924 = vmatpush1.bf16.msra.mxu1 %v5011_v31  ;;  %v5071_v26 = vld [vmem:[%s7216_s3 + $0x90] sm:$0xff]   ;;  %v350_v28 = vld [vmem:[%s5595_s26 + $0x40] sm:$0xff]  ;;  %v5074_v30 = vld [vmem:[%s7216_s3 + $0xd8] sm:$0xff]  }
  0x2c   : > { %812 = vmatprep.subr.bf16.mxu0 %v5012_v32  ;;  %925 = vmatprep.subr.bf16.mxu1 %v5014_v33  ;;  %v352_v29 = vld [vmem:[%s5595_s26 + $0x50] sm:$0xff]  ;;  %v355_v31 = vld [vmem:[%s5595_s26 + $0x68] sm:$0xff]  ;;  %v357_v32 = vld [vmem:[%s5595_s26 + $0x78] sm:$0xff] }
  0x2d   : > { %v5073_v33 = vld [vmem:[%s7216_s3 + $0x18] sm:$0xff]   ;;  %v5081_v47 = vld [vmem:[%s7216_s3 + $0x28] sm:$0xff]   ;;  %v5086_v50 = vld [vmem:[%s7216_s3 + $0xf0] sm:$0xff]  }
  0x2e   : > { %v361_v46 = vld [vmem:[%s5595_s26 + $0x98] sm:$0xff]  ;;  %v366_v3 = vld [vmem:[%s5595_s26 + $0xc0] sm:$0xff]  ;;  %v368_v4 = vld [vmem:[%s5595_s26 + $0xd0] sm:$0xff] }
  0x2f   : > { %813 = vmatpush1.bf16.msra.mxu0 %v5016_v34  ;;  %926 = vmatpush1.bf16.msra.mxu1 %v5017_v35  ;;  %v5075_v34 = vld [vmem:[%s7216_s3 + $0x98] sm:$0xff]   ;;  %v5076_v35 = vld [vmem:[%s7216_s3 + $0x60] sm:$0xff]   ;;  %v371_v5 = vld [vmem:[%s5595_s26 + $0xe8] sm:$0xff] }
  0x30   : > { %814 = vmatprep.subr.bf16.mxu0 %v5018_v36  ;;  %927 = vmatprep.subr.bf16.mxu1 %v5020_v37  ;;  %v5078_v36 = vld [vmem:[%s7216_s3 + $0xe0] sm:$0xff]   ;;  %v378_v37 = vpack.c.bf16 %v352_v29, %v350_v28  ;;  %v373_v6 = vld [vmem:[%s5595_s26 + $0xf8] sm:$0xff] }
  0x31   : > { %v5089_v14 = vld [vmem:[%s7216_s3 + $0x38] sm:$0xff]  }
  0x32   : > { %v5091_v15 = vld [vmem:[%s7216_s3 + $0xb8] sm:$0xff]  }
  0x33   : > { %815 = vmatpush1.bf16.msra.mxu0 %v5022_v38  ;;  %928 = vmatpush1.bf16.msra.mxu1 %v5023_v39  ;;  %v5077_v38 = vld [vmem:[%s7216_s3 + $0x20] sm:$0xff]   ;;  %v381_v39 = vpack.c.bf16 %v357_v32, %v355_v31  ;;  %v5109_v17 = vld [vmem:[%s7217_s4 + $0xc] ss:$16 sps:$4 sm:$0xff]  }
  0x34   : > { %816 = vmatprep.subr.bf16.mxu0 %v5024_v40  ;;  %929 = vmatprep.subr.bf16.mxu1 %v5026_v41  ;;  %v5079_v40 = vld [vmem:[%s7216_s3 + $0xa0] sm:$0xff]   ;;  %v5080_v41 = vld [vmem:[%s7216_s3 + $0x68] sm:$0xff]  }
  0x37   : > { %817 = vmatpush1.bf16.msra.mxu0 %v5028_v42  ;;  %930 = vmatpush1.bf16.msra.mxu1 %v5029_v43  ;;  %v5082_v42 = vld [vmem:[%s7216_s3 + $0xe8] sm:$0xff]   ;;  %v354_v43 = vld [vmem:[%s5595_s26 + $0x60] sm:$0xff] }
  0x38   : > { %818 = vmatprep.subr.bf16.mxu0 %v5030_v44  ;;  %931 = vmatprep.subr.bf16.mxu1 %v5032_v45  ;;  %v356_v44 = vld [vmem:[%s5595_s26 + $0x70] sm:$0xff]  ;;  %v359_v45 = vld [vmem:[%s5595_s26 + $0x88] sm:$0xff] }
  0x3b   : > { %819 = vmatpush1.bf16.msra.mxu0 %v5034_v48  ;;  %932 = vmatpush1.bf16.msra.mxu1 %v5035_v49  ;;  %v5083_v48 = vld [vmem:[%s7216_s3 + $0xa8] sm:$0xff]   ;;  %v5084_v49 = vld [vmem:[%s7216_s3 + $0x70] sm:$0xff]  }
  0x3c   : > { %820 = vmatprep.subr.bf16.mxu0 %v5036_v51  ;;  %933 = vmatprep.subr.bf16.mxu1 %v5038_v52  ;;  %v380_v51 = vpack.c.bf16 %v356_v44, %v354_v43  ;;  %v5085_v52 = vld [vmem:[%s7216_s3 + $0x30] sm:$0xff]  }
  0x3f   : > { %821 = vmatpush1.bf16.msra.mxu0 %v5040_v53  ;;  %934 = vmatpush1.bf16.msra.mxu1 %v5041_v54  ;;  %v5087_v53 = vld [vmem:[%s7216_s3 + $0xb0] sm:$0xff]   ;;  %v383_v54 = vpack.c.bf16 %v361_v46, %v359_v45 }
  0x40   : > { %822 = vmatprep.subr.bf16.mxu0 %v5042_v55  ;;  %935 = vmatprep.subr.bf16.mxu1 %v5044_v56  ;;  %v358_v55 = vld [vmem:[%s5595_s26 + $0x80] sm:$0xff]  ;;  %v360_v56 = vld [vmem:[%s5595_s26 + $0x90] sm:$0xff] }
  0x43   : > { %823 = vmatpush1.bf16.msra.mxu0 %v5046_v57  ;;  %936 = vmatpush1.bf16.msra.mxu1 %v5047_v58  ;;  %v363_v57 = vld [vmem:[%s5595_s26 + $0xa8] sm:$0xff]  ;;  %v365_v58 = vld [vmem:[%s5595_s26 + $0xb8] sm:$0xff] }
  0x44   : > { %824 = vmatprep.subr.bf16.mxu0 %v5048_v59  ;;  %937 = vmatprep.subr.bf16.mxu1 %v5050_v60  ;;  %v382_v59 = vpack.c.bf16 %v360_v56, %v358_v55  ;;  %v385_v60 = vpack.c.bf16 %v365_v58, %v363_v57 }
  0x47   : > { %825 = vmatpush1.bf16.msra.mxu0 %v5052_v61  ;;  %938 = vmatpush1.bf16.msra.mxu1 %v5053_v62  ;;  %v362_v61 = vld [vmem:[%s5595_s26 + $0xa0] sm:$0xff]  ;;  %v364_v62 = vld [vmem:[%s5595_s26 + $0xb0] sm:$0xff] }
  0x48   : > { %826 = vmatprep.subr.bf16.mxu0 %v5054_v63  ;;  %939 = vmatprep.subr.bf16.mxu1 %v5056_v0  ;;  %v367_v63 = vld [vmem:[%s5595_s26 + $0xc8] sm:$0xff]  ;;  %v369_v0 = vld [vmem:[%s5595_s26 + $0xd8] sm:$0xff] }
  0x4b   : > { %827 = vmatpush1.bf16.msra.mxu0 %v5058_v1  ;;  %940 = vmatpush1.bf16.msra.mxu1 %v5059_v2  ;;  %v384_v1 = vpack.c.bf16 %v364_v62, %v362_v61  ;;  %v387_v2 = vpack.c.bf16 %v369_v0, %v367_v63  ;;  %v5092_v61 = vld [vmem:[%s7217_s4] ss:$16 sps:$4 sm:$0xff]   ;;  %v5107_v62 = vld [vmem:[%s7217_s4 + $0x8] ss:$16 sps:$4 sm:$0xff]  }
  0x4c   : > { %4474 = vmatprep.subr.bf16.mxu0 %v5060_v7  ;;  %4538 = vmatprep.subr.bf16.mxu1 %v5062_v8  ;;  %v386_v7 = vpack.c.bf16 %v368_v4, %v366_v3  ;;  %v389_v8 = vpack.c.bf16 %v373_v6, %v371_v5  ;;  %v5097_v4 = vld [vmem:[%s7217_s4 + $0x24] ss:$16 sps:$4 sm:$0xff]   ;;  %v5112_v5 = vld [vmem:[%s7217_s4 + $0x2c] ss:$16 sps:$4 sm:$0xff]  }
  0x4e   : > { %829 = vmatmul.mubr.bf16.vlgmr.msra.gmra.mrb[0].mxu0 %v374_v9  ;;  %942 = vmatmul.mubr.bf16.vlgmr.msra.gmra.mrb[0].mxu1 %v374_v9  ;;  %v370_v9 = vld [vmem:[%s5595_s26 + $0xe0] sm:$0xff] }
  0x4f   : > { %838 = vmatprep.mubr.bf16.mxu0 %v377_v11  ;;  %951 = vmatprep.mubr.bf16.mxu1 %v377_v11 }
  0x50   : > { %4475 = vmatpush3.bf16.msra.mxu0 %v5061_v10  ;;  %4539 = vmatpush3.bf16.msra.mxu1 %v5063_v12  ;;  %v372_v10 = vld [vmem:[%s5595_s26 + $0xf0] sm:$0xff]  ;;  %v5088_v12 = vld [vmem:[%s7216_s3 + $0x78] sm:$0xff]   ;;  %s7112_s26 = scalar_lea.vmem %s7222_s9, %s4954_s18 }
  0x51   : > { %4476 = vmatprep.subr.bf16.mxu0 %v5064_v13  ;;  %4540 = vmatprep.subr.bf16.mxu1 %v5066_v16  ;;  %v388_v11 = vpack.c.bf16 %v372_v10, %v370_v9  ;;  %v5090_v13 = vld [vmem:[%s7216_s3 + $0xf8] sm:$0xff]   ;;  %v5094_v16 = vld [vmem:[%s7217_s4 + $0x4] ss:$16 sps:$4 sm:$0xff]  }
  0x54   : > { %4477 = vmatpush3.bf16.msra.mxu0 %v5065_v19  ;;  %4541 = vmatpush3.bf16.msra.mxu1 %v5067_v20  ;;  %v5791_v19 = vshrl.u32 %v456_v18, 7  ;;  %v5110_v18 = vld [vmem:[%s7217_s4 + $0x28] ss:$16 sps:$4 sm:$0xff]  }
  0x55   : > { %4478 = vmatprep.subr.bf16.mxu0 %v5068_v21  ;;  %4542 = vmatprep.subr.bf16.mxu1 %v5070_v22 }
  0x56   : > { %839 = vmatmul.mubr.bf16.gmra.mrb[4].mxu0 %v376_v23  ;;  %952 = vmatmul.mubr.bf16.gmra.mrb[4].mxu1 %v376_v23  ;;  %7261 = vst [vmem:[#allocation2_spill] sm:$0xff] %v5791_v19  ;;  %v7225_v20 = vsub.s32 2, %v5791_v19  ;;  %v7224_v21 = vsub.s32 1, %v5791_v19  ;;  %v470_v22 = vsub.s32 3, %v5791_v19  ;;  %v454_v23 = vld [vmem:[%s7215_s2] sm:$0xf] }
  0x57   : > { %848 = vmatprep.mubr.bf16.mxu0 %v379_v25  ;;  %961 = vmatprep.mubr.bf16.mxu1 %v379_v25 }
  0x58   : > { %4479 = vmatpush3.bf16.msra.mxu0 %v5069_v24  ;;  %4543 = vmatpush3.bf16.msra.mxu1 %v5071_v26  ;;  %v7223_v24 = vsub.s32 0, %v5791_v19  ;;  %v5802_v25 = vrot.slane %v454_v23, %v7225_v20  ;;  %v5806_v26 = vrot.slane %v454_v23, %v7224_v21 }
  0x59   : > { %4480 = vmatprep.subr.bf16.mxu0 %v5072_v27  ;;  %4544 = vmatprep.subr.bf16.mxu1 %v5074_v30  ;;  %v5808_v27 = vrot.slane %v454_v23, %v470_v22 }
  0x5a   : > { %v5812_v28 = vrot.slane %v454_v23, %v7223_v24 }
  0x5c   : > { %4481 = vmatpush3.bf16.msra.mxu0 %v5073_v33  ;;  %4545 = vmatpush3.bf16.msra.mxu1 %v5075_v34 }
  0x5d   : > { %4482 = vmatprep.subr.bf16.mxu0 %v5076_v35  ;;  %4546 = vmatprep.subr.bf16.mxu1 %v5078_v36 }
  0x5e   : > { %849 = vmatmul.mubr.bf16.gmra.mrb[8].mxu0 %v378_v37  ;;  %962 = vmatmul.mubr.bf16.gmra.mrb[8].mxu1 %v378_v37 }
  0x5f   : > { %858 = vmatprep.mubr.bf16.mxu0 %v381_v39  ;;  %971 = vmatprep.mubr.bf16.mxu1 %v381_v39 }
  0x60   : > { %4483 = vmatpush3.bf16.msra.mxu0 %v5077_v38  ;;  %4547 = vmatpush3.bf16.msra.mxu1 %v5079_v40 }
  0x61   : > { %4484 = vmatprep.subr.bf16.mxu0 %v5080_v41  ;;  %4548 = vmatprep.subr.bf16.mxu1 %v5082_v42 }
  0x64   : > { %4485 = vmatpush3.bf16.msra.mxu0 %v5081_v47  ;;  %4549 = vmatpush3.bf16.msra.mxu1 %v5083_v48 }
  0x65   : > { %4486 = vmatprep.subr.bf16.mxu0 %v5084_v49  ;;  %4550 = vmatprep.subr.bf16.mxu1 %v5086_v50 }
  0x66   : > { %859 = vmatmul.mubr.bf16.gmra.mrb[12].mxu0 %v380_v51  ;;  %972 = vmatmul.mubr.bf16.gmra.mrb[12].mxu1 %v380_v51 }
  0x67   : > { %868 = vmatprep.mubr.bf16.mxu0 %v383_v54  ;;  %981 = vmatprep.mubr.bf16.mxu1 %v383_v54 }
  0x68   : > { %4487 = vmatpush3.bf16.msra.mxu0 %v5085_v52  ;;  %4551 = vmatpush3.bf16.msra.mxu1 %v5087_v53 }
  0x69   : > { %4488 = vmatprep.subr.bf16.mxu0 %v5088_v12  ;;  %4552 = vmatprep.subr.bf16.mxu1 %v5090_v13 }
  0x6c   : > { %4489 = vmatpush3.bf16.msra.mxu0 %v5089_v14  ;;  %4553 = vmatpush3.bf16.msra.mxu1 %v5091_v15 }
  0x6d   : > { %1784 = vmatprep.subr.bf16.mxu0 %v5094_v16  ;;  %1897 = vmatprep.subr.bf16.mxu1 %v5109_v17  ;;  %v5095_v17 = vld [vmem:[%s7217_s4 + $0x20] ss:$16 sps:$4 sm:$0xff]  }
  0x6e   : > { %869 = vmatmul.mubr.bf16.gmra.mrb[16].mxu0 %v382_v59  ;;  %982 = vmatmul.mubr.bf16.gmra.mrb[16].mxu1 %v382_v59 }
  0x6f   : > { %878 = vmatprep.mubr.bf16.mxu0 %v385_v60  ;;  %991 = vmatprep.mubr.bf16.mxu1 %v385_v60 }
  0x76   : > { %879 = vmatmul.mubr.bf16.gmra.mrb[20].mxu0 %v384_v1  ;;  %992 = vmatmul.mubr.bf16.gmra.mrb[20].mxu1 %v384_v1 }
  0x77   : > { %888 = vmatprep.mubr.bf16.mxu0 %v387_v2  ;;  %1001 = vmatprep.mubr.bf16.mxu1 %v387_v2 }
  0x7e   : > { %889 = vmatmul.mubr.bf16.gmra.mrb[24].mxu0 %v386_v7  ;;  %1002 = vmatmul.mubr.bf16.gmra.mrb[24].mxu1 %v386_v7 }
  0x7f   : > { %898 = vmatprep.mubr.bf16.mxu0 %v389_v8  ;;  %1011 = vmatprep.mubr.bf16.mxu1 %v389_v8 }
  0x86   : > { %899 = vmatmul.mubr.bf16.gmra.mrb[28].mxu0 %v388_v11  ;;  %1012 = vmatmul.mubr.bf16.gmra.mrb[28].mxu1 %v388_v11 }
 0x121   : > { %v830_v29 = vpop.f32.mrb[0].mxu0  ;;  %v943_v30 = vpop.f32.mrb[0].mxu1 }
 0x122   : > { %v5815_v31 = vadd.f32 %v943_v30, %v5802_v25  ;;  %v832_v32 = vpop.f32.mrb[1].mxu0  ;;  %v945_v33 = vpop.f32.mrb[1].mxu1  ;;  %v5824_v38 = vadd.f32 %v830_v29, %v5812_v28 }
 0x123   : > { %v5818_v34 = vadd.f32 %v832_v32, %v5806_v26  ;;  %v5821_v35 = vadd.f32 %v945_v33, %v5808_v27  ;;  %v834_v36 = vpop.f32.mrb[2].mxu0  ;;  %v947_v37 = vpop.f32.mrb[2].mxu1 }
 0x124   : > { %v5827_v39 = vadd.f32 %v834_v36, %v5812_v28  ;;  %v5830_v40 = vadd.f32 %v947_v37, %v5802_v25  ;;  %v836_v41 = vpop.f32.mrb[3].mxu0  ;;  %v949_v42 = vpop.f32.mrb[3].mxu1  ;;  %v1024_v46 = vmul.f32 %v5815_v31, %v5815_v31  ;;  %v1022_v52 = vmul.f32 %v5824_v38, %v5824_v38 }
 0x125   : > { %v1025_v43 = vmul.f32 %v5821_v35, %v5821_v35  ;;  %v5835_v44 = vadd.f32 %v836_v41, %v5806_v26  ;;  %v5838_v45 = vadd.f32 %v949_v42, %v5808_v27  ;;  %v1023_v48 = vmul.f32 %v5818_v34, %v5818_v34 }
 0x126   : > { %v1026_v47 = vmul.f32 %v5827_v39, %v5827_v39  ;;  %v1028_v49 = vmul.f32 %v5830_v40, %v5830_v40 }
 0x127   : > { %v1027_v50 = vmul.f32 %v5835_v44, %v5835_v44  ;;  %v1029_v51 = vmul.f32 %v5838_v45, %v5838_v45 }
 0x128   : > { %v1086_v57 = vpack.c.bf16 %v1026_v47, %v1022_v52  ;;  %v1088_v63 = vpack.c.bf16 %v1028_v49, %v1024_v46  ;;  %v5100_v47 = vld [vmem:[%s7217_s4 + $0x44] ss:$16 sps:$4 sm:$0xff]  }
 0x129   : > { %v840_v53 = vpop.f32.mrb[4].mxu0  ;;  %v953_v54 = vpop.f32.mrb[4].mxu1  ;;  %v1087_v55 = vpack.c.bf16 %v1027_v50, %v1023_v48  ;;  %v1089_v56 = vpack.c.bf16 %v1029_v51, %v1025_v43  ;;  %v5118_v48 = vld [vmem:[%s7217_s4 + $0x4c] ss:$16 sps:$4 sm:$0xff]  }
 0x12a   : > { %v5855_v58 = vadd.f32 %v953_v54, %v5802_v25  ;;  %v842_v59 = vpop.f32.mrb[5].mxu0  ;;  %v955_v60 = vpop.f32.mrb[5].mxu1  ;;  %v5876_v6 = vadd.f32 %v840_v53, %v5812_v28  ;;  %v5098_v54 = vld [vmem:[%s7217_s4 + $0x40] ss:$16 sps:$4 sm:$0xff]  }
 0x12b   : > { %v5864_v0 = vadd.f32 %v842_v59, %v5806_v26  ;;  %v5867_v1 = vadd.f32 %v955_v60, %v5808_v27  ;;  %v844_v2 = vpop.f32.mrb[6].mxu0  ;;  %v957_v3 = vpop.f32.mrb[6].mxu1  ;;  %1406 = vmatprep.mubr.bf16.mxu0 %v1087_v55  ;;  %1503 = vmatprep.mubr.bf16.mxu1 %v1089_v56  ;;  %v5116_v55 = vld [vmem:[%s7217_s4 + $0x48] ss:$16 sps:$4 sm:$0xff]  }
 0x12c   : > { %v5879_v7 = vadd.f32 %v844_v2, %v5812_v28  ;;  %v5882_v8 = vadd.f32 %v957_v3, %v5802_v25  ;;  %v846_v9 = vpop.f32.mrb[7].mxu0  ;;  %v959_v10 = vpop.f32.mrb[7].mxu1  ;;  %1407 = vmatmul.mubr.bf16.vlgmr.msra.gmra.mrb[32].mxu0 %v1086_v57  ;;  %1504 = vmatmul.mubr.bf16.vlgmr.msra.gmra.mrb[32].mxu1 %v1088_v63  ;;  %v1032_v14 = vmul.f32 %v5855_v58, %v5855_v58 }
 0x12d   : > { %v1033_v11 = vmul.f32 %v5867_v1, %v5867_v1  ;;  %v5887_v12 = vadd.f32 %v846_v9, %v5806_v26  ;;  %v5890_v13 = vadd.f32 %v959_v10, %v5808_v27  ;;  %v1031_v15 = vmul.f32 %v5864_v0, %v5864_v0  ;;  %1785 = vmatpush1.bf16.msra.mxu0 %v5092_v61 }
 0x12e   : > { %v1034_v16 = vmul.f32 %v5879_v7, %v5879_v7  ;;  %1898 = vmatpush1.bf16.msra.mxu1 %v5107_v62  ;;  %v1036_v22 = vmul.f32 %v5882_v8, %v5882_v8  ;;  %1786 = vmatprep.subr.bf16.mxu0 %v5097_v4  ;;  %v1030_v30 = vmul.f32 %v5876_v6, %v5876_v6  ;;  %v5103_v62 = vld [vmem:[%s7217_s4 + $0x64] ss:$16 sps:$4 sm:$0xff]  }
 0x12f   : > { %v1035_v23 = vmul.f32 %v5887_v12, %v5887_v12  ;;  %v1037_v29 = vmul.f32 %v5890_v13, %v5890_v13  ;;  %1899 = vmatprep.subr.bf16.mxu1 %v5112_v5 }
 0x130   : > { %v1090_v46 = vpack.c.bf16 %v1034_v16, %v1030_v30  ;;  %v1092_v53 = vpack.c.bf16 %v1036_v22, %v1032_v14 }
 0x131   : > { %v850_v32 = vpop.f32.mrb[8].mxu0  ;;  %v963_v33 = vpop.f32.mrb[8].mxu1  ;;  %v1091_v36 = vpack.c.bf16 %v1035_v23, %v1031_v15  ;;  %v1093_v37 = vpack.c.bf16 %v1037_v29, %v1033_v11  ;;  %1787 = vmatpush1.bf16.msra.mxu0 %v5095_v17 }
 0x132   : > { %v5913_v41 = vadd.f32 %v963_v33, %v5802_v25  ;;  %v852_v42 = vpop.f32.mrb[9].mxu0  ;;  %v965_v43 = vpop.f32.mrb[9].mxu1  ;;  %1900 = vmatpush1.bf16.msra.mxu1 %v5110_v18  ;;  %v5934_v56 = vadd.f32 %v850_v32, %v5812_v28  ;;  %1788 = vmatprep.subr.bf16.mxu0 %v5100_v47  ;;  %v5101_v33 = vld [vmem:[%s7217_s4 + $0x60] ss:$16 sps:$4 sm:$0xff]   ;;  %v5106_v47 = vld [vmem:[%s7217_s4 + $0x84] ss:$16 sps:$4 sm:$0xff]  }
 0x133   : > { %v5922_v49 = vadd.f32 %v852_v42, %v5806_v26  ;;  %v5925_v50 = vadd.f32 %v965_v43, %v5808_v27  ;;  %v854_v51 = vpop.f32.mrb[10].mxu0  ;;  %v967_v52 = vpop.f32.mrb[10].mxu1  ;;  %1414 = vmatprep.mubr.bf16.mxu0 %v1091_v36  ;;  %1511 = vmatprep.mubr.bf16.mxu1 %v1093_v37 }
 0x134   : > { %v5937_v57 = vadd.f32 %v854_v51, %v5812_v28  ;;  %v5940_v59 = vadd.f32 %v967_v52, %v5802_v25  ;;  %v856_v60 = vpop.f32.mrb[11].mxu0  ;;  %v969_v61 = vpop.f32.mrb[11].mxu1  ;;  %1415 = vmatmul.mubr.bf16.gmra.mrb[36].mxu0 %v1090_v46  ;;  %1512 = vmatmul.mubr.bf16.gmra.mrb[36].mxu1 %v1092_v53  ;;  %v1040_v4 = vmul.f32 %v5913_v41, %v5913_v41 }
 0x135   : > { %v1041_v63 = vmul.f32 %v5925_v50, %v5925_v50  ;;  %v5948_v2 = vadd.f32 %v856_v60, %v5806_v26  ;;  %v5951_v3 = vadd.f32 %v969_v61, %v5808_v27  ;;  %v1039_v5 = vmul.f32 %v5922_v49, %v5922_v49  ;;  %1901 = vmatprep.subr.bf16.mxu1 %v5118_v48 }
 0x136   : > { %v1042_v9 = vmul.f32 %v5937_v57, %v5937_v57  ;;  %v1044_v10 = vmul.f32 %v5940_v59, %v5940_v59  ;;  %1789 = vmatpush1.bf16.msra.mxu0 %v5098_v54  ;;  %1902 = vmatpush1.bf16.msra.mxu1 %v5116_v55  ;;  %v1038_v15 = vmul.f32 %v5934_v56, %v5934_v56 }
 0x137   : > { %v1043_v11 = vmul.f32 %v5948_v2, %v5948_v2  ;;  %v1045_v14 = vmul.f32 %v5951_v3, %v5951_v3  ;;  %1790 = vmatprep.subr.bf16.mxu0 %v5103_v62 }
 0x138   : > { %v1094_v32 = vpack.c.bf16 %v1042_v9, %v1038_v15  ;;  %v1096_v46 = vpack.c.bf16 %v1044_v10, %v1040_v4  ;;  %v5104_v4 = vld [vmem:[%s7217_s4 + $0x80] ss:$16 sps:$4 sm:$0xff]  }
 0x139   : > { %v860_v16 = vpop.f32.mrb[12].mxu0  ;;  %v973_v17 = vpop.f32.mrb[12].mxu1  ;;  %v1095_v18 = vpack.c.bf16 %v1043_v11, %v1039_v5  ;;  %v1097_v22 = vpack.c.bf16 %v1045_v14, %v1041_v63 }
 0x13a   : > { %v5968_v23 = vadd.f32 %v973_v17, %v5802_v25  ;;  %v862_v29 = vpop.f32.mrb[13].mxu0  ;;  %v975_v30 = vpop.f32.mrb[13].mxu1  ;;  %v5983_v48 = vadd.f32 %v860_v16, %v5812_v28  ;;  %1791 = vmatpush1.bf16.msra.mxu0 %v5101_v33  ;;  %v5115_v33 = vld [vmem:[%s7217_s4 + $0xa4] ss:$16 sps:$4 sm:$0xff]  }
 0x13b   : > { %v5974_v36 = vadd.f32 %v862_v29, %v5806_v26  ;;  %v5977_v37 = vadd.f32 %v975_v30, %v5808_v27  ;;  %v864_v42 = vpop.f32.mrb[14].mxu0  ;;  %v977_v43 = vpop.f32.mrb[14].mxu1  ;;  %1422 = vmatprep.mubr.bf16.mxu0 %v1095_v18  ;;  %1519 = vmatprep.mubr.bf16.mxu1 %v1097_v22 }
 0x13c   : > { %v5986_v51 = vadd.f32 %v864_v42, %v5812_v28  ;;  %v5989_v52 = vadd.f32 %v977_v43, %v5802_v25  ;;  %v866_v53 = vpop.f32.mrb[15].mxu0  ;;  %v979_v54 = vpop.f32.mrb[15].mxu1  ;;  %1423 = vmatmul.mubr.bf16.gmra.mrb[40].mxu0 %v1094_v32  ;;  %1520 = vmatmul.mubr.bf16.gmra.mrb[40].mxu1 %v1096_v46  ;;  %v1048_v62 = vmul.f32 %v5968_v23, %v5968_v23 }
 0x13d   : > { %v1049_v55 = vmul.f32 %v5977_v37, %v5977_v37  ;;  %v5994_v60 = vadd.f32 %v866_v53, %v5806_v26  ;;  %v5997_v61 = vadd.f32 %v979_v54, %v5808_v27  ;;  %v1047_v5 = vmul.f32 %v5974_v36, %v5974_v36  ;;  %1792 = vmatprep.subr.bf16.mxu0 %v5106_v47  ;;  %v5113_v54 = vld [vmem:[%s7217_s4 + $0xa0] ss:$16 sps:$4 sm:$0xff]  }
 0x13e   : > { %v1050_v63 = vmul.f32 %v5986_v51, %v5986_v51  ;;  %v1052_v9 = vmul.f32 %v5989_v52, %v5989_v52  ;;  %v1046_v14 = vmul.f32 %v5983_v48, %v5983_v48  ;;  %1793 = vmatpush1.bf16.msra.mxu0 %v5104_v4 }
 0x13f   : > { %v1051_v10 = vmul.f32 %v5994_v60, %v5994_v60  ;;  %v1053_v11 = vmul.f32 %v5997_v61, %v5997_v61  ;;  %1794 = vmatprep.subr.bf16.mxu0 %v5115_v33 }
 0x140   : > { %v1098_v32 = vpack.c.bf16 %v1050_v63, %v1046_v14  ;;  %v1100_v53 = vpack.c.bf16 %v1052_v9, %v1048_v62 }
 0x141   : > { %v870_v15 = vpop.f32.mrb[16].mxu0  ;;  %v983_v16 = vpop.f32.mrb[16].mxu1  ;;  %v1099_v17 = vpack.c.bf16 %v1051_v10, %v1047_v5  ;;  %v1101_v18 = vpack.c.bf16 %v1053_v11, %v1049_v55 }
 0x142   : > { %v6017_v22 = vadd.f32 %v983_v16, %v5802_v25  ;;  %v872_v29 = vpop.f32.mrb[17].mxu0  ;;  %v985_v30 = vpop.f32.mrb[17].mxu1  ;;  %v6032_v55 = vadd.f32 %v870_v15, %v5812_v28  ;;  %1795 = vmatpush1.bf16.msra.mxu0 %v5113_v54 }
 0x143   : > { %v6023_v42 = vadd.f32 %v872_v29, %v5806_v26  ;;  %v6026_v43 = vadd.f32 %v985_v30, %v5808_v27  ;;  %v874_v46 = vpop.f32.mrb[18].mxu0  ;;  %v987_v47 = vpop.f32.mrb[18].mxu1  ;;  %1430 = vmatprep.mubr.bf16.mxu0 %v1099_v17  ;;  %1527 = vmatprep.mubr.bf16.mxu1 %v1101_v18 }
 0x144   : > { %v6035_v63 = vadd.f32 %v874_v46, %v5812_v28  ;;  %v6038_v4 = vadd.f32 %v987_v47, %v5802_v25  ;;  %v876_v5 = vpop.f32.mrb[19].mxu0  ;;  %v989_v10 = vpop.f32.mrb[19].mxu1  ;;  %1431 = vmatmul.mubr.bf16.gmra.mrb[44].mxu0 %v1098_v32  ;;  %1528 = vmatmul.mubr.bf16.gmra.mrb[44].mxu1 %v1100_v53  ;;  %v1056_v14 = vmul.f32 %v6017_v22, %v6017_v22 }
 0x145   : > { %v1057_v11 = vmul.f32 %v6026_v43, %v6026_v43  ;;  %v6043_v62 = vadd.f32 %v876_v5, %v5806_v26  ;;  %v6046_v9 = vadd.f32 %v989_v10, %v5808_v27  ;;  %v1055_v16 = vmul.f32 %v6023_v42, %v6023_v42 }
 0x146   : > { %v1058_v15 = vmul.f32 %v6035_v63, %v6035_v63  ;;  %v1060_v17 = vmul.f32 %v6038_v4, %v6038_v4  ;;  %v1054_v30 = vmul.f32 %v6032_v55, %v6032_v55 }
 0x147   : > { %7262 = vst [vmem:[#allocation3_spill] sm:$0xff] %v6046_v9  ;;  %v1059_v18 = vmul.f32 %v6043_v62, %v6043_v62  ;;  %v1061_v29 = vmul.f32 %v6046_v9, %v6046_v9 }
 0x148   : > { %v1102_v24 = vpack.c.bf16 %v1058_v15, %v1054_v30  ;;  %v1104_v9 = vpack.c.bf16 %v1060_v17, %v1056_v14 }
 0x149   : > { %v880_v32 = vpop.f32.mrb[20].mxu0  ;;  %v993_v46 = vpop.f32.mrb[20].mxu1  ;;  %v1103_v47 = vpack.c.bf16 %v1059_v18, %v1055_v16  ;;  %v1105_v33 = vpack.c.bf16 %v1061_v29, %v1057_v11 }
 0x14a   : > { %v6063_v53 = vadd.f32 %v993_v46, %v5802_v25  ;;  %v882_v5 = vpop.f32.mrb[21].mxu0  ;;  %v995_v10 = vpop.f32.mrb[21].mxu1  ;;  %v6072_v16 = vadd.f32 %v880_v32, %v5812_v28 }
 0x14b   : > { %v6066_v21 = vadd.f32 %v882_v5, %v5806_v26  ;;  %v6069_v20 = vadd.f32 %v995_v10, %v5808_v27  ;;  %v884_v54 = vpop.f32.mrb[22].mxu0  ;;  %v997_v19 = vpop.f32.mrb[22].mxu1  ;;  %1438 = vmatprep.mubr.bf16.mxu0 %v1103_v47  ;;  %1535 = vmatprep.mubr.bf16.mxu1 %v1105_v33 }
 0x14c   : > { %7263 = vst [vmem:[#allocation4_spill] sm:$0xff] %v6063_v53  ;;  %7266 = vst [vmem:[#allocation7_spill] sm:$0xff] %v6072_v16  ;;  %v6075_v11 = vadd.f32 %v884_v54, %v5812_v28  ;;  %v6078_v18 = vadd.f32 %v997_v19, %v5802_v25  ;;  %v886_v15 = vpop.f32.mrb[23].mxu0  ;;  %v999_v29 = vpop.f32.mrb[23].mxu1  ;;  %1439 = vmatmul.mubr.bf16.gmra.mrb[48].mxu0 %v1102_v24  ;;  %1536 = vmatmul.mubr.bf16.gmra.mrb[48].mxu1 %v1104_v9 }
 0x14d   : > { %7264 = vst [vmem:[#allocation5_spill] sm:$0xff] %v6066_v21  ;;  %7265 = vst [vmem:[#allocation6_spill] sm:$0xff] %v6069_v20  ;;  %v1065_v30 = vmul.f32 %v6069_v20, %v6069_v20  ;;  %v6083_v46 = vadd.f32 %v886_v15, %v5806_v26  ;;  %v6086_v14 = vadd.f32 %v999_v29, %v5808_v27 }
 0x14e   : > { %7267 = vst [vmem:[#allocation8_spill] sm:$0xff] %v6075_v11  ;;  %7268 = vst [vmem:[#allocation9_spill] sm:$0xff] %v6078_v18  ;;  %v1064_v17 = vmul.f32 %v6063_v53, %v6063_v53  ;;  %v1066_v19 = vmul.f32 %v6075_v11, %v6075_v11  ;;  %v1063_v32 = vmul.f32 %v6066_v21, %v6066_v21 }
 0x14f   : > { %7269 = vst [vmem:[#allocation10_spill] sm:$0xff] %v6083_v46  ;;  %7270 = vst [vmem:[#allocation11_spill] sm:$0xff] %v6086_v14  ;;  %v1068_v24 = vmul.f32 %v6078_v18, %v6078_v18  ;;  %v1067_v47 = vmul.f32 %v6083_v46, %v6083_v46  ;;  %v1069_v33 = vmul.f32 %v6086_v14, %v6086_v14 }
 0x150   : > { %v1062_v9 = vmul.f32 %v6072_v16, %v6072_v16 }
 0x151   : > { %v890_v5 = vpop.f32.mrb[24].mxu0  ;;  %v1003_v10 = vpop.f32.mrb[24].mxu1  ;;  %v1107_v54 = vpack.c.bf16 %v1067_v47, %v1063_v32  ;;  %v1109_v15 = vpack.c.bf16 %v1069_v33, %v1065_v30  ;;  %v1108_v16 = vpack.c.bf16 %v1068_v24, %v1064_v17 }
 0x152   : > { %v6103_v29 = vadd.f32 %v1003_v10, %v5802_v25  ;;  %v892_v20 = vpop.f32.mrb[25].mxu0  ;;  %v1005_v21 = vpop.f32.mrb[25].mxu1  ;;  %v1106_v11 = vpack.c.bf16 %v1066_v19, %v1062_v9  ;;  %v6112_v32 = vadd.f32 %v890_v5, %v5812_v28 }
 0x153   : > { %v6106_v18 = vadd.f32 %v892_v20, %v5806_v26  ;;  %v6109_v46 = vadd.f32 %v1005_v21, %v5808_v27  ;;  %v894_v14 = vpop.f32.mrb[26].mxu0  ;;  %v1007_v53 = vpop.f32.mrb[26].mxu1  ;;  %1446 = vmatprep.mubr.bf16.mxu0 %v1107_v54  ;;  %1543 = vmatprep.mubr.bf16.mxu1 %v1109_v15 }
 0x154   : > { %7271 = vst [vmem:[#allocation12_spill] sm:$0xff] %v6103_v29  ;;  %7274 = vst [vmem:[#allocation15_spill] sm:$0xff] %v6112_v32  ;;  %v6115_v30 = vadd.f32 %v894_v14, %v5812_v28  ;;  %v6118_v47 = vadd.f32 %v1007_v53, %v5802_v25  ;;  %v896_v19 = vpop.f32.mrb[27].mxu0  ;;  %v1009_v20 = vpop.f32.mrb[27].mxu1  ;;  %1447 = vmatmul.mubr.bf16.gmra.mrb[52].mxu0 %v1106_v11  ;;  %1544 = vmatmul.mubr.bf16.gmra.mrb[52].mxu1 %v1108_v16 }
 0x155   : > { %7272 = vst [vmem:[#allocation13_spill] sm:$0xff] %v6106_v18  ;;  %7273 = vst [vmem:[#allocation14_spill] sm:$0xff] %v6109_v46  ;;  %v1073_v21 = vmul.f32 %v6109_v46, %v6109_v46  ;;  %v6123_v33 = vadd.f32 %v896_v19, %v5806_v26  ;;  %v6126_v17 = vadd.f32 %v1009_v20, %v5808_v27 }
 0x156   : > { %7275 = vst [vmem:[#allocation16_spill] sm:$0xff] %v6115_v30  ;;  %7276 = vst [vmem:[#allocation17_spill] sm:$0xff] %v6118_v47  ;;  %v1072_v14 = vmul.f32 %v6103_v29, %v6103_v29  ;;  %v1074_v53 = vmul.f32 %v6115_v30, %v6115_v30  ;;  %v1071_v24 = vmul.f32 %v6106_v18, %v6106_v18 }
 0x157   : > { %7277 = vst [vmem:[#allocation18_spill] sm:$0xff] %v6123_v33  ;;  %7278 = vst [vmem:[#allocation19_spill] sm:$0xff] %v6126_v17  ;;  %v1076_v11 = vmul.f32 %v6118_v47, %v6118_v47  ;;  %v1075_v9 = vmul.f32 %v6123_v33, %v6123_v33  ;;  %v1077_v5 = vmul.f32 %v6126_v17, %v6126_v17 }
 0x158   : > { %v1070_v16 = vmul.f32 %v6112_v32, %v6112_v32 }
 0x159   : > { %v900_v10 = vpop.f32.mrb[28].mxu0  ;;  %v1013_v54 = vpop.f32.mrb[28].mxu1  ;;  %v1111_v15 = vpack.c.bf16 %v1075_v9, %v1071_v24  ;;  %v1113_v19 = vpack.c.bf16 %v1077_v5, %v1073_v21  ;;  %v1112_v32 = vpack.c.bf16 %v1076_v11, %v1072_v14 }
 0x15a   : > { %v6143_v20 = vadd.f32 %v1013_v54, %v5802_v25  ;;  %v902_v46 = vpop.f32.mrb[29].mxu0  ;;  %v1015_v18 = vpop.f32.mrb[29].mxu1  ;;  %v1110_v30 = vpack.c.bf16 %v1074_v53, %v1070_v16  ;;  %v6152_v24 = vadd.f32 %v900_v10, %v5812_v28  ;;  %v5121_v54 = vld [vmem:[%s7217_s4 + $0x6c] ss:$16 sps:$4 sm:$0xff]  }
 0x15b   : > { %v6146_v47 = vadd.f32 %v902_v46, %v5806_v26  ;;  %v6149_v33 = vadd.f32 %v1015_v18, %v5808_v27  ;;  %v904_v17 = vpop.f32.mrb[30].mxu0  ;;  %v1017_v29 = vpop.f32.mrb[30].mxu1  ;;  %1454 = vmatprep.mubr.bf16.mxu0 %v1111_v15  ;;  %1551 = vmatprep.mubr.bf16.mxu1 %v1113_v19  ;;  %v5119_v15 = vld [vmem:[%s7217_s4 + $0x68] ss:$16 sps:$4 sm:$0xff]   ;;  %v5127_v19 = vld [vmem:[%s7217_s4 + $0x8c] ss:$16 sps:$4 sm:$0xff]  }
 0x15c   : > { %v6155_v21 = vadd.f32 %v904_v17, %v5812_v28  ;;  %v6158_v9 = vadd.f32 %v1017_v29, %v5802_v25  ;;  %v906_v53 = vpop.f32.mrb[31].mxu0  ;;  %v1019_v46 = vpop.f32.mrb[31].mxu1  ;;  %1455 = vmatmul.mubr.bf16.gmra.mrb[56].mxu0 %v1110_v30  ;;  %1552 = vmatmul.mubr.bf16.gmra.mrb[56].mxu1 %v1112_v32  ;;  %v1080_v28 = vmul.f32 %v6143_v20, %v6143_v20 }
 0x15d   : > { %7279 = vst [vmem:[#allocation20_spill] sm:$0xff] %v6146_v47  ;;  %7280 = vst [vmem:[#allocation21_spill] sm:$0xff] %v6149_v33  ;;  %v1081_v18 = vmul.f32 %v6149_v33, %v6149_v33  ;;  %v6163_v5 = vadd.f32 %v906_v53, %v5806_v26  ;;  %v6166_v14 = vadd.f32 %v1019_v46, %v5808_v27  ;;  %1903 = vmatprep.subr.bf16.mxu1 %v5121_v54  ;;  %v5125_v53 = vld [vmem:[%s7217_s4 + $0x88] ss:$16 sps:$4 sm:$0xff]   ;;  %v5122_v46 = vld [vmem:[%s7217_s4 + $0xc0] ss:$16 sps:$4 sm:$0xff]  }
 0x15e   : > { %7281 = vst [vmem:[#allocation22_spill] sm:$0xff] %v6155_v21  ;;  %7282 = vst [vmem:[#allocation23_spill] sm:$0xff] %v6158_v9  ;;  %v1082_v25 = vmul.f32 %v6155_v21, %v6155_v21  ;;  %v1079_v29 = vmul.f32 %v6146_v47, %v6146_v47  ;;  %v1084_v30 = vmul.f32 %v6158_v9, %v6158_v9  ;;  %1904 = vmatpush1.bf16.msra.mxu1 %v5119_v15 }
 0x15f   : > { %7283 = vst [vmem:[#allocation24_spill] sm:$0xff] %v6163_v5  ;;  %7284 = vst [vmem:[#allocation25_spill] sm:$0xff] %v6166_v14  ;;  %v1083_v26 = vmul.f32 %v6163_v5, %v6163_v5  ;;  %v1085_v27 = vmul.f32 %v6166_v14, %v6166_v14  ;;  %v1078_v32 = vmul.f32 %v6152_v24, %v6152_v24  ;;  %1905 = vmatprep.subr.bf16.mxu1 %v5127_v19 }
 0x160   : > { %v1116_v10 = vpack.c.bf16 %v1084_v30, %v1080_v28  ;;  %v5130_v28 = vld [vmem:[%s7217_s4 + $0xac] ss:$16 sps:$4 sm:$0xff]   ;;  %v5134_v30 = vld [vmem:[%s7217_s4 + $0xc8] ss:$16 sps:$4 sm:$0xff]  }
 0x161   : > { %v1115_v17 = vpack.c.bf16 %v1083_v26, %v1079_v29  ;;  %v1117_v11 = vpack.c.bf16 %v1085_v27, %v1081_v18  ;;  %v1114_v16 = vpack.c.bf16 %v1082_v25, %v1078_v32  ;;  %v5124_v18 = vld [vmem:[%s7217_s4 + $0xc4] ss:$16 sps:$4 sm:$0xff]   ;;  %v5128_v25 = vld [vmem:[%s7217_s4 + $0xa8] ss:$16 sps:$4 sm:$0xff]   ;;  %v5136_v29 = vld [vmem:[%s7217_s4 + $0xcc] ss:$16 sps:$4 sm:$0xff]  }
 0x162   : > { %1906 = vmatpush1.bf16.msra.mxu1 %v5125_v53  ;;  %1796 = vmatprep.subr.bf16.mxu0 %v5124_v18  ;;  %v5131_v26 = vld [vmem:[%s7217_s4 + $0xe0] ss:$16 sps:$4 sm:$0xff]   ;;  %v5133_v27 = vld [vmem:[%s7217_s4 + $0xe4] ss:$16 sps:$4 sm:$0xff]   ;;  %v5139_v32 = vld [vmem:[%s7217_s4 + $0xec] ss:$16 sps:$4 sm:$0xff]  }
 0x163   : > { %1462 = vmatprep.mubr.bf16.mxu0 %v1115_v17  ;;  %1559 = vmatprep.mubr.bf16.mxu1 %v1117_v11  ;;  %v5137_v17 = vld [vmem:[%s7217_s4 + $0xe8] ss:$16 sps:$4 sm:$0xff]   ;;  %v7245_v11 = vmov 0  }
 0x164   : > { %1463 = vmatmul.mubr.bf16.gmra.mrb[60].mxu0 %v1114_v16  ;;  %1560 = vmatmul.mubr.bf16.gmra.mrb[60].mxu1 %v1116_v10  ;;  %v5140_v16 = vld [vmem:[%s7218_s5 + $0xc8] ss:$12 sps:$4 sm:$0xff]   ;;  %v5143_v10 = vld [vmem:[%s7218_s5 + $0x4] ss:$12 sps:$4 sm:$0xff]  }
 0x165   : > { %1907 = vmatprep.subr.bf16.mxu1 %v5130_v28  ;;  %1797 = vmatpush1.bf16.msra.mxu0 %v5122_v46 }
 0x166   : > { %1908 = vmatpush1.bf16.msra.mxu1 %v5128_v25  ;;  %1798 = vmatprep.subr.bf16.mxu0 %v5133_v27 }
 0x167   : > { %1909 = vmatprep.subr.bf16.mxu1 %v5136_v29  ;;  %1816 = vmatprep.mubr.bf16.mxu0 %v7245_v11 }
 0x168   : > { %1929 = vmatprep.mubr.bf16.mxu1 %v7245_v11 }
 0x169   : > { %1799 = vmatpush1.bf16.msra.mxu0 %v5131_v26 }
 0x16a   : > { %1910 = vmatpush1.bf16.msra.mxu1 %v5134_v30  ;;  %2763 = vmatprep.subr.bf16.mxu0 %v5143_v10 }
 0x16b   : > { %1911 = vmatprep.subr.bf16.mxu1 %v5139_v32 }
 0x16e   : > { %1912 = vmatpush1.bf16.msra.mxu1 %v5137_v17 }
 0x16f   : > { %4602 = vmatprep.subr.bf16.mxu1 %v5140_v16 }
 0x1ff   : > { %v4490_v54 = vpop.f32.mrb[32].mxu0  ;;  %v4554_v15 = vpop.f32.mrb[32].mxu1 }
 0x200   : > { %v4491_v19 = vpop.f32.mrb[33].mxu0  ;;  %v4555_v46 = vpop.f32.mrb[33].mxu1 }
 0x201   : > { %v4492_v53 = vadd.f32 %v4491_v19, %v4490_v54  ;;  %v4493_v18 = vpop.f32.mrb[34].mxu0  ;;  %v4556_v28 = vadd.f32 %v4555_v46, %v4554_v15  ;;  %v4557_v25 = vpop.f32.mrb[34].mxu1 }
 0x202   : > { %v4494_v29 = vpop.f32.mrb[35].mxu0  ;;  %v4558_v27 = vpop.f32.mrb[35].mxu1 }
 0x203   : > { %v1409_v30 = vadd.f32 1e-08, %v4492_v53  ;;  %v4495_v26 = vadd.f32 %v4494_v29, %v4493_v18  ;;  %v4559_v32 = vadd.f32 %v4558_v27, %v4557_v25 }
 0x205   : > { %v1506_v17 = vadd.f32 %v4556_v28, %v1409_v30  ;;  %v1412_v11 = vadd.f32 1e-08, %v4495_v26 }
 0x207   : > { %v1509_v14 = vadd.f32 %v4559_v32, %v1412_v11  ;;  %v4496_v5 = vpop.f32.mrb[36].mxu0  ;;  %5324 = vrsqrt.f32 %v1506_v17  ;;  %v4560_v16 = vpop.f32.mrb[36].mxu1 }
 0x208   : > { %v4497_v10 = vpop.f32.mrb[37].mxu0  ;;  %v4561_v47 = vpop.f32.mrb[37].mxu1 }
 0x209   : > { %5326 = vrsqrt.f32 %v1509_v14  ;;  %v4498_v33 = vadd.f32 %v4497_v10, %v4496_v5  ;;  %v4499_v54 = vpop.f32.mrb[38].mxu0  ;;  %v4562_v19 = vadd.f32 %v4561_v47, %v4560_v16  ;;  %v4563_v9 = vpop.f32.mrb[38].mxu1 }
 0x20a   : > { %v4500_v15 = vpop.f32.mrb[39].mxu0  ;;  %v4564_v53 = vpop.f32.mrb[39].mxu1 }
 0x20b   : > { %v1417_v46 = vadd.f32 1e-08, %v4498_v33  ;;  %v4501_v21 = vadd.f32 %v4500_v15, %v4499_v54  ;;  %v4565_v18 = vadd.f32 %v4564_v53, %v4563_v9 }
 0x20d   : > { %v1514_v29 = vadd.f32 %v4562_v19, %v1417_v46  ;;  %v1420_v25 = vadd.f32 1e-08, %v4501_v21  ;;  %v5141_v21 = vld [vmem:[%s7218_s5] ss:$12 sps:$4 sm:$0xff]   ;;  %v5144_v46 = vld [vmem:[%s7218_s5 + $0x8] ss:$12 sps:$4 sm:$0xff]  }
 0x20f   : > { %v1517_v28 = vadd.f32 %v4565_v18, %v1420_v25  ;;  %v4502_v30 = vpop.f32.mrb[40].mxu0  ;;  %5328 = vrsqrt.f32 %v1514_v29  ;;  %v4566_v11 = vpop.f32.mrb[40].mxu1  ;;  %v5147_v29 = vld [vmem:[%s7218_s5 + $0x1c] ss:$12 sps:$4 sm:$0xff]   ;;  %v5148_v25 = vld [vmem:[%s7218_s5 + $0xe0] ss:$12 sps:$4 sm:$0xff]  }
 0x210   : > { %v4503_v26 = vpop.f32.mrb[41].mxu0  ;;  %v4567_v14 = vpop.f32.mrb[41].mxu1 }
 0x211   : > { %5330 = vrsqrt.f32 %v1517_v28  ;;  %v4504_v27 = vadd.f32 %v4503_v26, %v4502_v30  ;;  %v4505_v5 = vpop.f32.mrb[42].mxu0  ;;  %v5325_v32 = vpop.eup %5324  ;;  %v4568_v17 = vadd.f32 %v4567_v14, %v4566_v11  ;;  %v7285_v11 = vmov 0   ;;  %v5145_v14 = vld [vmem:[%s7218_s5 + $0x18] ss:$12 sps:$4 sm:$0xff]  }
 0x212   : > { %v4569_v47 = vpop.f32.mrb[42].mxu1  ;;  %v4506_v16 = vpop.f32.mrb[43].mxu0 }
 0x213   : > { %v5327_v10 = vpop.eup %5326  ;;  %v1425_v33 = vadd.f32 1e-08, %v4504_v27  ;;  %v4507_v54 = vadd.f32 %v4506_v16, %v4505_v5  ;;  %v4570_v15 = vpop.f32.mrb[43].mxu1  ;;  %v5152_v5 = vld [vmem:[%s7218_s5 + $0x20] ss:$12 sps:$4 sm:$0xff]  }
 0x214   : > { %v4571_v9 = vadd.f32 %v4570_v15, %v4569_v47  ;;  %v1584_v19 = vpack.c.bf16 %v5327_v10, %v5325_v32  ;;  %v5151_v16 = vld [vmem:[%s7218_s5 + $0x34] ss:$12 sps:$4 sm:$0xff]   ;;  %v5156_v10 = vld [vmem:[%s7218_s5 + $0xf8] ss:$12 sps:$4 sm:$0xff]  }
 0x215   : > { %v1522_v53 = vadd.f32 %v4568_v17, %v1425_v33  ;;  %v1428_v18 = vadd.f32 1e-08, %v4507_v54 }
 0x216   : > { %1817 = vmatmul.mubr.bf16.vlgmr.msra.gmra.mrb[64].mxu0 %v1584_v19  ;;  %1930 = vmatmul.mubr.bf16.vlgmr.msra.gmra.mrb[64].mxu1 %v1584_v19 }
 0x217   : > { %v1525_v28 = vadd.f32 %v4571_v9, %v1428_v18  ;;  %v4508_v30 = vpop.f32.mrb[44].mxu0  ;;  %1826 = vmatprep.mubr.bf16.mxu0 %v7285_v11  ;;  %1939 = vmatprep.mubr.bf16.mxu1 %v7285_v11  ;;  %5332 = vrsqrt.f32 %v1522_v53  ;;  %v4572_v26 = vpop.f32.mrb[44].mxu1 }
 0x218   : > { %v4509_v27 = vpop.f32.mrb[45].mxu0  ;;  %4603 = vmatpush3.bf16.msra.mxu1 %v5144_v46  ;;  %2764 = vmatpush1.bf16.msra.mxu0 %v5141_v21  ;;  %v4573_v17 = vpop.f32.mrb[45].mxu1 }
 0x219   : > { %5334 = vrsqrt.f32 %v1525_v28  ;;  %v4510_v32 = vadd.f32 %v4509_v27, %v4508_v30  ;;  %v4511_v47 = vpop.f32.mrb[46].mxu0  ;;  %2765 = vmatprep.subr.bf16.mxu0 %v5147_v29  ;;  %4604 = vmatprep.subr.bf16.mxu1 %v5148_v25  ;;  %v5329_v33 = vpop.eup %5328  ;;  %v4574_v54 = vadd.f32 %v4573_v17, %v4572_v26  ;;  %v5149_v29 = vld [vmem:[%s7218_s5 + $0x30] ss:$12 sps:$4 sm:$0xff]   ;;  %v5160_v25 = vld [vmem:[%s7218_s5 + $0x38] ss:$12 sps:$4 sm:$0xff]  }
 0x21a   : > { %v4575_v15 = vpop.f32.mrb[46].mxu1  ;;  %v4512_v9 = vpop.f32.mrb[47].mxu0  ;;  %v5155_v27 = vld [vmem:[%s7218_s5 + $0x4c] ss:$12 sps:$4 sm:$0xff]  }
 0x21b   : > { %v5331_v19 = vpop.eup %5330  ;;  %v1433_v21 = vadd.f32 1e-08, %v4510_v32  ;;  %v4513_v46 = vadd.f32 %v4512_v9, %v4511_v47  ;;  %v4576_v53 = vpop.f32.mrb[47].mxu1  ;;  %v5159_v9 = vld [vmem:[%s7218_s5 + $0x64] ss:$12 sps:$4 sm:$0xff]  }
 0x21c   : > { %v4577_v18 = vadd.f32 %v4576_v53, %v4575_v15  ;;  %v1585_v28 = vpack.c.bf16 %v5331_v19, %v5329_v33  ;;  %2766 = vmatpush1.bf16.msra.mxu0 %v5145_v14  ;;  %4605 = vmatpush3.bf16.msra.mxu1 %v5152_v5  ;;  %v5164_v14 = vld [vmem:[%s7218_s5 + $0x110] ss:$12 sps:$4 sm:$0xff]   ;;  %v5172_v19 = vld [vmem:[%s7218_s5 + $0x128] ss:$12 sps:$4 sm:$0xff]  }
 0x21d   : > { %v1530_v30 = vadd.f32 %v4574_v54, %v1433_v21  ;;  %v1436_v26 = vadd.f32 1e-08, %v4513_v46  ;;  %2767 = vmatprep.subr.bf16.mxu0 %v5151_v16  ;;  %4606 = vmatprep.subr.bf16.mxu1 %v5156_v10  ;;  %v5153_v16 = vld [vmem:[%s7218_s5 + $0x48] ss:$12 sps:$4 sm:$0xff]   ;;  %v5168_v10 = vld [vmem:[%s7218_s5 + $0x50] ss:$12 sps:$4 sm:$0xff]  }
 0x21e   : > { %1827 = vmatmul.mubr.bf16.gmra.mrb[68].mxu0 %v1585_v28  ;;  %1940 = vmatmul.mubr.bf16.gmra.mrb[68].mxu1 %v1585_v28 }
 0x21f   : > { %v1533_v32 = vadd.f32 %v4577_v18, %v1436_v26  ;;  %v4514_v5 = vpop.f32.mrb[48].mxu0  ;;  %1836 = vmatprep.mubr.bf16.mxu0 %v7285_v11  ;;  %1949 = vmatprep.mubr.bf16.mxu1 %v7285_v11  ;;  %5336 = vrsqrt.f32 %v1530_v30  ;;  %v4578_v17 = vpop.f32.mrb[48].mxu1 }
 0x220   : > { %v4515_v47 = vpop.f32.mrb[49].mxu0  ;;  %2768 = vmatpush1.bf16.msra.mxu0 %v5149_v29  ;;  %4607 = vmatpush3.bf16.msra.mxu1 %v5160_v25  ;;  %v4579_v54 = vpop.f32.mrb[49].mxu1 }
 0x221   : > { %5338 = vrsqrt.f32 %v1533_v32  ;;  %v4516_v33 = vadd.f32 %v4515_v47, %v4514_v5  ;;  %v4517_v15 = vpop.f32.mrb[50].mxu0  ;;  %2769 = vmatprep.subr.bf16.mxu0 %v5155_v27  ;;  %4608 = vmatprep.subr.bf16.mxu1 %v5164_v14  ;;  %v5333_v21 = vpop.eup %5332  ;;  %v4580_v46 = vadd.f32 %v4579_v54, %v4578_v17  ;;  %v5157_v27 = vld [vmem:[%s7218_s5 + $0x60] ss:$12 sps:$4 sm:$0xff]   ;;  %v5176_v14 = vld [vmem:[%s7218_s5 + $0x68] ss:$12 sps:$4 sm:$0xff]  }
 0x222   : > { %v4581_v53 = vpop.f32.mrb[50].mxu1  ;;  %v4518_v18 = vpop.f32.mrb[51].mxu0  ;;  %v5163_v47 = vld [vmem:[%s7218_s5 + $0x7c] ss:$12 sps:$4 sm:$0xff]  }
 0x223   : > { %v5335_v28 = vpop.eup %5334  ;;  %v1441_v29 = vadd.f32 1e-08, %v4516_v33  ;;  %v4519_v25 = vadd.f32 %v4518_v18, %v4517_v15  ;;  %v4582_v30 = vpop.f32.mrb[51].mxu1  ;;  %v5167_v18 = vld [vmem:[%s7218_s5 + $0x94] ss:$12 sps:$4 sm:$0xff]  }
 0x224   : > { %v4583_v26 = vadd.f32 %v4582_v30, %v4581_v53  ;;  %v1586_v32 = vpack.c.bf16 %v5335_v28, %v5333_v21  ;;  %2770 = vmatpush1.bf16.msra.mxu0 %v5153_v16  ;;  %4609 = vmatpush3.bf16.msra.mxu1 %v5168_v10  ;;  %v5180_v16 = vld [vmem:[%s7218_s5 + $0x140] ss:$12 sps:$4 sm:$0xff]   ;;  %v5188_v28 = vld [vmem:[%s7218_s5 + $0x158] ss:$12 sps:$4 sm:$0xff]  }
 0x225   : > { %v1538_v5 = vadd.f32 %v4580_v46, %v1441_v29  ;;  %v1444_v17 = vadd.f32 1e-08, %v4519_v25  ;;  %2771 = vmatprep.subr.bf16.mxu0 %v5159_v9  ;;  %4610 = vmatprep.subr.bf16.mxu1 %v5172_v19  ;;  %v5161_v9 = vld [vmem:[%s7218_s5 + $0x78] ss:$12 sps:$4 sm:$0xff]   ;;  %v5184_v19 = vld [vmem:[%s7218_s5 + $0x80] ss:$12 sps:$4 sm:$0xff]  }
 0x226   : > { %1837 = vmatmul.mubr.bf16.gmra.mrb[72].mxu0 %v1586_v32  ;;  %1950 = vmatmul.mubr.bf16.gmra.mrb[72].mxu1 %v1586_v32 }
 0x227   : > { %v1541_v33 = vadd.f32 %v4583_v26, %v1444_v17  ;;  %v4520_v10 = vpop.f32.mrb[52].mxu0  ;;  %1846 = vmatprep.mubr.bf16.mxu0 %v7285_v11  ;;  %1959 = vmatprep.mubr.bf16.mxu1 %v7285_v11  ;;  %5340 = vrsqrt.f32 %v1538_v5  ;;  %v4584_v54 = vpop.f32.mrb[52].mxu1 }
 0x228   : > { %v4521_v15 = vpop.f32.mrb[53].mxu0  ;;  %2772 = vmatpush1.bf16.msra.mxu0 %v5157_v27  ;;  %4611 = vmatpush3.bf16.msra.mxu1 %v5176_v14  ;;  %v4585_v46 = vpop.f32.mrb[53].mxu1 }
 0x229   : > { %5342 = vrsqrt.f32 %v1541_v33  ;;  %v4522_v21 = vadd.f32 %v4521_v15, %v4520_v10  ;;  %v4523_v53 = vpop.f32.mrb[54].mxu0  ;;  %2773 = vmatprep.subr.bf16.mxu0 %v5163_v47  ;;  %4612 = vmatprep.subr.bf16.mxu1 %v5180_v16  ;;  %v5337_v29 = vpop.eup %5336  ;;  %v4586_v25 = vadd.f32 %v4585_v46, %v4584_v54  ;;  %v5165_v47 = vld [vmem:[%s7218_s5 + $0x90] ss:$12 sps:$4 sm:$0xff]   ;;  %v5192_v16 = vld [vmem:[%s7218_s5 + $0x98] ss:$12 sps:$4 sm:$0xff]  }
 0x22a   : > { %v4587_v30 = vpop.f32.mrb[54].mxu1  ;;  %v4524_v26 = vpop.f32.mrb[55].mxu0  ;;  %v5171_v15 = vld [vmem:[%s7218_s5 + $0xac] ss:$12 sps:$4 sm:$0xff]  }
 0x22b   : > { %v5339_v32 = vpop.eup %5338  ;;  %v1449_v27 = vadd.f32 1e-08, %v4522_v21  ;;  %v4525_v14 = vadd.f32 %v4524_v26, %v4523_v53  ;;  %v4588_v5 = vpop.f32.mrb[55].mxu1  ;;  %v5169_v53 = vld [vmem:[%s7218_s5 + $0xa8] ss:$12 sps:$4 sm:$0xff]  }
 0x22c   : > { %v4589_v17 = vadd.f32 %v4588_v5, %v4587_v30  ;;  %v1587_v33 = vpack.c.bf16 %v5339_v32, %v5337_v29  ;;  %2774 = vmatpush1.bf16.msra.mxu0 %v5161_v9  ;;  %4613 = vmatpush3.bf16.msra.mxu1 %v5184_v19 }
 0x22d   : > { %v1546_v10 = vadd.f32 %v4586_v25, %v1449_v27  ;;  %v1452_v54 = vadd.f32 1e-08, %v4525_v14  ;;  %2775 = vmatprep.subr.bf16.mxu0 %v5167_v18  ;;  %4614 = vmatprep.subr.bf16.mxu1 %v5188_v28  ;;  %v5175_v25 = vld [vmem:[%s7218_s5 + $0xc4] ss:$12 sps:$4 sm:$0xff]  }
 0x22e   : > { %1847 = vmatmul.mubr.bf16.gmra.mrb[76].mxu0 %v1587_v33  ;;  %1960 = vmatmul.mubr.bf16.gmra.mrb[76].mxu1 %v1587_v33 }
 0x22f   : > { %v1549_v9 = vadd.f32 %v4589_v17, %v1452_v54  ;;  %v4526_v21 = vpop.f32.mrb[56].mxu0  ;;  %1856 = vmatprep.mubr.bf16.mxu0 %v7285_v11  ;;  %1969 = vmatprep.mubr.bf16.mxu1 %v7285_v11  ;;  %5344 = vrsqrt.f32 %v1546_v10  ;;  %v4590_v19 = vpop.f32.mrb[56].mxu1 }
 0x230   : > { %v4527_v46 = vpop.f32.mrb[57].mxu0  ;;  %2776 = vmatpush1.bf16.msra.mxu0 %v5165_v47  ;;  %4615 = vmatpush3.bf16.msra.mxu1 %v5192_v16  ;;  %v4591_v28 = vpop.f32.mrb[57].mxu1  ;;  %v5173_v16 = vld [vmem:[%s7218_s5 + $0xc0] ss:$12 sps:$4 sm:$0xff]  }
 0x231   : > { %5346 = vrsqrt.f32 %v1549_v9  ;;  %v4528_v18 = vadd.f32 %v4527_v46, %v4526_v21  ;;  %v4529_v29 = vpop.f32.mrb[58].mxu0  ;;  %2777 = vmatprep.subr.bf16.mxu0 %v5171_v15  ;;  %v5341_v30 = vpop.eup %5340  ;;  %v4592_v26 = vadd.f32 %v4591_v28, %v4590_v19  ;;  %v5179_v9 = vld [vmem:[%s7218_s5 + $0xdc] ss:$12 sps:$4 sm:$0xff]  }
 0x232   : > { %v4593_v32 = vpop.f32.mrb[58].mxu1  ;;  %v4530_v27 = vpop.f32.mrb[59].mxu0 }
 0x233   : > { %v5343_v14 = vpop.eup %5342  ;;  %v1457_v5 = vadd.f32 1e-08, %v4528_v18  ;;  %v4531_v17 = vadd.f32 %v4530_v27, %v4529_v29  ;;  %v4594_v33 = vpop.f32.mrb[59].mxu1  ;;  %v5177_v18 = vld [vmem:[%s7218_s5 + $0xd8] ss:$12 sps:$4 sm:$0xff]  }
 0x234   : > { %v4595_v47 = vadd.f32 %v4594_v33, %v4593_v32  ;;  %v1588_v10 = vpack.c.bf16 %v5343_v14, %v5341_v30  ;;  %2778 = vmatpush1.bf16.msra.mxu0 %v5169_v53  ;;  %v5183_v30 = vld [vmem:[%s7218_s5 + $0xf4] ss:$12 sps:$4 sm:$0xff]  }
 0x235   : > { %v1554_v54 = vadd.f32 %v4592_v26, %v1457_v5  ;;  %v1460_v15 = vadd.f32 1e-08, %v4531_v17  ;;  %2779 = vmatprep.subr.bf16.mxu0 %v5175_v25 }
 0x236   : > { %1857 = vmatmul.mubr.bf16.gmra.mrb[80].mxu0 %v1588_v10  ;;  %1970 = vmatmul.mubr.bf16.gmra.mrb[80].mxu1 %v1588_v10 }
 0x237   : > { %v1557_v21 = vadd.f32 %v4595_v47, %v1460_v15  ;;  %v4532_v19 = vpop.f32.mrb[60].mxu0  ;;  %1866 = vmatprep.mubr.bf16.mxu0 %v7285_v11  ;;  %1979 = vmatprep.mubr.bf16.mxu1 %v7285_v11  ;;  %5348 = vrsqrt.f32 %v1554_v54  ;;  %v4596_v46 = vpop.f32.mrb[60].mxu1  ;;  %v5181_v54 = vld [vmem:[%s7218_s5 + $0xf0] ss:$12 sps:$4 sm:$0xff]  }
 0x238   : > { %v4533_v53 = vpop.f32.mrb[61].mxu0  ;;  %2780 = vmatpush1.bf16.msra.mxu0 %v5173_v16  ;;  %v4597_v29 = vpop.f32.mrb[61].mxu1 }
 0x239   : > { %5350 = vrsqrt.f32 %v1557_v21  ;;  %v4534_v28 = vadd.f32 %v4533_v53, %v4532_v19  ;;  %v4535_v25 = vpop.f32.mrb[62].mxu0  ;;  %2781 = vmatprep.subr.bf16.mxu0 %v5179_v9  ;;  %v5345_v26 = vpop.eup %5344  ;;  %v4598_v32 = vadd.f32 %v4597_v29, %v4596_v46  ;;  %v5187_v21 = vld [vmem:[%s7218_s5 + $0x10c] ss:$12 sps:$4 sm:$0xff]   ;;  %v5185_v46 = vld [vmem:[%s7218_s5 + $0x108] ss:$12 sps:$4 sm:$0xff]  }
 0x23a   : > { %v4599_v27 = vpop.f32.mrb[62].mxu1  ;;  %v4536_v14 = vpop.f32.mrb[63].mxu0  ;;  %v5191_v53 = vld [vmem:[%s7218_s5 + $0x124] ss:$12 sps:$4 sm:$0xff]  }
 0x23b   : > { %v5347_v5 = vpop.eup %5346  ;;  %v1465_v17 = vadd.f32 1e-08, %v4534_v28  ;;  %v4537_v33 = vadd.f32 %v4536_v14, %v4535_v25  ;;  %v4600_v47 = vpop.f32.mrb[63].mxu1  ;;  %v5189_v25 = vld [vmem:[%s7218_s5 + $0x120] ss:$12 sps:$4 sm:$0xff]  }
 0x23c   : > { %v4601_v10 = vadd.f32 %v4600_v47, %v4599_v27  ;;  %v1589_v16 = vpack.c.bf16 %v5347_v5, %v5345_v26  ;;  %2782 = vmatpush1.bf16.msra.mxu0 %v5177_v18  ;;  %v5193_v26 = vld [vmem:[%s7218_s5 + $0x138] ss:$12 sps:$4 sm:$0xff]   ;;  %v5199_v5 = vld [vmem:[%s7218_s5 + $0x154] ss:$12 sps:$4 sm:$0xff]   ;;  %v5200_v47 = vld [vmem:[%s7218_s5 + $0xb0] ss:$12 sps:$4 sm:$0xff]  }
 0x23d   : > { %v1562_v15 = vadd.f32 %v4598_v32, %v1465_v17  ;;  %v1468_v9 = vadd.f32 1e-08, %v4537_v33  ;;  %2783 = vmatprep.subr.bf16.mxu0 %v5183_v30  ;;  %v5195_v30 = vld [vmem:[%s7218_s5 + $0x13c] ss:$12 sps:$4 sm:$0xff]  }
 0x23e   : > { %1867 = vmatmul.mubr.bf16.gmra.mrb[84].mxu0 %v1589_v16  ;;  %1980 = vmatmul.mubr.bf16.gmra.mrb[84].mxu1 %v1589_v16  ;;  %v5196_v17 = vld [vmem:[%s7218_s5 + $0x170] ss:$12 sps:$4 sm:$0xff]   ;;  %v5201_v16 = vld [vmem:[%s7218_s5 + $0x168] ss:$12 sps:$4 sm:$0xff]  }
 0x23f   : > { %v1565_v19 = vadd.f32 %v4601_v10, %v1468_v9  ;;  %1876 = vmatprep.mubr.bf16.mxu0 %v7285_v11  ;;  %1989 = vmatprep.mubr.bf16.mxu1 %v7285_v11  ;;  %5352 = vrsqrt.f32 %v1562_v15  ;;  %v5197_v33 = vld [vmem:[%s7218_s5 + $0x150] ss:$12 sps:$4 sm:$0xff]   ;;  %v5203_v10 = vld [vmem:[%s7218_s5 + $0x16c] ss:$12 sps:$4 sm:$0xff]   ;;  %v5204_v15 = vld [vmem:[%s7218_s5 + $0x248] ss:$12 sps:$4 sm:$0xff]  }
 0x240   : > { %2784 = vmatpush1.bf16.msra.mxu0 %v5181_v54  ;;  %4616 = vmatprep.subr.bf16.mxu1 %v5196_v17  ;;  %v5207_v54 = vld [vmem:[%s7218_s5 + $0x184] ss:$12 sps:$4 sm:$0xff]  }
 0x241   : > { %5354 = vrsqrt.f32 %v1565_v19  ;;  %2785 = vmatprep.subr.bf16.mxu0 %v5187_v21  ;;  %v5349_v18 = vpop.eup %5348  ;;  %4617 = vmatpush3.bf16.msra.mxu1 %v5200_v47 }
 0x242   : > { %4666 = vmatprep.subr.bf16.mxu1 %v5204_v15 }
 0x243   : > { %v5351_v28 = vpop.eup %5350 }
 0x244   : > { %v1590_v29 = vpack.c.bf16 %v5351_v28, %v5349_v18  ;;  %2786 = vmatpush1.bf16.msra.mxu0 %v5185_v46 }
 0x245   : > { %2787 = vmatprep.subr.bf16.mxu0 %v5191_v53 }
 0x246   : > { %1877 = vmatmul.mubr.bf16.gmra.mrb[88].mxu0 %v1590_v29  ;;  %1990 = vmatmul.mubr.bf16.gmra.mrb[88].mxu1 %v1590_v29 }
 0x247   : > { %1886 = vmatprep.mubr.bf16.mxu0 %v7285_v11  ;;  %1999 = vmatprep.mubr.bf16.mxu1 %v7285_v11 }
 0x248   : > { %2788 = vmatpush1.bf16.msra.mxu0 %v5189_v25 }
 0x249   : > { %2789 = vmatprep.subr.bf16.mxu0 %v5195_v30  ;;  %v5353_v32 = vpop.eup %5352 }
 0x24b   : > { %v5355_v27 = vpop.eup %5354 }
 0x24c   : > { %v1591_v14 = vpack.c.bf16 %v5355_v27, %v5353_v32  ;;  %2790 = vmatpush1.bf16.msra.mxu0 %v5193_v26 }
 0x24d   : > { %2791 = vmatprep.subr.bf16.mxu0 %v5199_v5 }
 0x24e   : > { %1887 = vmatmul.mubr.bf16.gmra.mrb[92].mxu0 %v1591_v14  ;;  %2000 = vmatmul.mubr.bf16.gmra.mrb[92].mxu1 %v1591_v14 }
 0x250   : > { %2792 = vmatpush1.bf16.msra.mxu0 %v5197_v33 }
 0x251   : > { %2793 = vmatprep.subr.bf16.mxu0 %v5203_v10 }
 0x254   : > { %2794 = vmatpush1.bf16.msra.mxu0 %v5201_v16 }
 0x255   : > { %2876 = vmatprep.subr.bf16.mxu0 %v5207_v54 }
 0x2e9   : > { %v1818_v9 = vpop.f32.mrb[64].mxu0  ;;  %v1931_v21 = vpop.f32.mrb[64].mxu1 }
 0x2ea   : > { %v1820_v19 = vpop.f32.mrb[65].mxu0  ;;  %v1933_v46 = vpop.f32.mrb[65].mxu1  ;;  %v2010_v28 = vmul.f32 %v1818_v9, %v5824_v38  ;;  %v2012_v29 = vmul.f32 %v1931_v21, %v5815_v31  ;;  %v5205_v31 = vld [vmem:[%s7218_s5 + $0x180] ss:$12 sps:$4 sm:$0xff]   ;;  %v5209_v21 = vld [vmem:[%s7218_s5 + $0x198] ss:$12 sps:$4 sm:$0xff]  }
 0x2eb   : > { %v1822_v53 = vpop.f32.mrb[66].mxu0  ;;  %v1935_v18 = vpop.f32.mrb[66].mxu1  ;;  %v2011_v27 = vmul.f32 %v1820_v19, %v5818_v34  ;;  %v2013_v14 = vmul.f32 %v1933_v46, %v5821_v35  ;;  %v5208_v34 = vld [vmem:[%s7218_s5 + $0x188] ss:$12 sps:$4 sm:$0xff]   ;;  %v5216_v19 = vld [vmem:[%s7218_s5 + $0x1a0] ss:$12 sps:$4 sm:$0xff]  }
 0x2ec   : > { %v2014_v25 = vmul.f32 %v1822_v53, %v5827_v39  ;;  %v2016_v30 = vmul.f32 %v1935_v18, %v5830_v40  ;;  %v1824_v26 = vpop.f32.mrb[67].mxu0  ;;  %v1937_v32 = vpop.f32.mrb[67].mxu1  ;;  %v5211_v35 = vld [vmem:[%s7218_s5 + $0x19c] ss:$12 sps:$4 sm:$0xff]   ;;  %v5212_v39 = vld [vmem:[%s7218_s5 + $0x260] ss:$12 sps:$4 sm:$0xff]  }
 0x2ed   : > { %v2015_v5 = vmul.f32 %v1824_v26, %v5835_v44  ;;  %v2017_v17 = vmul.f32 %v1937_v32, %v5838_v45 }
 0x2ee   : > { %v2074_v33 = vpack.c.bf16 %v2014_v25, %v2010_v28  ;;  %v6398_v47 = vpack.c.bf16 %v2016_v30, %v2012_v29  ;;  %v5215_v29 = vld [vmem:[%s7218_s5 + $0x1b4] ss:$12 sps:$4 sm:$0xff]   ;;  %v5220_v25 = vld [vmem:[%s7218_s5 + $0x278] ss:$12 sps:$4 sm:$0xff]  }
 0x2ef   : > { %v2075_v38 = vpack.c.bf16 %v2015_v5, %v2011_v27  ;;  %v6400_v10 = vpack.c.bf16 %v2017_v17, %v2013_v14  ;;  %v5213_v5 = vld [vmem:[%s7218_s5 + $0x1b0] ss:$12 sps:$4 sm:$0xff]  }
 0x2f1   : > { %v1828_v40 = vpop.f32.mrb[68].mxu0  ;;  %v1941_v44 = vpop.f32.mrb[68].mxu1  ;;  %2795 = vmatprep.mubr.bf16.mxu0 %v2075_v38  ;;  %3021 = vmatprep.mubr.bf16.mxu1 %v2075_v38 }
 0x2f2   : > { %v1830_v45 = vpop.f32.mrb[69].mxu0  ;;  %v1943_v16 = vpop.f32.mrb[69].mxu1  ;;  %2796 = vmatmul.mubr.bf16.vlgmr.msra.gmra.mrb[96].mxu0 %v2074_v33  ;;  %3022 = vmatmul.mubr.bf16.vlgmr.msra.gmra.mrb[96].mxu1 %v2074_v33  ;;  %v2018_v54 = vmul.f32 %v1828_v40, %v5876_v6  ;;  %v2020_v46 = vmul.f32 %v1941_v44, %v5855_v58  ;;  %v5232_v40 = vld [vmem:[%s7218_s5 + $0x1d0] ss:$12 sps:$4 sm:$0xff]  }
 0x2f3   : > { %4667 = vmatpush3.bf16.msra.mxu1 %v5208_v34  ;;  %v1832_v15 = vpop.f32.mrb[70].mxu0  ;;  %v1945_v9 = vpop.f32.mrb[70].mxu1  ;;  %2877 = vmatpush1.bf16.msra.mxu0 %v5205_v31  ;;  %v2019_v30 = vmul.f32 %v1830_v45, %v5864_v0  ;;  %v2021_v58 = vmul.f32 %v1943_v16, %v5867_v1  ;;  %v5224_v0 = vld [vmem:[%s7218_s5 + $0x1b8] ss:$12 sps:$4 sm:$0xff]  }
 0x2f4   : > { %v2022_v53 = vmul.f32 %v1832_v15, %v5879_v7  ;;  %v2024_v18 = vmul.f32 %v1945_v9, %v5882_v8  ;;  %v1834_v28 = vpop.f32.mrb[71].mxu0  ;;  %v1947_v6 = vpop.f32.mrb[71].mxu1  ;;  %2878 = vmatprep.subr.bf16.mxu0 %v5211_v35  ;;  %4668 = vmatprep.subr.bf16.mxu1 %v5212_v39  ;;  %v5219_v1 = vld [vmem:[%s7218_s5 + $0x1cc] ss:$12 sps:$4 sm:$0xff]   ;;  %v5217_v39 = vld [vmem:[%s7218_s5 + $0x1c8] ss:$12 sps:$4 sm:$0xff]  }
 0x2f5   : > { %v2023_v7 = vmul.f32 %v1834_v28, %v5887_v12  ;;  %v2025_v8 = vmul.f32 %v1947_v6, %v5890_v13  ;;  %v5228_v12 = vld [vmem:[%s7218_s5 + $0x290] ss:$12 sps:$4 sm:$0xff]   ;;  %v5236_v9 = vld [vmem:[%s7218_s5 + $0x2a8] ss:$12 sps:$4 sm:$0xff]   ;;  %v5221_v28 = vld [vmem:[%s7218_s5 + $0x1e0] ss:$12 sps:$4 sm:$0xff]  }
 0x2f6   : > { %v2078_v26 = vpack.c.bf16 %v2022_v53, %v2018_v54  ;;  %v6434_v32 = vpack.c.bf16 %v2024_v18, %v2020_v46  ;;  %v5223_v15 = vld [vmem:[%s7218_s5 + $0x1e4] ss:$12 sps:$4 sm:$0xff]  }
 0x2f7   : > { %v2079_v27 = vpack.c.bf16 %v2023_v7, %v2019_v30  ;;  %v6436_v14 = vpack.c.bf16 %v2025_v8, %v2021_v58  ;;  %2879 = vmatpush1.bf16.msra.mxu0 %v5209_v21  ;;  %4669 = vmatpush3.bf16.msra.mxu1 %v5216_v19  ;;  %v5225_v8 = vld [vmem:[%s7218_s5 + $0x1f8] ss:$12 sps:$4 sm:$0xff]  }
 0x2f8   : > { %2880 = vmatprep.subr.bf16.mxu0 %v5215_v29  ;;  %4670 = vmatprep.subr.bf16.mxu1 %v5220_v25 }
 0x2f9   : > { %v1838_v13 = vpop.f32.mrb[72].mxu0  ;;  %v1951_v17 = vpop.f32.mrb[72].mxu1  ;;  %2805 = vmatprep.mubr.bf16.mxu0 %v2079_v27  ;;  %3029 = vmatprep.mubr.bf16.mxu1 %v2079_v27 }
 0x2fa   : > { %v1840_v33 = vpop.f32.mrb[73].mxu0  ;;  %v1953_v38 = vpop.f32.mrb[73].mxu1  ;;  %2806 = vmatmul.mubr.bf16.gmra.mrb[100].mxu0 %v2078_v26  ;;  %3030 = vmatmul.mubr.bf16.gmra.mrb[100].mxu1 %v2078_v26  ;;  %v2026_v31 = vmul.f32 %v1838_v13, %v5934_v56  ;;  %v2028_v44 = vmul.f32 %v1951_v17, %v5913_v41  ;;  %v5248_v26 = vld [vmem:[%s7218_s5 + $0x200] ss:$12 sps:$4 sm:$0xff]   ;;  %v5252_v13 = vld [vmem:[%s7218_s5 + $0x2d8] ss:$12 sps:$4 sm:$0xff]  }
 0x2fb   : > { %v1842_v34 = vpop.f32.mrb[74].mxu0  ;;  %v1955_v35 = vpop.f32.mrb[74].mxu1  ;;  %2881 = vmatpush1.bf16.msra.mxu0 %v5213_v5  ;;  %4671 = vmatpush3.bf16.msra.mxu1 %v5224_v0  ;;  %v2027_v21 = vmul.f32 %v1840_v33, %v5922_v49  ;;  %v2029_v41 = vmul.f32 %v1953_v38, %v5925_v50  ;;  %v5240_v49 = vld [vmem:[%s7218_s5 + $0x1e8] ss:$12 sps:$4 sm:$0xff]  }
 0x2fc   : > { %v2030_v45 = vmul.f32 %v1842_v34, %v5937_v57  ;;  %v2032_v16 = vmul.f32 %v1955_v35, %v5940_v59  ;;  %v1844_v54 = vpop.f32.mrb[75].mxu0  ;;  %v1957_v56 = vpop.f32.mrb[75].mxu1  ;;  %2882 = vmatprep.subr.bf16.mxu0 %v5219_v1  ;;  %4672 = vmatprep.subr.bf16.mxu1 %v5228_v12  ;;  %v5227_v50 = vld [vmem:[%s7218_s5 + $0x1fc] ss:$12 sps:$4 sm:$0xff]   ;;  %v5231_v12 = vld [vmem:[%s7218_s5 + $0x214] ss:$12 sps:$4 sm:$0xff]  }
 0x2fd   : > { %v2031_v57 = vmul.f32 %v1844_v54, %v5948_v2  ;;  %v2033_v59 = vmul.f32 %v1957_v56, %v5951_v3  ;;  %v5244_v2 = vld [vmem:[%s7218_s5 + $0x2c0] ss:$12 sps:$4 sm:$0xff]   ;;  %v5229_v35 = vld [vmem:[%s7218_s5 + $0x210] ss:$12 sps:$4 sm:$0xff]   ;;  %v5233_v56 = vld [vmem:[%s7218_s5 + $0x228] ss:$12 sps:$4 sm:$0xff]  }
 0x2fe   : > { %v2082_v19 = vpack.c.bf16 %v2030_v45, %v2026_v31  ;;  %v6470_v46 = vpack.c.bf16 %v2032_v16, %v2028_v44 }
 0x2ff   : > { %v2083_v53 = vpack.c.bf16 %v2031_v57, %v2027_v21  ;;  %v6472_v18 = vpack.c.bf16 %v2033_v59, %v2029_v41  ;;  %2883 = vmatpush1.bf16.msra.mxu0 %v5217_v39  ;;  %4673 = vmatpush3.bf16.msra.mxu1 %v5232_v40  ;;  %v5239_v59 = vld [vmem:[%s7218_s5 + $0x244] ss:$12 sps:$4 sm:$0xff]  }
 0x300   : > { %2884 = vmatprep.subr.bf16.mxu0 %v5223_v15  ;;  %4674 = vmatprep.subr.bf16.mxu1 %v5236_v9  ;;  %v5264_v15 = vld [vmem:[%s7218_s5 + $0x230] ss:$12 sps:$4 sm:$0xff]  }
 0x301   : > { %v1848_v3 = vpop.f32.mrb[76].mxu0  ;;  %v1961_v6 = vpop.f32.mrb[76].mxu1  ;;  %2815 = vmatprep.mubr.bf16.mxu0 %v2083_v53  ;;  %3037 = vmatprep.mubr.bf16.mxu1 %v2083_v53 }
 0x302   : > { %v1850_v29 = vpop.f32.mrb[77].mxu0  ;;  %v1963_v25 = vpop.f32.mrb[77].mxu1  ;;  %2816 = vmatmul.mubr.bf16.gmra.mrb[104].mxu0 %v2082_v19  ;;  %3038 = vmatmul.mubr.bf16.gmra.mrb[104].mxu1 %v2082_v19  ;;  %v2034_v30 = vmul.f32 %v1848_v3, %v5983_v48  ;;  %v2036_v27 = vmul.f32 %v1961_v6, %v5968_v23  ;;  %v5237_v3 = vld [vmem:[%s7218_s5 + $0x240] ss:$12 sps:$4 sm:$0xff]  }
 0x303   : > { %v1852_v58 = vpop.f32.mrb[78].mxu0  ;;  %v1965_v7 = vpop.f32.mrb[78].mxu1  ;;  %2885 = vmatpush1.bf16.msra.mxu0 %v5221_v28  ;;  %4675 = vmatpush3.bf16.msra.mxu1 %v5240_v49  ;;  %v2035_v17 = vmul.f32 %v1850_v29, %v5974_v36  ;;  %v2037_v23 = vmul.f32 %v1963_v25, %v5977_v37  ;;  %v5256_v36 = vld [vmem:[%s7218_s5 + $0x218] ss:$12 sps:$4 sm:$0xff]   ;;  %v7286_v49 = vld [vmem:[#allocation3_spill] sm:$0xff] }
 0x304   : > { %v2038_v5 = vmul.f32 %v1852_v58, %v5986_v51  ;;  %v2040_v0 = vmul.f32 %v1965_v7, %v5989_v52  ;;  %v1854_v1 = vpop.f32.mrb[79].mxu0  ;;  %v1967_v48 = vpop.f32.mrb[79].mxu1  ;;  %2886 = vmatprep.subr.bf16.mxu0 %v5227_v50  ;;  %4676 = vmatprep.subr.bf16.mxu1 %v5244_v2  ;;  %v5235_v37 = vld [vmem:[%s7218_s5 + $0x22c] ss:$12 sps:$4 sm:$0xff]  }
 0x305   : > { %v2039_v51 = vmul.f32 %v1854_v1, %v5994_v60  ;;  %v2041_v52 = vmul.f32 %v1967_v48, %v5997_v61  ;;  %v5260_v60 = vld [vmem:[%s7218_s5 + $0x2f0] ss:$12 sps:$4 sm:$0xff]   ;;  %v5241_v58 = vld [vmem:[%s7218_s5 + $0x258] ss:$12 sps:$4 sm:$0xff]   ;;  %v7287_v7 = vld [vmem:[#allocation7_spill] sm:$0xff] }
 0x306   : > { %v2086_v33 = vpack.c.bf16 %v2038_v5, %v2034_v30  ;;  %v6506_v38 = vpack.c.bf16 %v2040_v0, %v2036_v27  ;;  %v7289_v5 = vld [vmem:[#allocation8_spill] sm:$0xff]  ;;  %v7290_v1 = vld [vmem:[#allocation9_spill] sm:$0xff] }
 0x307   : > { %v2087_v31 = vpack.c.bf16 %v2039_v51, %v2035_v17  ;;  %v6508_v34 = vpack.c.bf16 %v2041_v52, %v2037_v23  ;;  %2887 = vmatpush1.bf16.msra.mxu0 %v5225_v8  ;;  %4677 = vmatpush3.bf16.msra.mxu1 %v5248_v26  ;;  %v7288_v26 = vld [vmem:[#allocation4_spill] sm:$0xff]  ;;  %v7291_v23 = vld [vmem:[#allocation5_spill] sm:$0xff]  ;;  %v7292_v52 = vld [vmem:[#allocation6_spill] sm:$0xff] }
 0x308   : > { %2888 = vmatprep.subr.bf16.mxu0 %v5231_v12  ;;  %4678 = vmatprep.subr.bf16.mxu1 %v5252_v13  ;;  %v5247_v17 = vld [vmem:[%s7218_s5 + $0x274] ss:$12 sps:$4 sm:$0xff]  }
 0x309   : > { %v1858_v61 = vpop.f32.mrb[80].mxu0  ;;  %v1971_v39 = vpop.f32.mrb[80].mxu1  ;;  %2825 = vmatprep.mubr.bf16.mxu0 %v2087_v31  ;;  %3045 = vmatprep.mubr.bf16.mxu1 %v2087_v31  ;;  %v7293_v31 = vld [vmem:[#allocation10_spill] sm:$0xff] }
 0x30a   : > { %v1860_v40 = vpop.f32.mrb[81].mxu0  ;;  %v1973_v44 = vpop.f32.mrb[81].mxu1  ;;  %2826 = vmatmul.mubr.bf16.gmra.mrb[108].mxu0 %v2086_v33  ;;  %3046 = vmatmul.mubr.bf16.gmra.mrb[108].mxu1 %v2086_v33  ;;  %v2042_v45 = vmul.f32 %v1858_v61, %v6032_v55  ;;  %v2044_v9 = vmul.f32 %v1971_v39, %v6017_v22 }
 0x30b   : > { %v1862_v16 = vpop.f32.mrb[82].mxu0  ;;  %v1975_v54 = vpop.f32.mrb[82].mxu1  ;;  %2889 = vmatpush1.bf16.msra.mxu0 %v5229_v35  ;;  %4679 = vmatpush3.bf16.msra.mxu1 %v5256_v36  ;;  %v2043_v19 = vmul.f32 %v1860_v40, %v6023_v42  ;;  %v2045_v53 = vmul.f32 %v1973_v44, %v6026_v43  ;;  %v5243_v42 = vld [vmem:[%s7218_s5 + $0x25c] ss:$12 sps:$4 sm:$0xff]  }
 0x30c   : > { %v2046_v21 = vmul.f32 %v1862_v16, %v6035_v63  ;;  %v2048_v41 = vmul.f32 %v1975_v54, %v6038_v4  ;;  %v1864_v57 = vpop.f32.mrb[83].mxu0  ;;  %v1977_v55 = vpop.f32.mrb[83].mxu1  ;;  %2890 = vmatprep.subr.bf16.mxu0 %v5235_v37  ;;  %4680 = vmatprep.subr.bf16.mxu1 %v5260_v60  ;;  %v7294_v36 = vld [vmem:[#allocation11_spill] sm:$0xff]  ;;  %v5245_v44 = vld [vmem:[%s7218_s5 + $0x270] ss:$12 sps:$4 sm:$0xff]  }
 0x30d   : > { %v2047_v28 = vmul.f32 %v1864_v57, %v6043_v62  ;;  %v2049_v22 = vmul.f32 %v1977_v55, %v7286_v49  ;;  %v7295_v57 = vld [vmem:[#allocation15_spill] sm:$0xff]  ;;  %v7298_v49 = vld [vmem:[#allocation17_spill] sm:$0xff] }
 0x30e   : > { %v2090_v50 = vpack.c.bf16 %v2046_v21, %v2042_v45  ;;  %v6539_v63 = vpack.c.bf16 %v2048_v41, %v2044_v9  ;;  %v5251_v45 = vld [vmem:[%s7218_s5 + $0x28c] ss:$12 sps:$4 sm:$0xff]   ;;  %v5249_v41 = vld [vmem:[%s7218_s5 + $0x288] ss:$12 sps:$4 sm:$0xff]  }
 0x30f   : > { %v2091_v4 = vpack.c.bf16 %v2047_v28, %v2043_v19  ;;  %v6541_v2 = vpack.c.bf16 %v2049_v22, %v2045_v53  ;;  %2891 = vmatpush1.bf16.msra.mxu0 %v5233_v56  ;;  %4681 = vmatpush3.bf16.msra.mxu1 %v5264_v15  ;;  %v7297_v53 = vld [vmem:[#allocation16_spill] sm:$0xff] }
 0x310   : > { %2892 = vmatprep.subr.bf16.mxu0 %v5239_v59  ;;  %v7296_v59 = vld [vmem:[#allocation12_spill] sm:$0xff] }
 0x311   : > { %v1868_v43 = vpop.f32.mrb[84].mxu0  ;;  %v1981_v62 = vpop.f32.mrb[84].mxu1  ;;  %2835 = vmatprep.mubr.bf16.mxu0 %v2091_v4  ;;  %3053 = vmatprep.mubr.bf16.mxu1 %v2091_v4 }
 0x312   : > { %v1870_v6 = vpop.f32.mrb[85].mxu0  ;;  %v1983_v29 = vpop.f32.mrb[85].mxu1  ;;  %2836 = vmatmul.mubr.bf16.gmra.mrb[112].mxu0 %v2090_v50  ;;  %3054 = vmatmul.mubr.bf16.gmra.mrb[112].mxu1 %v2090_v50  ;;  %v2050_v8 = vmul.f32 %v1868_v43, %v7287_v7  ;;  %v2052_v27 = vmul.f32 %v1981_v62, %v7288_v26  ;;  %v7300_v62 = vld [vmem:[#allocation14_spill] sm:$0xff] }
 0x313   : > { %v1872_v25 = vpop.f32.mrb[86].mxu0  ;;  %v1985_v30 = vpop.f32.mrb[86].mxu1  ;;  %2893 = vmatpush1.bf16.msra.mxu0 %v5237_v3  ;;  %v2051_v51 = vmul.f32 %v1870_v6, %v7291_v23  ;;  %v2053_v33 = vmul.f32 %v1983_v29, %v7292_v52  ;;  %v5255_v3 = vld [vmem:[%s7218_s5 + $0x2a4] ss:$12 sps:$4 sm:$0xff]  }
 0x314   : > { %v2054_v0 = vmul.f32 %v1872_v25, %v7289_v5  ;;  %v2056_v48 = vmul.f32 %v1985_v30, %v7290_v1  ;;  %v1874_v12 = vpop.f32.mrb[87].mxu0  ;;  %v1987_v13 = vpop.f32.mrb[87].mxu1  ;;  %2894 = vmatprep.subr.bf16.mxu0 %v5243_v42  ;;  %v7299_v42 = vld [vmem:[#allocation13_spill] sm:$0xff]  ;;  %v7301_v29 = vld [vmem:[#allocation18_spill] sm:$0xff]  ;;  %v7302_v30 = vld [vmem:[#allocation19_spill] sm:$0xff] }
 0x315   : > { %v2055_v35 = vmul.f32 %v1874_v12, %v7293_v31  ;;  %v2057_v37 = vmul.f32 %v1987_v13, %v7294_v36  ;;  %v5253_v5 = vld [vmem:[%s7218_s5 + $0x2a0] ss:$12 sps:$4 sm:$0xff]  }
 0x316   : > { %v2094_v60 = vpack.c.bf16 %v2054_v0, %v2050_v8  ;;  %v6563_v61 = vpack.c.bf16 %v2056_v48, %v2052_v27  ;;  %v5259_v0 = vld [vmem:[%s7218_s5 + $0x2bc] ss:$12 sps:$4 sm:$0xff]   ;;  %v7303_v31 = vld [vmem:[#allocation22_spill] sm:$0xff] }
 0x317   : > { %v2095_v39 = vpack.c.bf16 %v2055_v35, %v2051_v51  ;;  %v6565_v40 = vpack.c.bf16 %v2057_v37, %v2053_v33  ;;  %2895 = vmatpush1.bf16.msra.mxu0 %v5241_v58  ;;  %v5257_v51 = vld [vmem:[%s7218_s5 + $0x2b8] ss:$12 sps:$4 sm:$0xff]   ;;  %v7304_v36 = vld [vmem:[#allocation23_spill] sm:$0xff] }
 0x318   : > { %2896 = vmatprep.subr.bf16.mxu0 %v5247_v17 }
 0x319   : > { %v1878_v16 = vpop.f32.mrb[88].mxu0  ;;  %v1991_v54 = vpop.f32.mrb[88].mxu1  ;;  %2845 = vmatprep.mubr.bf16.mxu0 %v2095_v39  ;;  %3061 = vmatprep.mubr.bf16.mxu1 %v2095_v39 }
 0x31a   : > { %v1880_v56 = vpop.f32.mrb[89].mxu0  ;;  %v1993_v15 = vpop.f32.mrb[89].mxu1  ;;  %2846 = vmatmul.mubr.bf16.gmra.mrb[116].mxu0 %v2094_v60  ;;  %3062 = vmatmul.mubr.bf16.gmra.mrb[116].mxu1 %v2094_v60  ;;  %v2058_v55 = vmul.f32 %v1878_v16, %v7295_v57  ;;  %v2060_v19 = vmul.f32 %v1991_v54, %v7296_v59  ;;  %v7306_v54 = vld [vmem:[#allocation21_spill] sm:$0xff] }
 0x31b   : > { %v1882_v9 = vpop.f32.mrb[90].mxu0  ;;  %v1995_v21 = vpop.f32.mrb[90].mxu1  ;;  %2897 = vmatpush1.bf16.msra.mxu0 %v5245_v44  ;;  %v2059_v43 = vmul.f32 %v1880_v56, %v7299_v42  ;;  %v2061_v6 = vmul.f32 %v1993_v15, %v7300_v62  ;;  %v5263_v44 = vld [vmem:[%s7218_s5 + $0x2d4] ss:$12 sps:$4 sm:$0xff]   ;;  %v5261_v59 = vld [vmem:[%s7218_s5 + $0x2d0] ss:$12 sps:$4 sm:$0xff]  }
 0x31c   : > { %v2062_v28 = vmul.f32 %v1882_v9, %v7297_v53  ;;  %v2064_v22 = vmul.f32 %v1995_v21, %v7298_v49  ;;  %v1884_v50 = vpop.f32.mrb[91].mxu0  ;;  %v1997_v4 = vpop.f32.mrb[91].mxu1  ;;  %2898 = vmatprep.subr.bf16.mxu0 %v5251_v45  ;;  %v7305_v45 = vld [vmem:[#allocation20_spill] sm:$0xff]  ;;  %v5281_v49 = vld [vmem:[%s7220_s7 + $0x20] sm:$0xff]   ;;  %v5289_v62 = vld [vmem:[%s7220_s7 + $0x78] sm:$0xff]  }
 0x31d   : > { %v2063_v25 = vmul.f32 %v1884_v50, %v7301_v29  ;;  %v2065_v58 = vmul.f32 %v1997_v4, %v7302_v30  ;;  %v7307_v15 = vld [vmem:[#allocation24_spill] sm:$0xff]  ;;  %v5283_v50 = vld [vmem:[%s7220_s7 + $0x68] sm:$0xff]  }
 0x31e   : > { %v2098_v7 = vpack.c.bf16 %v2062_v28, %v2058_v55  ;;  %v6587_v8 = vpack.c.bf16 %v2064_v22, %v2060_v19  ;;  %v5267_v19 = vld [vmem:[%s7218_s5 + $0x2ec] ss:$12 sps:$4 sm:$0xff]   ;;  %v5265_v53 = vld [vmem:[%s7218_s5 + $0x2e8] ss:$12 sps:$4 sm:$0xff]   ;;  %v5280_v28 = vld [vmem:[%s7220_s7 + $0x60] sm:$0xff]  }
 0x31f   : > { %v2099_v26 = vpack.c.bf16 %v2063_v25, %v2059_v43  ;;  %v6589_v27 = vpack.c.bf16 %v2065_v58, %v2061_v6  ;;  %2899 = vmatpush1.bf16.msra.mxu0 %v5249_v41  ;;  %v5282_v22 = vld [vmem:[%s7220_s7 + $0xa0] sm:$0xff]   ;;  %v5284_v4 = vld [vmem:[%s7220_s7 + $0x28] sm:$0xff]   ;;  %v5286_v42 = vld [vmem:[%s7220_s7 + $0x70] sm:$0xff]  }
 0x320   : > { %2900 = vmatprep.subr.bf16.mxu0 %v5255_v3  ;;  %v5285_v3 = vld [vmem:[%s7220_s7 + $0xa8] sm:$0xff]   ;;  %v5287_v43 = vld [vmem:[%s7220_s7 + $0x30] sm:$0xff]   ;;  %v5290_v6 = vld [vmem:[%s7220_s7 + $0x38] sm:$0xff]  }
 0x321   : > { %v1888_v1 = vpop.f32.mrb[92].mxu0  ;;  %v2001_v48 = vpop.f32.mrb[92].mxu1  ;;  %2855 = vmatprep.mubr.bf16.mxu0 %v2099_v26  ;;  %3069 = vmatprep.mubr.bf16.mxu1 %v2099_v26  ;;  %v5288_v29 = vld [vmem:[%s7220_s7 + $0xb0] sm:$0xff]   ;;  %v5291_v25 = vld [vmem:[%s7220_s7 + $0xb8] sm:$0xff]  }
 0x322   : > { %v1890_v12 = vpop.f32.mrb[93].mxu0  ;;  %v2003_v13 = vpop.f32.mrb[93].mxu1  ;;  %2856 = vmatmul.mubr.bf16.gmra.mrb[120].mxu0 %v2098_v7  ;;  %3070 = vmatmul.mubr.bf16.gmra.mrb[120].mxu1 %v2098_v7  ;;  %v2066_v52 = vmul.f32 %v1888_v1, %v6152_v24  ;;  %v2068_v33 = vmul.f32 %v2001_v48, %v6143_v20  ;;  %v7308_v24 = vld [vmem:[#allocation25_spill] sm:$0xff] }
 0x323   : > { %v1892_v17 = vpop.f32.mrb[94].mxu0  ;;  %v2005_v23 = vpop.f32.mrb[94].mxu1  ;;  %2901 = vmatpush1.bf16.msra.mxu0 %v5253_v5  ;;  %v2067_v16 = vmul.f32 %v1890_v12, %v7305_v45  ;;  %v2069_v56 = vmul.f32 %v2003_v13, %v7306_v54  ;;  %v5294_v5 = vld [vmem:[%s7221_s8 + $0x4] ss:$12 sps:$4 sm:$0xff]  }
 0x324   : > { %v2070_v35 = vmul.f32 %v1892_v17, %v7303_v31  ;;  %v2072_v37 = vmul.f32 %v2005_v23, %v7304_v36  ;;  %v1894_v60 = vpop.f32.mrb[95].mxu0  ;;  %v2007_v39 = vpop.f32.mrb[95].mxu1  ;;  %2902 = vmatprep.subr.bf16.mxu0 %v5259_v0  ;;  %v6732_v0 = vld [vmem:[%s7221_s8 + $0x8] ss:$12 sps:$4 sm:$0xff]  }
 0x325   : > { %v2071_v9 = vmul.f32 %v1894_v60, %v7307_v15  ;;  %v2073_v21 = vmul.f32 %v2007_v39, %v7308_v24 }
 0x326   : > { %v2102_v20 = vpack.c.bf16 %v2070_v35, %v2066_v52  ;;  %v6611_v41 = vpack.c.bf16 %v2072_v37, %v2068_v33 }
 0x327   : > { %v2103_v57 = vpack.c.bf16 %v2071_v9, %v2067_v16  ;;  %v2105_v55 = vpack.c.bf16 %v2073_v21, %v2069_v56  ;;  %2903 = vmatpush1.bf16.msra.mxu0 %v5257_v51 }
 0x328   : > { %2904 = vmatprep.subr.bf16.mxu0 %v5263_v44 }
 0x329   : > { %2865 = vmatprep.mubr.bf16.mxu0 %v2103_v57  ;;  %3077 = vmatprep.mubr.bf16.mxu1 %v2103_v57 }
 0x32a   : > { %2866 = vmatmul.mubr.bf16.gmra.mrb[124].mxu0 %v2102_v20  ;;  %3078 = vmatmul.mubr.bf16.gmra.mrb[124].mxu1 %v2102_v20 }
 0x32b   : > { %2905 = vmatpush1.bf16.msra.mxu0 %v5261_v59  ;;  %2908 = vmatprep.mubr.bf16.mxu0 %v6400_v10 }
 0x32c   : > { %3118 = vmatprep.mubr.bf16.mxu1 %v6400_v10  ;;  %2906 = vmatprep.subr.bf16.mxu0 %v5267_v19  ;;  %v5269_v10 = vld [vmem:[%s7220_s7] sm:$0xff]  }
 0x32f   : > { %2907 = vmatpush1.bf16.msra.mxu0 %v5265_v53 }
 0x332   : > { %2909 = vmatmul.mubr.bf16.vlgmr.msra.gmra.mrb[96].mxu0 %v6398_v47  ;;  %3119 = vmatmul.mubr.bf16.vlgmr.msra.gmra.mrb[128].mxu1 %v6398_v47  ;;  %v5268_v47 = vld [vmem:[%s7220_s7 + $0x40] sm:$0xff]  }
 0x333   : > { %2918 = vmatprep.mubr.bf16.mxu0 %v6436_v14  ;;  %3126 = vmatprep.mubr.bf16.mxu1 %v6436_v14  ;;  %v5271_v14 = vld [vmem:[%s7220_s7 + $0x48] sm:$0xff]  }
 0x334   : > { %4730 = vmatprep.subr.bf16.mxu0 %v5268_v47 }
 0x335   : > { %4731 = vmatpush3.bf16.msra.mxu0 %v5269_v10 }
 0x336   : > { %4732 = vmatprep.subr.bf16.mxu0 %v5271_v14 }
 0x33a   : > { %2919 = vmatmul.mubr.bf16.gmra.mrb[100].mxu0 %v6434_v32  ;;  %3127 = vmatmul.mubr.bf16.gmra.mrb[132].mxu1 %v6434_v32  ;;  %v5270_v32 = vld [vmem:[%s7220_s7 + $0x80] sm:$0xff]  }
 0x33b   : > { %2928 = vmatprep.mubr.bf16.mxu0 %v6472_v18  ;;  %3134 = vmatprep.mubr.bf16.mxu1 %v6472_v18  ;;  %v5273_v18 = vld [vmem:[%s7220_s7 + $0x88] sm:$0xff]  }
 0x33c   : > { %4826 = vmatprep.subr.bf16.mxu1 %v5270_v32 }
 0x33d   : > { %4827 = vmatpush3.bf16.msra.mxu1 %v5270_v32 }
 0x33e   : > { %4828 = vmatprep.subr.bf16.mxu1 %v5273_v18 }
 0x341   : > { %4829 = vmatpush3.bf16.msra.mxu1 %v5273_v18 }
 0x342   : > { %2929 = vmatmul.mubr.bf16.gmra.mrb[104].mxu0 %v6470_v46  ;;  %3135 = vmatmul.mubr.bf16.gmra.mrb[136].mxu1 %v6470_v46  ;;  %v5272_v46 = vld [vmem:[%s7220_s7 + $0x8] sm:$0xff]  }
 0x343   : > { %2938 = vmatprep.mubr.bf16.mxu0 %v6508_v34  ;;  %3142 = vmatprep.mubr.bf16.mxu1 %v6508_v34  ;;  %v5275_v34 = vld [vmem:[%s7220_s7 + $0x10] sm:$0xff]  }
 0x344   : > { %4733 = vmatpush3.bf16.msra.mxu0 %v5272_v46 }
 0x34a   : > { %2939 = vmatmul.mubr.bf16.gmra.mrb[108].mxu0 %v6506_v38  ;;  %3143 = vmatmul.mubr.bf16.gmra.mrb[140].mxu1 %v6506_v38  ;;  %v5274_v38 = vld [vmem:[%s7220_s7 + $0x50] sm:$0xff]  }
 0x34b   : > { %2948 = vmatprep.mubr.bf16.mxu0 %v6541_v2  ;;  %3150 = vmatprep.mubr.bf16.mxu1 %v6541_v2  ;;  %v5277_v2 = vld [vmem:[%s7220_s7 + $0x58] sm:$0xff]  }
 0x34c   : > { %4734 = vmatprep.subr.bf16.mxu0 %v5274_v38 }
 0x34d   : > { %4735 = vmatpush3.bf16.msra.mxu0 %v5275_v34 }
 0x34e   : > { %4736 = vmatprep.subr.bf16.mxu0 %v5277_v2  ;;  %v2234_v2 = vld [vmem:[%s7219_s6] sm:$0x7] }
 0x352   : > { %2949 = vmatmul.mubr.bf16.gmra.mrb[112].mxu0 %v6539_v63  ;;  %3151 = vmatmul.mubr.bf16.gmra.mrb[144].mxu1 %v6539_v63  ;;  %v5276_v63 = vld [vmem:[%s7220_s7 + $0x90] sm:$0xff]  }
 0x353   : > { %2958 = vmatprep.mubr.bf16.mxu0 %v6565_v40  ;;  %3158 = vmatprep.mubr.bf16.mxu1 %v6565_v40  ;;  %v5279_v40 = vld [vmem:[%s7220_s7 + $0x98] sm:$0xff]  }
 0x354   : > { %4830 = vmatprep.subr.bf16.mxu1 %v5276_v63 }
 0x355   : > { %4831 = vmatpush3.bf16.msra.mxu1 %v5276_v63 }
 0x356   : > { %4832 = vmatprep.subr.bf16.mxu1 %v5279_v40 }
 0x359   : > { %4833 = vmatpush3.bf16.msra.mxu1 %v5279_v40 }
 0x35a   : > { %2959 = vmatmul.mubr.bf16.gmra.mrb[116].mxu0 %v6563_v61  ;;  %3159 = vmatmul.mubr.bf16.gmra.mrb[148].mxu1 %v6563_v61  ;;  %v5278_v61 = vld [vmem:[%s7220_s7 + $0x18] sm:$0xff]  }
 0x35b   : > { %2968 = vmatprep.mubr.bf16.mxu0 %v6589_v27  ;;  %3166 = vmatprep.mubr.bf16.mxu1 %v6589_v27 }
 0x35c   : > { %4737 = vmatpush3.bf16.msra.mxu0 %v5278_v61  ;;  %4834 = vmatprep.subr.bf16.mxu1 %v5282_v22 }
 0x35d   : > { %4738 = vmatprep.subr.bf16.mxu0 %v5280_v28  ;;  %4835 = vmatpush3.bf16.msra.mxu1 %v5282_v22  ;;  %v7309_v28 = vld [vmem:[#allocation2_spill] sm:$0xff] }
 0x35e   : > { %4836 = vmatprep.subr.bf16.mxu1 %v5285_v3 }
 0x360   : > { %4739 = vmatpush3.bf16.msra.mxu0 %v5281_v49  ;;  %v7310_v49 = vsub.s32 2, %v7309_v28 }
 0x361   : > { %4740 = vmatprep.subr.bf16.mxu0 %v5283_v50  ;;  %4837 = vmatpush3.bf16.msra.mxu1 %v5285_v3  ;;  %v7311_v50 = vsub.s32 1, %v7309_v28  ;;  %v7312_v3 = vsub.s32 0, %v7309_v28 }
 0x362   : > { %2969 = vmatmul.mubr.bf16.gmra.mrb[120].mxu0 %v6587_v8  ;;  %3167 = vmatmul.mubr.bf16.gmra.mrb[152].mxu1 %v6587_v8  ;;  %v6768_v22 = vrot.slane %v2234_v2, %v7310_v49 }
 0x363   : > { %2978 = vmatprep.mubr.bf16.mxu0 %v2105_v55  ;;  %3174 = vmatprep.mubr.bf16.mxu1 %v2105_v55 }
 0x364   : > { %4741 = vmatpush3.bf16.msra.mxu0 %v5284_v4  ;;  %4838 = vmatprep.subr.bf16.mxu1 %v5288_v29  ;;  %v6772_v4 = vrot.slane %v2234_v2, %v7311_v50 }
 0x365   : > { %4742 = vmatprep.subr.bf16.mxu0 %v5286_v42  ;;  %4839 = vmatpush3.bf16.msra.mxu1 %v5288_v29  ;;  %v6776_v42 = vrot.slane %v2234_v2, %v7312_v3 }
 0x366   : > { %4840 = vmatprep.subr.bf16.mxu1 %v5291_v25 }
 0x368   : > { %4743 = vmatpush3.bf16.msra.mxu0 %v5287_v43 }
 0x369   : > { %4744 = vmatprep.subr.bf16.mxu0 %v5289_v62  ;;  %4841 = vmatpush3.bf16.msra.mxu1 %v5291_v25 }
 0x36a   : > { %2979 = vmatmul.mubr.bf16.gmra.mrb[124].mxu0 %v6611_v41  ;;  %3175 = vmatmul.mubr.bf16.gmra.mrb[156].mxu1 %v6611_v41 }
 0x36b   : > { %3825 = vmatprep.subr.bf16.mxu1 %v5294_v5 }
 0x36c   : > { %4745 = vmatpush3.bf16.msra.mxu0 %v5290_v6 }
 0x36d   : > { %4858 = vmatprep.subr.bf16.mxu0 %v6732_v0 }
 0x3c5   : > { %v4618_v30 = vpop.f32.mrb[96].mxu1 }
 0x3c6   : > { %v4619_v58 = vpop.f32.mrb[97].mxu1 }
 0x3c7   : > { %v4620_v7 = vadd.f32 %v4619_v58, %v4618_v30  ;;  %v4621_v8 = vpop.f32.mrb[98].mxu1 }
 0x3c8   : > { %v4622_v26 = vpop.f32.mrb[99].mxu1 }
 0x3c9   : > { %v6724_v27 = vadd.f32 %v4622_v26, %v4621_v8  ;;  %v3024_v25 = vadd.f32 %v4620_v7, %v6768_v22 }
 0x3cd   : > { %v4624_v1 = vpop.f32.mrb[100].mxu1 }
 0x3ce   : > { %v4625_v48 = vpop.f32.mrb[101].mxu1 }
 0x3cf   : > { %v6735_v12 = vadd.f32 %v4625_v48, %v4624_v1  ;;  %v4627_v13 = vpop.f32.mrb[102].mxu1 }
 0x3d0   : > { %v4628_v17 = vpop.f32.mrb[103].mxu1 }
 0x3d1   : > { %v6737_v23 = vadd.f32 %v4628_v17, %v4627_v13  ;;  %v3027_v17 = vadd.f32 %v6724_v27, %v6768_v22 }
 0x3d5   : > { %v4630_v51 = vpop.f32.mrb[104].mxu1 }
 0x3d6   : > { %v4631_v52 = vpop.f32.mrb[105].mxu1 }
 0x3d7   : > { %v6739_v33 = vadd.f32 %v4631_v52, %v4630_v51  ;;  %v4633_v31 = vpop.f32.mrb[106].mxu1 }
 0x3d8   : > { %v4634_v35 = vpop.f32.mrb[107].mxu1 }
 0x3d9   : > { %v6741_v36 = vadd.f32 %v4634_v35, %v4633_v31 }
 0x3dd   : > { %v4636_v37 = vpop.f32.mrb[108].mxu1 }
 0x3de   : > { %v4637_v60 = vpop.f32.mrb[109].mxu1 }
 0x3df   : > { %v6743_v39 = vadd.f32 %v4637_v60, %v4636_v37  ;;  %v4639_v44 = vpop.f32.mrb[110].mxu1 }
 0x3e0   : > { %v4640_v45 = vpop.f32.mrb[111].mxu1 }
 0x3e1   : > { %v6745_v16 = vadd.f32 %v4640_v45, %v4639_v44 }
 0x3e5   : > { %v4642_v54 = vpop.f32.mrb[112].mxu1 }
 0x3e6   : > { %v4643_v56 = vpop.f32.mrb[113].mxu1 }
 0x3e7   : > { %v6747_v15 = vadd.f32 %v4643_v56, %v4642_v54  ;;  %v4645_v9 = vpop.f32.mrb[114].mxu1 }
 0x3e8   : > { %v4646_v24 = vpop.f32.mrb[115].mxu1 }
 0x3e9   : > { %v6749_v21 = vadd.f32 %v4646_v24, %v4645_v9 }
 0x3ed   : > { %v4648_v20 = vpop.f32.mrb[116].mxu1 }
 0x3ee   : > { %v4649_v41 = vpop.f32.mrb[117].mxu1 }
 0x3ef   : > { %v6751_v57 = vadd.f32 %v4649_v41, %v4648_v20  ;;  %v4651_v55 = vpop.f32.mrb[118].mxu1 }
 0x3f0   : > { %v4652_v59 = vpop.f32.mrb[119].mxu1 }
 0x3f1   : > { %v6753_v19 = vadd.f32 %v4652_v59, %v4651_v55  ;;  %v3032_v55 = vadd.f32 %v6735_v12, %v6768_v22  ;;  %v3035_v12 = vadd.f32 %v6737_v23, %v6768_v22 }
 0x3f5   : > { %v4654_v53 = vpop.f32.mrb[120].mxu1 }
 0x3f6   : > { %v4655_v47 = vpop.f32.mrb[121].mxu1 }
 0x3f7   : > { %v6755_v10 = vadd.f32 %v4655_v47, %v4654_v53  ;;  %v4657_v32 = vpop.f32.mrb[122].mxu1 }
 0x3f8   : > { %v4658_v14 = vpop.f32.mrb[123].mxu1 }
 0x3f9   : > { %v6757_v46 = vadd.f32 %v4658_v14, %v4657_v32 }
 0x3fd   : > { %v4660_v18 = vpop.f32.mrb[124].mxu1 }
 0x3fe   : > { %v4661_v38 = vpop.f32.mrb[125].mxu1 }
 0x3ff   : > { %v6759_v34 = vadd.f32 %v4661_v38, %v4660_v18  ;;  %v4663_v63 = vpop.f32.mrb[126].mxu1 }
 0x400   : > { %v4664_v61 = vpop.f32.mrb[127].mxu1 }
 0x401   : > { %v6764_v40 = vadd.f32 %v4664_v61, %v4663_v63 }
 0x405   : > { %v2910_v43 = vpop.f32.mrb[96].mxu0  ;;  %v4682_v62 = vpop.f32.mrb[128].mxu1 }
 0x406   : > { %v2912_v6 = vpop.f32.mrb[97].mxu0  ;;  %v4683_v29 = vpop.f32.mrb[129].mxu1  ;;  %v6783_v5 = vadd.f32 %v2910_v43, %v6776_v42 }
 0x407   : > { %v6780_v30 = vadd.f32 %v2912_v6, %v6772_v4  ;;  %v4684_v58 = vadd.f32 %v4683_v29, %v4682_v62  ;;  %v2914_v8 = vpop.f32.mrb[98].mxu0  ;;  %v4685_v26 = vpop.f32.mrb[130].mxu1 }
 0x408   : > { %v6786_v1 = vadd.f32 %v2914_v8, %v6776_v42  ;;  %v2916_v48 = vpop.f32.mrb[99].mxu0  ;;  %v4686_v13 = vpop.f32.mrb[131].mxu1  ;;  %v3183_v27 = vmul.f32 %v6783_v5, %v6783_v5 }
 0x409   : > { %v6790_v51 = vadd.f32 %v4684_v58, %v3024_v25  ;;  %v6793_v7 = vadd.f32 %v2916_v48, %v6772_v4  ;;  %v4687_v52 = vadd.f32 %v4686_v13, %v4685_v26  ;;  %v3184_v35 = vmul.f32 %v6780_v30, %v6780_v30  ;;  %v5292_v13 = vld [vmem:[%s7221_s8] ss:$12 sps:$4 sm:$0xff]  }
 0x40a   : > { %v3186_v31 = vmul.f32 %v6786_v1, %v6786_v1 }
 0x40b   : > { %v3187_v37 = vmul.f32 %v6793_v7, %v6793_v7  ;;  %v6801_v60 = vadd.f32 %v4687_v52, %v3027_v17  ;;  %v3185_v44 = vmul.f32 %v6790_v51, %v6790_v51  ;;  %v3040_v17 = vadd.f32 %v6739_v33, %v6768_v22 }
 0x40c   : > { %v3231_v24 = vpack.c.bf16 %v3186_v31, %v3183_v27 }
 0x40d   : > { %v3188_v45 = vmul.f32 %v6801_v60, %v6801_v60  ;;  %v2920_v54 = vpop.f32.mrb[100].mxu0  ;;  %v4688_v56 = vpop.f32.mrb[132].mxu1  ;;  %v3232_v9 = vpack.c.bf16 %v3187_v37, %v3184_v35 }
 0x40e   : > { %v2922_v20 = vpop.f32.mrb[101].mxu0  ;;  %v4689_v41 = vpop.f32.mrb[133].mxu1  ;;  %v6815_v18 = vadd.f32 %v2920_v54, %v6776_v42 }
 0x40f   : > { %v6812_v59 = vadd.f32 %v2922_v20, %v6772_v4  ;;  %v4690_v53 = vadd.f32 %v4689_v41, %v4688_v56  ;;  %v2924_v47 = vpop.f32.mrb[102].mxu0  ;;  %v4691_v32 = vpop.f32.mrb[134].mxu1  ;;  %3479 = vmatprep.mubr.bf16.mxu0 %v3232_v9  ;;  %v3233_v14 = vpack.c.bf16 %v3188_v45, %v3185_v44  ;;  %v5298_v44 = vld [vmem:[%s7221_s8 + $0x1c] ss:$12 sps:$4 sm:$0xff]   ;;  %v3043_v9 = vadd.f32 %v6741_v36, %v6768_v22 }
 0x410   : > { %v6818_v38 = vadd.f32 %v2924_v47, %v6776_v42  ;;  %v2926_v63 = vpop.f32.mrb[103].mxu0  ;;  %v4692_v2 = vpop.f32.mrb[135].mxu1  ;;  %3480 = vmatmul.mubr.bf16.vlgmr.msra.gmra.mrb[128].mxu0 %v3231_v24  ;;  %v3189_v23 = vmul.f32 %v6815_v18, %v6815_v18 }
 0x411   : > { %v6822_v61 = vadd.f32 %v4690_v53, %v3032_v55  ;;  %v6825_v28 = vadd.f32 %v2926_v63, %v6772_v4  ;;  %v4693_v49 = vadd.f32 %v4692_v2, %v4691_v32  ;;  %4842 = vmatprep.mubr.bf16.mxu1 %v3233_v14  ;;  %4859 = vmatpush3.bf16.msra.mxu0 %v6732_v0  ;;  %v5296_v53 = vld [vmem:[%s7221_s8 + $0x18] ss:$12 sps:$4 sm:$0xff]  }
 0x412   : > { %v3192_v50 = vmul.f32 %v6818_v38, %v6818_v38  ;;  %v3190_v3 = vmul.f32 %v6812_v59, %v6812_v59 }
 0x413   : > { %v3193_v43 = vmul.f32 %v6825_v28, %v6825_v28  ;;  %v6834_v62 = vadd.f32 %v4693_v49, %v3035_v12  ;;  %v3191_v6 = vmul.f32 %v6822_v61, %v6822_v61 }
 0x414   : > { %v3234_v48 = vpack.c.bf16 %v3192_v50, %v3189_v23 }
 0x415   : > { %v3194_v29 = vmul.f32 %v6834_v62, %v6834_v62  ;;  %v2930_v25 = vpop.f32.mrb[104].mxu0  ;;  %v4694_v58 = vpop.f32.mrb[136].mxu1  ;;  %v3235_v0 = vpack.c.bf16 %v3193_v43, %v3190_v3 }
 0x416   : > { %v2932_v8 = vpop.f32.mrb[105].mxu0  ;;  %v4695_v26 = vpop.f32.mrb[137].mxu1  ;;  %v6854_v45 = vadd.f32 %v2930_v25, %v6776_v42 }
 0x417   : > { %v3236_v52 = vpack.c.bf16 %v3194_v29, %v3191_v6  ;;  %v6848_v31 = vadd.f32 %v2932_v8, %v6772_v4  ;;  %v4696_v35 = vadd.f32 %v4695_v26, %v4694_v58  ;;  %v2934_v37 = vpop.f32.mrb[106].mxu0  ;;  %v4697_v27 = vpop.f32.mrb[138].mxu1  ;;  %3487 = vmatprep.mubr.bf16.mxu0 %v3235_v0  ;;  %v3048_v6 = vadd.f32 %v6743_v39, %v6768_v22 }
 0x418   : > { %v6857_v54 = vadd.f32 %v2934_v37, %v6776_v42  ;;  %v2936_v56 = vpop.f32.mrb[107].mxu0  ;;  %v4698_v33 = vpop.f32.mrb[139].mxu1  ;;  %3488 = vmatmul.mubr.bf16.gmra.mrb[132].mxu0 %v3234_v48  ;;  %v3195_v14 = vmul.f32 %v6854_v45, %v6854_v45  ;;  %v3051_v39 = vadd.f32 %v6745_v16, %v6768_v22 }
 0x419   : > { %v6861_v24 = vadd.f32 %v4696_v35, %v3040_v17  ;;  %v6864_v20 = vadd.f32 %v2936_v56, %v6772_v4  ;;  %v4699_v41 = vadd.f32 %v4698_v33, %v4697_v27  ;;  %4843 = vmatmul.mubr.bf16.vlgmr.msra.gmra.mrb[160].mxu1 %v3236_v52  ;;  %v3196_v47 = vmul.f32 %v6848_v31, %v6848_v31 }
 0x41a   : > { %v3198_v55 = vmul.f32 %v6857_v54, %v6857_v54  ;;  %3826 = vmatpush1.bf16.msra.mxu1 %v5292_v13 }
 0x41b   : > { %v3199_v36 = vmul.f32 %v6864_v20, %v6864_v20  ;;  %v6875_v32 = vadd.f32 %v4699_v41, %v3043_v9  ;;  %3827 = vmatprep.subr.bf16.mxu1 %v5298_v44  ;;  %v3197_v63 = vmul.f32 %v6861_v24, %v6861_v24 }
 0x41c   : > { %v3237_v23 = vpack.c.bf16 %v3198_v55, %v3195_v14 }
 0x41d   : > { %v3200_v2 = vmul.f32 %v6875_v32, %v6875_v32  ;;  %v2940_v12 = vpop.f32.mrb[108].mxu0  ;;  %v4700_v49 = vpop.f32.mrb[140].mxu1  ;;  %v3238_v50 = vpack.c.bf16 %v3199_v36, %v3196_v47 }
 0x41e   : > { %v2942_v3 = vpop.f32.mrb[109].mxu0  ;;  %v4701_v43 = vpop.f32.mrb[141].mxu1  ;;  %3828 = vmatpush1.bf16.msra.mxu1 %v5296_v53  ;;  %v6889_v26 = vadd.f32 %v2940_v12, %v6776_v42 }
 0x41f   : > { %v6886_v29 = vadd.f32 %v2942_v3, %v6772_v4  ;;  %v4702_v25 = vadd.f32 %v4701_v43, %v4700_v49  ;;  %v2944_v58 = vpop.f32.mrb[110].mxu0  ;;  %v4703_v0 = vpop.f32.mrb[142].mxu1  ;;  %3495 = vmatprep.mubr.bf16.mxu0 %v3238_v50  ;;  %v3239_v8 = vpack.c.bf16 %v3200_v2, %v3197_v63  ;;  %v3056_v2 = vadd.f32 %v6747_v15, %v6768_v22 }
 0x420   : > { %v6892_v48 = vadd.f32 %v2944_v58, %v6776_v42  ;;  %v2946_v13 = vpop.f32.mrb[111].mxu0  ;;  %v4704_v17 = vpop.f32.mrb[143].mxu1  ;;  %3496 = vmatmul.mubr.bf16.gmra.mrb[136].mxu0 %v3237_v23  ;;  %v3201_v16 = vmul.f32 %v6889_v26, %v6889_v26  ;;  %v3059_v15 = vadd.f32 %v6749_v21, %v6768_v22 }
 0x421   : > { %v6896_v52 = vadd.f32 %v4702_v25, %v3048_v6  ;;  %v6899_v35 = vadd.f32 %v2946_v13, %v6772_v4  ;;  %v4705_v37 = vadd.f32 %v4704_v17, %v4703_v0  ;;  %4846 = vmatprep.mubr.bf16.mxu1 %v3239_v8  ;;  %v3202_v44 = vmul.f32 %v6886_v29, %v6886_v29 }
 0x422   : > { %v3204_v27 = vmul.f32 %v6892_v48, %v6892_v48 }
 0x423   : > { %v3205_v56 = vmul.f32 %v6899_v35, %v6899_v35  ;;  %v6907_v33 = vadd.f32 %v4705_v37, %v3051_v39  ;;  %v3203_v9 = vmul.f32 %v6896_v52, %v6896_v52 }
 0x424   : > { %v3240_v63 = vpack.c.bf16 %v3204_v27, %v3201_v16 }
 0x425   : > { %v3206_v41 = vmul.f32 %v6907_v33, %v6907_v33  ;;  %v2950_v55 = vpop.f32.mrb[112].mxu0  ;;  %v4706_v53 = vpop.f32.mrb[144].mxu1  ;;  %v3241_v47 = vpack.c.bf16 %v3205_v56, %v3202_v44 }
 0x426   : > { %v2952_v36 = vpop.f32.mrb[113].mxu0  ;;  %v4707_v14 = vpop.f32.mrb[145].mxu1  ;;  %v6921_v23 = vadd.f32 %v2950_v55, %v6776_v42 }
 0x427   : > { %v6918_v12 = vadd.f32 %v2952_v36, %v6772_v4  ;;  %v4708_v49 = vadd.f32 %v4707_v14, %v4706_v53  ;;  %v2954_v50 = vpop.f32.mrb[114].mxu0  ;;  %v4709_v3 = vpop.f32.mrb[146].mxu1  ;;  %3503 = vmatprep.mubr.bf16.mxu0 %v3241_v47  ;;  %v3242_v43 = vpack.c.bf16 %v3206_v41, %v3203_v9  ;;  %v3064_v36 = vadd.f32 %v6751_v57, %v6768_v22 }
 0x428   : > { %v6924_v6 = vadd.f32 %v2954_v50, %v6776_v42  ;;  %v2956_v25 = vpop.f32.mrb[115].mxu0  ;;  %v4710_v58 = vpop.f32.mrb[147].mxu1  ;;  %3504 = vmatmul.mubr.bf16.gmra.mrb[140].mxu0 %v3240_v63  ;;  %v3207_v21 = vmul.f32 %v6921_v23, %v6921_v23  ;;  %v3067_v57 = vadd.f32 %v6753_v19, %v6768_v22 }
 0x429   : > { %v6928_v0 = vadd.f32 %v4708_v49, %v3056_v2  ;;  %v6931_v8 = vadd.f32 %v2956_v25, %v6772_v4  ;;  %v4711_v13 = vadd.f32 %v4710_v58, %v4709_v3  ;;  %4847 = vmatmul.mubr.bf16.gmra.mrb[164].mxu1 %v3242_v43  ;;  %v3208_v39 = vmul.f32 %v6918_v12, %v6918_v12 }
 0x42a   : > { %v3210_v17 = vmul.f32 %v6924_v6, %v6924_v6 }
 0x42b   : > { %v3211_v37 = vmul.f32 %v6931_v8, %v6931_v8  ;;  %v6939_v27 = vadd.f32 %v4711_v13, %v3059_v15  ;;  %v3209_v44 = vmul.f32 %v6928_v0, %v6928_v0 }
 0x42c   : > { %v3243_v47 = vpack.c.bf16 %v3210_v17, %v3207_v21 }
 0x42d   : > { %v3212_v56 = vmul.f32 %v6939_v27, %v6939_v27  ;;  %v2960_v16 = vpop.f32.mrb[116].mxu0  ;;  %v4712_v9 = vpop.f32.mrb[148].mxu1  ;;  %v3244_v41 = vpack.c.bf16 %v3211_v37, %v3208_v39 }
 0x42e   : > { %v2962_v55 = vpop.f32.mrb[117].mxu0  ;;  %v4713_v53 = vpop.f32.mrb[149].mxu1  ;;  %v6953_v3 = vadd.f32 %v2960_v16, %v6776_v42 }
 0x42f   : > { %v6950_v14 = vadd.f32 %v2962_v55, %v6772_v4  ;;  %v4714_v63 = vadd.f32 %v4713_v53, %v4712_v9  ;;  %v2964_v2 = vpop.f32.mrb[118].mxu0  ;;  %v4715_v49 = vpop.f32.mrb[150].mxu1  ;;  %3511 = vmatprep.mubr.bf16.mxu0 %v3244_v41  ;;  %v3245_v50 = vpack.c.bf16 %v3212_v56, %v3209_v44 }
 0x430   : > { %v6956_v43 = vadd.f32 %v2964_v2, %v6776_v42  ;;  %v2966_v25 = vpop.f32.mrb[119].mxu0  ;;  %v4716_v58 = vpop.f32.mrb[151].mxu1  ;;  %3512 = vmatmul.mubr.bf16.gmra.mrb[144].mxu0 %v3243_v47  ;;  %v3213_v19 = vmul.f32 %v6953_v3, %v6953_v3 }
 0x431   : > { %v6960_v15 = vadd.f32 %v4714_v63, %v3064_v36  ;;  %v6963_v13 = vadd.f32 %v2966_v25, %v6772_v4  ;;  %v4717_v17 = vadd.f32 %v4716_v58, %v4715_v49  ;;  %4850 = vmatprep.mubr.bf16.mxu1 %v3245_v50  ;;  %v3214_v37 = vmul.f32 %v6950_v14, %v6950_v14 }
 0x432   : > { %v3216_v39 = vmul.f32 %v6956_v43, %v6956_v43  ;;  %v3072_v63 = vadd.f32 %v6755_v10, %v6768_v22  ;;  %v3075_v10 = vadd.f32 %v6757_v46, %v6768_v22 }
 0x433   : > { %v3217_v21 = vmul.f32 %v6963_v13, %v6963_v13  ;;  %v6971_v44 = vadd.f32 %v4717_v17, %v3067_v57  ;;  %v3215_v56 = vmul.f32 %v6960_v15, %v6960_v15 }
 0x434   : > { %v3246_v36 = vpack.c.bf16 %v3216_v39, %v3213_v19 }
 0x435   : > { %v3218_v16 = vmul.f32 %v6971_v44, %v6971_v44  ;;  %v2970_v9 = vpop.f32.mrb[120].mxu0  ;;  %v4718_v41 = vpop.f32.mrb[152].mxu1  ;;  %v3247_v55 = vpack.c.bf16 %v3217_v21, %v3214_v37 }
 0x436   : > { %v2972_v53 = vpop.f32.mrb[121].mxu0  ;;  %v4719_v47 = vpop.f32.mrb[153].mxu1  ;;  %v6985_v57 = vadd.f32 %v2970_v9, %v6776_v42 }
 0x437   : > { %v6982_v2 = vadd.f32 %v2972_v53, %v6772_v4  ;;  %v4720_v49 = vadd.f32 %v4719_v47, %v4718_v41  ;;  %v2974_v50 = vpop.f32.mrb[122].mxu0  ;;  %v4721_v25 = vpop.f32.mrb[154].mxu1  ;;  %3519 = vmatprep.mubr.bf16.mxu0 %v3247_v55  ;;  %v3248_v58 = vpack.c.bf16 %v3218_v16, %v3215_v56 }
 0x438   : > { %v6988_v17 = vadd.f32 %v2974_v50, %v6776_v42  ;;  %v2976_v37 = vpop.f32.mrb[123].mxu0  ;;  %v4722_v21 = vpop.f32.mrb[155].mxu1  ;;  %3520 = vmatmul.mubr.bf16.gmra.mrb[148].mxu0 %v3246_v36  ;;  %v3219_v46 = vmul.f32 %v6985_v57, %v6985_v57 }
 0x439   : > { %v6992_v39 = vadd.f32 %v4720_v49, %v3072_v63  ;;  %v6995_v19 = vadd.f32 %v2976_v37, %v6772_v4  ;;  %v4723_v41 = vadd.f32 %v4722_v21, %v4721_v25  ;;  %4851 = vmatmul.mubr.bf16.gmra.mrb[168].mxu1 %v3248_v58  ;;  %v3220_v16 = vmul.f32 %v6982_v2, %v6982_v2 }
 0x43a   : > { %7313 = vst [vmem:[#allocation3_spill] sm:$0xff] %v6988_v17  ;;  %v3222_v56 = vmul.f32 %v6988_v17, %v6988_v17  ;;  %v3080_v37 = vadd.f32 %v6759_v34, %v6768_v22  ;;  %v3083_v34 = vadd.f32 %v6764_v40, %v6768_v22 }
 0x43b   : > { %7314 = vst [vmem:[#allocation7_spill] sm:$0xff] %v6992_v39  ;;  %7315 = vst [vmem:[#allocation4_spill] sm:$0xff] %v6995_v19  ;;  %v3223_v9 = vmul.f32 %v6995_v19, %v6995_v19  ;;  %v7003_v55 = vadd.f32 %v4723_v41, %v3075_v10  ;;  %v3221_v53 = vmul.f32 %v6992_v39, %v6992_v39 }
 0x43c   : > { %v3249_v58 = vpack.c.bf16 %v3222_v56, %v3219_v46 }
 0x43d   : > { %7316 = vst [vmem:[#allocation8_spill] sm:$0xff] %v7003_v55  ;;  %v3224_v47 = vmul.f32 %v7003_v55, %v7003_v55  ;;  %v2980_v36 = vpop.f32.mrb[124].mxu0  ;;  %v4724_v63 = vpop.f32.mrb[156].mxu1  ;;  %v3250_v49 = vpack.c.bf16 %v3223_v9, %v3220_v16 }
 0x43e   : > { %v2982_v50 = vpop.f32.mrb[125].mxu0  ;;  %v4725_v25 = vpop.f32.mrb[157].mxu1  ;;  %v7017_v17 = vadd.f32 %v2980_v36, %v6776_v42 }
 0x43f   : > { %v7014_v21 = vadd.f32 %v2982_v50, %v6772_v4  ;;  %v4726_v10 = vadd.f32 %v4725_v25, %v4724_v63  ;;  %v2984_v41 = vpop.f32.mrb[126].mxu0  ;;  %v4727_v19 = vpop.f32.mrb[158].mxu1  ;;  %3527 = vmatprep.mubr.bf16.mxu0 %v3250_v49  ;;  %v3251_v39 = vpack.c.bf16 %v3224_v47, %v3221_v53  ;;  %v5302_v50 = vld [vmem:[%s7221_s8 + $0x20] ss:$12 sps:$4 sm:$0xff]  }
 0x440   : > { %7318 = vst [vmem:[#allocation5_spill] sm:$0xff] %v7017_v17  ;;  %v7020_v55 = vadd.f32 %v2984_v41, %v6776_v42  ;;  %v2986_v16 = vpop.f32.mrb[127].mxu0  ;;  %v4728_v9 = vpop.f32.mrb[159].mxu1  ;;  %3528 = vmatmul.mubr.bf16.gmra.mrb[152].mxu0 %v3249_v58  ;;  %v3225_v40 = vmul.f32 %v7017_v17, %v7017_v17  ;;  %v5301_v25 = vld [vmem:[%s7221_s8 + $0x34] ss:$12 sps:$4 sm:$0xff]   ;;  %4860 = vmatprep.subr.bf16.mxu0 %v5302_v50 }
 0x441   : > { %7317 = vst [vmem:[#allocation9_spill] sm:$0xff] %v7014_v21  ;;  %v7024_v56 = vadd.f32 %v4726_v10, %v3080_v37  ;;  %v7027_v46 = vadd.f32 %v2986_v16, %v6772_v4  ;;  %v4729_v63 = vadd.f32 %v4728_v9, %v4727_v19  ;;  %4854 = vmatprep.mubr.bf16.mxu1 %v3251_v39  ;;  %v5299_v58 = vld [vmem:[%s7221_s8 + $0x30] ss:$12 sps:$4 sm:$0xff]   ;;  %v5303_v37 = vld [vmem:[%s7221_s8 + $0x48] ss:$12 sps:$4 sm:$0xff]  }
 0x442   : > { %7319 = vst [vmem:[#allocation6_spill] sm:$0xff] %v7020_v55  ;;  %v3228_v53 = vmul.f32 %v7020_v55, %v7020_v55  ;;  %v3226_v42 = vmul.f32 %v7014_v21, %v7014_v21  ;;  %3829 = vmatprep.subr.bf16.mxu1 %v5301_v25  ;;  %4861 = vmatpush3.bf16.msra.mxu0 %v5302_v50  ;;  %v5305_v10 = vld [vmem:[%s7221_s8 + $0x4c] ss:$12 sps:$4 sm:$0xff]   ;;  %v5310_v16 = vld [vmem:[%s7221_s8 + $0x50] ss:$12 sps:$4 sm:$0xff]  }
 0x443   : > { %7320 = vst [vmem:[#allocation10_spill] sm:$0xff] %v7027_v46  ;;  %v3229_v47 = vmul.f32 %v7027_v46, %v7027_v46  ;;  %v7035_v36 = vadd.f32 %v4729_v63, %v3083_v34  ;;  %v3227_v22 = vmul.f32 %v7024_v56, %v7024_v56  ;;  %3830 = vmatpush1.bf16.msra.mxu1 %v5299_v58  ;;  %v5306_v41 = vld [vmem:[%s7221_s8 + $0x38] ss:$12 sps:$4 sm:$0xff]   ;;  %v5307_v34 = vld [vmem:[%s7221_s8 + $0x60] ss:$12 sps:$4 sm:$0xff]  }
 0x444   : > { %v3252_v19 = vpack.c.bf16 %v3228_v53, %v3225_v40  ;;  %3831 = vmatprep.subr.bf16.mxu1 %v5305_v10  ;;  %4862 = vmatprep.subr.bf16.mxu0 %v5306_v41  ;;  %v5309_v9 = vld [vmem:[%s7221_s8 + $0x64] ss:$12 sps:$4 sm:$0xff]   ;;  %v5314_v63 = vld [vmem:[%s7221_s8 + $0x68] ss:$12 sps:$4 sm:$0xff]  }
 0x445   : > { %v3230_v4 = vmul.f32 %v7035_v36, %v7035_v36  ;;  %v3253_v39 = vpack.c.bf16 %v3229_v47, %v3226_v42  ;;  %v5313_v53 = vld [vmem:[%s7221_s8 + $0x7c] ss:$12 sps:$4 sm:$0xff]   ;;  %v5311_v42 = vld [vmem:[%s7221_s8 + $0x78] ss:$12 sps:$4 sm:$0xff]   ;;  %v5318_v47 = vld [vmem:[%s7221_s8 + $0x80] ss:$12 sps:$4 sm:$0xff]  }
 0x446   : > { %4863 = vmatpush3.bf16.msra.mxu0 %v5306_v41  ;;  %v5317_v40 = vld [vmem:[%s7221_s8 + $0x94] ss:$12 sps:$4 sm:$0xff]  }
 0x447   : > { %3535 = vmatprep.mubr.bf16.mxu0 %v3253_v39  ;;  %v3254_v49 = vpack.c.bf16 %v3230_v4, %v3227_v22  ;;  %3832 = vmatpush1.bf16.msra.mxu1 %v5303_v37  ;;  %v5315_v22 = vld [vmem:[%s7221_s8 + $0x90] ss:$12 sps:$4 sm:$0xff]   ;;  %v5319_v4 = vld [vmem:[%s7221_s8 + $0xa8] ss:$12 sps:$4 sm:$0xff]   ;;  %v5321_v39 = vld [vmem:[%s7221_s8 + $0xac] ss:$12 sps:$4 sm:$0xff]  }
 0x448   : > { %3536 = vmatmul.mubr.bf16.gmra.mrb[156].mxu0 %v3252_v19  ;;  %4864 = vmatprep.subr.bf16.mxu0 %v5310_v16  ;;  %v5322_v19 = vld [vmem:[%s7221_s8 + $0x98] ss:$12 sps:$4 sm:$0xff]  }
 0x449   : > { %4855 = vmatmul.mubr.bf16.gmra.mrb[172].mxu1 %v3254_v49  ;;  %3833 = vmatprep.subr.bf16.mxu1 %v5309_v9  ;;  %v5323_v49 = vld [vmem:[%s7221_s8 + $0xb0] ss:$12 sps:$4 sm:$0xff]  }
 0x44a   : > { %3857 = vmatprep.mubr.bf16.mxu1 %v7285_v11  ;;  %4865 = vmatpush3.bf16.msra.mxu0 %v5310_v16 }
 0x44b   : > { %3834 = vmatpush1.bf16.msra.mxu1 %v5307_v34  ;;  %4866 = vmatprep.subr.bf16.mxu0 %v5314_v63 }
 0x44c   : > { %3835 = vmatprep.subr.bf16.mxu1 %v5313_v53 }
 0x44e   : > { %4867 = vmatpush3.bf16.msra.mxu0 %v5314_v63 }
 0x44f   : > { %3836 = vmatpush1.bf16.msra.mxu1 %v5311_v42  ;;  %4868 = vmatprep.subr.bf16.mxu0 %v5318_v47 }
 0x450   : > { %3837 = vmatprep.subr.bf16.mxu1 %v5317_v40 }
 0x452   : > { %4869 = vmatpush3.bf16.msra.mxu0 %v5318_v47 }
 0x453   : > { %3838 = vmatpush1.bf16.msra.mxu1 %v5315_v22  ;;  %4870 = vmatprep.subr.bf16.mxu0 %v5322_v19 }
 0x454   : > { %3839 = vmatprep.subr.bf16.mxu1 %v5321_v39 }
 0x456   : > { %4871 = vmatpush3.bf16.msra.mxu0 %v5322_v19 }
 0x457   : > { %3840 = vmatpush1.bf16.msra.mxu1 %v5319_v4  ;;  %4872 = vmatprep.subr.bf16.mxu0 %v5323_v49 }
 0x45a   : > { %4873 = vmatpush3.bf16.msra.mxu0 %v5323_v49 }
 0x4e3   : > { %v4746_v50 = vpop.f32.mrb[128].mxu0 }
 0x4e4   : > { %v4747_v25 = vpop.f32.mrb[129].mxu0 }
 0x4e5   : > { %v4748_v58 = vadd.f32 %v4747_v25, %v4746_v50  ;;  %v4749_v37 = vpop.f32.mrb[130].mxu0 }
 0x4e6   : > { %v4750_v10 = vpop.f32.mrb[131].mxu0 }
 0x4e7   : > { %v4751_v41 = vadd.f32 %v4750_v10, %v4749_v37  ;;  %v3482_v9 = vadd.f32 1e-08, %v4748_v58 }
 0x4e9   : > { %v3485_v40 = vadd.f32 1e-08, %v4751_v41 }
 0x4eb   : > { %v4752_v16 = vpop.f32.mrb[132].mxu0 }
 0x4ec   : > { %v4753_v34 = vpop.f32.mrb[133].mxu0  ;;  %v4844_v63 = vpop.f32.mrb[160].mxu1 }
 0x4ed   : > { %v4754_v53 = vadd.f32 %v4753_v34, %v4752_v16  ;;  %v4755_v42 = vpop.f32.mrb[134].mxu0  ;;  %v3578_v47 = vpop.f32.mrb[161].mxu1 }
 0x4ee   : > { %v3579_v22 = vadd.f32 %v3578_v47, %v3482_v9  ;;  %v4756_v4 = vpop.f32.mrb[135].mxu0  ;;  %v4845_v39 = vpop.f32.mrb[162].mxu1 }
 0x4ef   : > { %v3490_v19 = vadd.f32 1e-08, %v4754_v53  ;;  %v4757_v46 = vadd.f32 %v4756_v4, %v4755_v42  ;;  %v3581_v49 = vpop.f32.mrb[163].mxu1 }
 0x4f0   : > { %v3582_v55 = vadd.f32 %v3581_v49, %v3485_v40  ;;  %5356 = vrsqrt.f32 %v3579_v22 }
 0x4f1   : > { %v3587_v21 = vadd.f32 %v4844_v63, %v3490_v19  ;;  %v3493_v50 = vadd.f32 1e-08, %v4757_v46 }
 0x4f2   : > { %5358 = vrsqrt.f32 %v3582_v55 }
 0x4f3   : > { %v3590_v25 = vadd.f32 %v4845_v39, %v3493_v50  ;;  %v4758_v37 = vpop.f32.mrb[136].mxu0  ;;  %5360 = vrsqrt.f32 %v3587_v21 }
 0x4f4   : > { %v4759_v58 = vpop.f32.mrb[137].mxu0 }
 0x4f5   : > { %5362 = vrsqrt.f32 %v3590_v25  ;;  %v4760_v10 = vadd.f32 %v4759_v58, %v4758_v37  ;;  %v4761_v16 = vpop.f32.mrb[138].mxu0 }
 0x4f6   : > { %v4762_v34 = vpop.f32.mrb[139].mxu0 }
 0x4f7   : > { %v4763_v41 = vadd.f32 %v4762_v34, %v4761_v16  ;;  %v3498_v53 = vadd.f32 1e-08, %v4760_v10 }
 0x4f9   : > { %v3501_v39 = vadd.f32 1e-08, %v4763_v41 }
 0x4fa   : > { %v5357_v9 = vpop.eup %5356 }
 0x4fb   : > { %v4764_v47 = vpop.f32.mrb[140].mxu0 }
 0x4fc   : > { %v5359_v17 = vpop.eup %5358  ;;  %v4765_v42 = vpop.f32.mrb[141].mxu0 }
 0x4fd   : > { %v4848_v4 = vpop.f32.mrb[164].mxu1  ;;  %v4766_v40 = vadd.f32 %v4765_v42, %v4764_v47  ;;  %v4767_v63 = vpop.f32.mrb[142].mxu0  ;;  %v3657_v46 = vpack.c.bf16 %v5359_v17, %v5357_v9 }
 0x4fe   : > { %v3594_v22 = vpop.f32.mrb[165].mxu1  ;;  %v5361_v55 = vpop.eup %5360 }
 0x4ff   : > { %v3595_v19 = vadd.f32 %v3594_v22, %v3498_v53  ;;  %v4768_v21 = vpop.f32.mrb[143].mxu0  ;;  %v4849_v49 = vpop.f32.mrb[166].mxu1  ;;  %v3506_v25 = vadd.f32 1e-08, %v4766_v40  ;;  %3858 = vmatmul.mubr.bf16.vlgmr.msra.gmra.mrb[176].mxu1 %v3657_v46  ;;  %4874 = vmatprep.mubr.bf16.mxu0 %v3657_v46 }
 0x500   : > { %v5363_v50 = vpop.eup %5362  ;;  %v4769_v37 = vadd.f32 %v4768_v21, %v4767_v63  ;;  %v3597_v58 = vpop.f32.mrb[167].mxu1  ;;  %3867 = vmatprep.mubr.bf16.mxu1 %v7285_v11 }
 0x501   : > { %v3598_v16 = vadd.f32 %v3597_v58, %v3501_v39  ;;  %v3658_v34 = vpack.c.bf16 %v5363_v50, %v5361_v55  ;;  %v3603_v10 = vadd.f32 %v4848_v4, %v3506_v25  ;;  %5364 = vrsqrt.f32 %v3595_v19 }
 0x502   : > { %v3509_v47 = vadd.f32 1e-08, %v4769_v37 }
 0x503   : > { %5366 = vrsqrt.f32 %v3598_v16  ;;  %4875 = vmatmul.mubr.bf16.vlgmr.msra.gmra.mrb[160].mxu0 %v3658_v34  ;;  %v4770_v41 = vpop.f32.mrb[144].mxu0 }
 0x504   : > { %v3606_v17 = vadd.f32 %v4849_v49, %v3509_v47  ;;  %5368 = vrsqrt.f32 %v3603_v10  ;;  %v4771_v9 = vpop.f32.mrb[145].mxu0 }
 0x505   : > { %v4772_v53 = vadd.f32 %v4771_v9, %v4770_v41  ;;  %v4773_v42 = vpop.f32.mrb[146].mxu0 }
 0x506   : > { %5370 = vrsqrt.f32 %v3606_v17  ;;  %v4774_v40 = vpop.f32.mrb[147].mxu0 }
 0x507   : > { %v4775_v63 = vadd.f32 %v4774_v40, %v4773_v42  ;;  %3868 = vmatmul.mubr.bf16.gmra.mrb[180].mxu1 %v3658_v34  ;;  %v3514_v4 = vadd.f32 1e-08, %v4772_v53 }
 0x508   : > { %3877 = vmatprep.mubr.bf16.mxu1 %v7285_v11 }
 0x509   : > { %v3517_v58 = vadd.f32 1e-08, %v4775_v63 }
 0x50b   : > { %v5365_v22 = vpop.eup %5364  ;;  %v4776_v46 = vpop.f32.mrb[148].mxu0 }
 0x50c   : > { %v4777_v39 = vpop.f32.mrb[149].mxu0  ;;  %v4852_v19 = vpop.f32.mrb[168].mxu1 }
 0x50d   : > { %v5367_v55 = vpop.eup %5366  ;;  %v4778_v21 = vadd.f32 %v4777_v39, %v4776_v46  ;;  %v4779_v50 = vpop.f32.mrb[150].mxu0 }
 0x50e   : > { %v3610_v49 = vpop.f32.mrb[169].mxu1  ;;  %v3659_v25 = vpack.c.bf16 %v5367_v55, %v5365_v22  ;;  %v5369_v37 = vpop.eup %5368 }
 0x50f   : > { %v3611_v16 = vadd.f32 %v3610_v49, %v3514_v4  ;;  %v4780_v10 = vpop.f32.mrb[151].mxu0  ;;  %v4853_v47 = vpop.f32.mrb[170].mxu1  ;;  %v3522_v41 = vadd.f32 1e-08, %v4778_v21 }
 0x510   : > { %v5371_v17 = vpop.eup %5370  ;;  %v4781_v34 = vadd.f32 %v4780_v10, %v4779_v50  ;;  %v3613_v9 = vpop.f32.mrb[171].mxu1  ;;  %3878 = vmatmul.mubr.bf16.gmra.mrb[184].mxu1 %v3659_v25  ;;  %4878 = vmatprep.mubr.bf16.mxu0 %v3659_v25 }
 0x511   : > { %v3614_v42 = vadd.f32 %v3613_v9, %v3517_v58  ;;  %v3660_v40 = vpack.c.bf16 %v5371_v17, %v5369_v37  ;;  %3887 = vmatprep.mubr.bf16.mxu1 %v7285_v11  ;;  %v3619_v53 = vadd.f32 %v4852_v19, %v3522_v41  ;;  %5372 = vrsqrt.f32 %v3611_v16 }
 0x512   : > { %v3525_v46 = vadd.f32 1e-08, %v4781_v34 }
 0x513   : > { %5374 = vrsqrt.f32 %v3614_v42  ;;  %4879 = vmatmul.mubr.bf16.gmra.mrb[164].mxu0 %v3660_v40  ;;  %v4782_v63 = vpop.f32.mrb[152].mxu0 }
 0x514   : > { %v3622_v22 = vadd.f32 %v4853_v47, %v3525_v46  ;;  %5376 = vrsqrt.f32 %v3619_v53  ;;  %v4783_v55 = vpop.f32.mrb[153].mxu0 }
 0x515   : > { %v4784_v4 = vadd.f32 %v4783_v55, %v4782_v63  ;;  %v4785_v39 = vpop.f32.mrb[154].mxu0 }
 0x516   : > { %5378 = vrsqrt.f32 %v3622_v22  ;;  %v4786_v21 = vpop.f32.mrb[155].mxu0 }
 0x517   : > { %v4787_v50 = vadd.f32 %v4786_v21, %v4785_v39  ;;  %v3530_v19 = vadd.f32 1e-08, %v4784_v4 }
 0x518   : > { %3888 = vmatmul.mubr.bf16.gmra.mrb[188].mxu1 %v3660_v40 }
 0x519   : > { %3897 = vmatprep.mubr.bf16.mxu1 %v7285_v11  ;;  %v3533_v9 = vadd.f32 1e-08, %v4787_v50 }
 0x51b   : > { %v5373_v49 = vpop.eup %5372  ;;  %v4788_v25 = vpop.f32.mrb[156].mxu0 }
 0x51c   : > { %v4789_v58 = vpop.f32.mrb[157].mxu0  ;;  %v4856_v16 = vpop.f32.mrb[172].mxu1 }
 0x51d   : > { %v5375_v37 = vpop.eup %5374  ;;  %v4790_v10 = vadd.f32 %v4789_v58, %v4788_v25  ;;  %v4791_v17 = vpop.f32.mrb[158].mxu0 }
 0x51e   : > { %v3626_v47 = vpop.f32.mrb[173].mxu1  ;;  %v3661_v41 = vpack.c.bf16 %v5375_v37, %v5373_v49  ;;  %v5377_v34 = vpop.eup %5376 }
 0x51f   : > { %v3627_v42 = vadd.f32 %v3626_v47, %v3530_v19  ;;  %v4792_v53 = vpop.f32.mrb[159].mxu0  ;;  %v4857_v46 = vpop.f32.mrb[174].mxu1  ;;  %v3538_v63 = vadd.f32 1e-08, %v4790_v10 }
 0x520   : > { %v5379_v22 = vpop.eup %5378  ;;  %v4793_v40 = vadd.f32 %v4792_v53, %v4791_v17  ;;  %v3629_v55 = vpop.f32.mrb[175].mxu1  ;;  %3898 = vmatmul.mubr.bf16.gmra.mrb[192].mxu1 %v3661_v41  ;;  %4882 = vmatprep.mubr.bf16.mxu0 %v3661_v41 }
 0x521   : > { %v3630_v39 = vadd.f32 %v3629_v55, %v3533_v9  ;;  %v3662_v21 = vpack.c.bf16 %v5379_v22, %v5377_v34  ;;  %3907 = vmatprep.mubr.bf16.mxu1 %v7285_v11  ;;  %v3635_v4 = vadd.f32 %v4856_v16, %v3538_v63  ;;  %5380 = vrsqrt.f32 %v3627_v42 }
 0x522   : > { %v3541_v25 = vadd.f32 1e-08, %v4793_v40 }
 0x523   : > { %5382 = vrsqrt.f32 %v3630_v39  ;;  %4883 = vmatmul.mubr.bf16.gmra.mrb[168].mxu0 %v3662_v21 }
 0x524   : > { %v3638_v49 = vadd.f32 %v4857_v46, %v3541_v25  ;;  %5384 = vrsqrt.f32 %v3635_v4 }
 0x526   : > { %5386 = vrsqrt.f32 %v3638_v49 }
 0x528   : > { %3908 = vmatmul.mubr.bf16.gmra.mrb[196].mxu1 %v3662_v21 }
 0x529   : > { %3917 = vmatprep.mubr.bf16.mxu1 %v7285_v11 }
 0x52b   : > { %v5381_v50 = vpop.eup %5380 }
 0x52d   : > { %v5383_v37 = vpop.eup %5382 }
 0x52e   : > { %v3663_v19 = vpack.c.bf16 %v5383_v37, %v5381_v50  ;;  %v5385_v58 = vpop.eup %5384 }
 0x530   : > { %v5387_v10 = vpop.eup %5386  ;;  %3918 = vmatmul.mubr.bf16.gmra.mrb[200].mxu1 %v3663_v19  ;;  %4886 = vmatprep.mubr.bf16.mxu0 %v3663_v19 }
 0x531   : > { %v3664_v17 = vpack.c.bf16 %v5387_v10, %v5385_v58  ;;  %3927 = vmatprep.mubr.bf16.mxu1 %v7285_v11 }
 0x533   : > { %4887 = vmatmul.mubr.bf16.gmra.mrb[172].mxu0 %v3664_v17 }
 0x538   : > { %3928 = vmatmul.mubr.bf16.gmra.mrb[204].mxu1 %v3664_v17 }
 0x5d2   : > { %v3859_v16 = vpop.f32.mrb[176].mxu1 }
 0x5d3   : > { %v4035_v47 = vmul.f32 %v6783_v5, %v3859_v16  ;;  %v3861_v41 = vpop.f32.mrb[177].mxu1 }
 0x5d4   : > { %v4036_v34 = vmul.f32 %v6780_v30, %v3861_v41  ;;  %v3863_v11 = vpop.f32.mrb[178].mxu1 }
 0x5d5   : > { %4083 = vst [vmem:[%s7112_s26] sm:$0xff] %v4035_v47  ;;  %v4038_v9 = vmul.f32 %v6786_v1, %v3863_v11  ;;  %v3865_v42 = vpop.f32.mrb[179].mxu1 }
 0x5d6   : > { %v4876_v53 = vpop.f32.mrb[160].mxu0  ;;  %4084 = vst [vmem:[%s7112_s26 + $0x8] sm:$0xff] %v4036_v34  ;;  %v4039_v46 = vmul.f32 %v6793_v7, %v3865_v42 }
 0x5d7   : > { %v4043_v22 = vmul.f32 %v4876_v53, %v6822_v61  ;;  %v3972_v63 = vpop.f32.mrb[161].mxu0  ;;  %4086 = vst [vmem:[%s7112_s26 + $0x18] sm:$0xff] %v4038_v9 }
 0x5d8   : > { %v4037_v5 = vmul.f32 %v3972_v63, %v6790_v51  ;;  %v4877_v30 = vpop.f32.mrb[162].mxu0  ;;  %4087 = vst [vmem:[%s7112_s26 + $0x20] sm:$0xff] %v4039_v46 }
 0x5d9   : > { %4091 = vst [vmem:[%s7112_s26 + $0x40] sm:$0xff] %v4043_v22  ;;  %v4046_v1 = vmul.f32 %v4877_v30, %v6834_v62  ;;  %v3975_v40 = vpop.f32.mrb[163].mxu0 }
 0x5da   : > { %4085 = vst [vmem:[%s7112_s26 + $0x10] sm:$0xff] %v4037_v5  ;;  %v4040_v55 = vmul.f32 %v3975_v40, %v6801_v60  ;;  %v3869_v7 = vpop.f32.mrb[180].mxu1 }
 0x5db   : > { %4094 = vst [vmem:[%s7112_s26 + $0x58] sm:$0xff] %v4046_v1  ;;  %v4041_v61 = vmul.f32 %v6815_v18, %v3869_v7  ;;  %v3871_v39 = vpop.f32.mrb[181].mxu1 }
 0x5dc   : > { %4088 = vst [vmem:[%s7112_s26 + $0x28] sm:$0xff] %v4040_v55  ;;  %v4042_v51 = vmul.f32 %v6812_v59, %v3871_v39  ;;  %v3873_v21 = vpop.f32.mrb[182].mxu1 }
 0x5dd   : > { %4089 = vst [vmem:[%s7112_s26 + $0x30] sm:$0xff] %v4041_v61  ;;  %v4044_v62 = vmul.f32 %v6818_v38, %v3873_v21  ;;  %v3875_v4 = vpop.f32.mrb[183].mxu1 }
 0x5de   : > { %4090 = vst [vmem:[%s7112_s26 + $0x38] sm:$0xff] %v4042_v51  ;;  %v4045_v25 = vmul.f32 %v6825_v28, %v3875_v4  ;;  %v7321_v51 = vld [vmem:[#allocation3_spill] sm:$0xff] }
 0x5df   : > { %4092 = vst [vmem:[%s7112_s26 + $0x48] sm:$0xff] %v4044_v62 }
 0x5e0   : > { %4093 = vst [vmem:[%s7112_s26 + $0x50] sm:$0xff] %v4045_v25 }
 0x5e3   : > { %v3879_v60 = vpop.f32.mrb[184].mxu1 }
 0x5e4   : > { %v4047_v18 = vmul.f32 %v6854_v45, %v3879_v60  ;;  %v3881_v49 = vpop.f32.mrb[185].mxu1 }
 0x5e5   : > { %v4048_v59 = vmul.f32 %v6848_v31, %v3881_v49  ;;  %v3883_v50 = vpop.f32.mrb[186].mxu1 }
 0x5e6   : > { %4095 = vst [vmem:[%s7112_s26 + $0x60] sm:$0xff] %v4047_v18  ;;  %v4050_v38 = vmul.f32 %v6857_v54, %v3883_v50  ;;  %v3885_v37 = vpop.f32.mrb[187].mxu1  ;;  %v4880_v19 = vpop.f32.mrb[164].mxu0  ;;  %v7324_v50 = vld [vmem:[#allocation8_spill] sm:$0xff] }
 0x5e7   : > { %4096 = vst [vmem:[%s7112_s26 + $0x68] sm:$0xff] %v4048_v59  ;;  %v4051_v28 = vmul.f32 %v6864_v20, %v3885_v37  ;;  %v4055_v58 = vmul.f32 %v4880_v19, %v6896_v52  ;;  %v3988_v10 = vpop.f32.mrb[165].mxu0 }
 0x5e8   : > { %4098 = vst [vmem:[%s7112_s26 + $0x78] sm:$0xff] %v4050_v38  ;;  %v4049_v45 = vmul.f32 %v3988_v10, %v6861_v24  ;;  %v4881_v31 = vpop.f32.mrb[166].mxu0 }
 0x5e9   : > { %4099 = vst [vmem:[%s7112_s26 + $0x80] sm:$0xff] %v4051_v28  ;;  %4103 = vst [vmem:[%s7112_s26 + $0xa0] sm:$0xff] %v4055_v58  ;;  %v4058_v54 = vmul.f32 %v4881_v31, %v6907_v33  ;;  %v3991_v17 = vpop.f32.mrb[167].mxu0  ;;  %v7326_v58 = vld [vmem:[#allocation9_spill] sm:$0xff]  ;;  %v7327_v31 = vld [vmem:[#allocation6_spill] sm:$0xff] }
 0x5ea   : > { %4097 = vst [vmem:[%s7112_s26 + $0x70] sm:$0xff] %v4049_v45  ;;  %v4052_v16 = vmul.f32 %v3991_v17, %v6875_v32 }
 0x5eb   : > { %4106 = vst [vmem:[%s7112_s26 + $0xb8] sm:$0xff] %v4058_v54  ;;  %v3889_v20 = vpop.f32.mrb[188].mxu1 }
 0x5ec   : > { %4100 = vst [vmem:[%s7112_s26 + $0x88] sm:$0xff] %v4052_v16  ;;  %v4053_v52 = vmul.f32 %v6889_v26, %v3889_v20  ;;  %v3891_v47 = vpop.f32.mrb[189].mxu1 }
 0x5ed   : > { %v4054_v24 = vmul.f32 %v6886_v29, %v3891_v47  ;;  %v3893_v41 = vpop.f32.mrb[190].mxu1 }
 0x5ee   : > { %4101 = vst [vmem:[%s7112_s26 + $0x90] sm:$0xff] %v4053_v52  ;;  %v4056_v33 = vmul.f32 %v6892_v48, %v3893_v41  ;;  %v3895_v34 = vpop.f32.mrb[191].mxu1 }
 0x5ef   : > { %4102 = vst [vmem:[%s7112_s26 + $0x98] sm:$0xff] %v4054_v24  ;;  %v4057_v11 = vmul.f32 %v6899_v35, %v3895_v34 }
 0x5f0   : > { %4104 = vst [vmem:[%s7112_s26 + $0xa8] sm:$0xff] %v4056_v33 }
 0x5f1   : > { %4105 = vst [vmem:[%s7112_s26 + $0xb0] sm:$0xff] %v4057_v11 }
 0x5f3   : > { %v3899_v32 = vpop.f32.mrb[192].mxu1 }
 0x5f4   : > { %v4059_v26 = vmul.f32 %v6921_v23, %v3899_v32  ;;  %v3901_v9 = vpop.f32.mrb[193].mxu1 }
 0x5f5   : > { %v4060_v29 = vmul.f32 %v6918_v12, %v3901_v9  ;;  %v3903_v42 = vpop.f32.mrb[194].mxu1 }
 0x5f6   : > { %4107 = vst [vmem:[%s7112_s26 + $0xc0] sm:$0xff] %v4059_v26  ;;  %v4062_v48 = vmul.f32 %v6924_v6, %v3903_v42  ;;  %v3905_v53 = vpop.f32.mrb[195].mxu1  ;;  %v4884_v46 = vpop.f32.mrb[168].mxu0 }
 0x5f7   : > { %4108 = vst [vmem:[%s7112_s26 + $0xc8] sm:$0xff] %v4060_v29  ;;  %v4063_v35 = vmul.f32 %v6931_v8, %v3905_v53  ;;  %v4067_v22 = vmul.f32 %v4884_v46, %v6960_v15  ;;  %v4004_v63 = vpop.f32.mrb[169].mxu0 }
 0x5f8   : > { %4110 = vst [vmem:[%s7112_s26 + $0xd8] sm:$0xff] %v4062_v48  ;;  %v4061_v23 = vmul.f32 %v4004_v63, %v6928_v0  ;;  %v4885_v12 = vpop.f32.mrb[170].mxu0 }
 0x5f9   : > { %4111 = vst [vmem:[%s7112_s26 + $0xe0] sm:$0xff] %v4063_v35  ;;  %4115 = vst [vmem:[%s7112_s26 + $0x100] sm:$0xff] %v4067_v22  ;;  %v4070_v6 = vmul.f32 %v4885_v12, %v6971_v44  ;;  %v4007_v5 = vpop.f32.mrb[171].mxu0 }
 0x5fa   : > { %4109 = vst [vmem:[%s7112_s26 + $0xd0] sm:$0xff] %v4061_v23  ;;  %v4064_v30 = vmul.f32 %v4007_v5, %v6939_v27 }
 0x5fb   : > { %4118 = vst [vmem:[%s7112_s26 + $0x118] sm:$0xff] %v4070_v6  ;;  %v3909_v8 = vpop.f32.mrb[196].mxu1 }
 0x5fc   : > { %4112 = vst [vmem:[%s7112_s26 + $0xe8] sm:$0xff] %v4064_v30  ;;  %v4065_v15 = vmul.f32 %v6953_v3, %v3909_v8  ;;  %v3911_v1 = vpop.f32.mrb[197].mxu1 }
 0x5fd   : > { %v4066_v0 = vmul.f32 %v6950_v14, %v3911_v1  ;;  %v3913_v40 = vpop.f32.mrb[198].mxu1 }
 0x5fe   : > { %4113 = vst [vmem:[%s7112_s26 + $0xf0] sm:$0xff] %v4065_v15  ;;  %v4068_v44 = vmul.f32 %v6956_v43, %v3913_v40  ;;  %v3915_v55 = vpop.f32.mrb[199].mxu1 }
 0x5ff   : > { %4114 = vst [vmem:[%s7112_s26 + $0xf8] sm:$0xff] %v4066_v0  ;;  %v4069_v7 = vmul.f32 %v6963_v13, %v3915_v55  ;;  %v7322_v13 = vld [vmem:[#allocation4_spill] sm:$0xff] }
 0x600   : > { %4116 = vst [vmem:[%s7112_s26 + $0x108] sm:$0xff] %v4068_v44 }
 0x601   : > { %4117 = vst [vmem:[%s7112_s26 + $0x110] sm:$0xff] %v4069_v7 }
 0x603   : > { %v3919_v27 = vpop.f32.mrb[200].mxu1 }
 0x604   : > { %v4071_v3 = vmul.f32 %v6985_v57, %v3919_v27  ;;  %v3921_v61 = vpop.f32.mrb[201].mxu1  ;;  %v7323_v57 = vld [vmem:[#allocation7_spill] sm:$0xff] }
 0x605   : > { %v4072_v14 = vmul.f32 %v6982_v2, %v3921_v61  ;;  %v3923_v39 = vpop.f32.mrb[202].mxu1 }
 0x606   : > { %4119 = vst [vmem:[%s7112_s26 + $0x120] sm:$0xff] %v4071_v3  ;;  %v4074_v43 = vmul.f32 %v7321_v51, %v3923_v39  ;;  %v3925_v21 = vpop.f32.mrb[203].mxu1  ;;  %v4888_v62 = vpop.f32.mrb[172].mxu0 }
 0x607   : > { %4120 = vst [vmem:[%s7112_s26 + $0x128] sm:$0xff] %v4072_v14  ;;  %v4075_v4 = vmul.f32 %v7322_v13, %v3925_v21  ;;  %v4079_v25 = vmul.f32 %v4888_v62, %v7024_v56  ;;  %v4020_v60 = vpop.f32.mrb[173].mxu0  ;;  %v7325_v56 = vld [vmem:[#allocation5_spill] sm:$0xff] }
 0x608   : > { %4122 = vst [vmem:[%s7112_s26 + $0x138] sm:$0xff] %v4074_v43  ;;  %v4073_v18 = vmul.f32 %v4020_v60, %v7323_v57  ;;  %v4889_v2 = vpop.f32.mrb[174].mxu0 }
 0x609   : > { %4123 = vst [vmem:[%s7112_s26 + $0x140] sm:$0xff] %v4075_v4  ;;  %4127 = vst [vmem:[%s7112_s26 + $0x160] sm:$0xff] %v4079_v25  ;;  %v4082_v49 = vmul.f32 %v4889_v2, %v7035_v36  ;;  %v4023_v59 = vpop.f32.mrb[175].mxu0  ;;  %v7328_v36 = vld [vmem:[#allocation10_spill] sm:$0xff] }
 0x60a   : > { %4121 = vst [vmem:[%s7112_s26 + $0x130] sm:$0xff] %v4073_v18  ;;  %v4076_v38 = vmul.f32 %v4023_v59, %v7324_v50 }
 0x60b   : > { %4130 = vst [vmem:[%s7112_s26 + $0x178] sm:$0xff] %v4082_v49  ;;  %v3929_v37 = vpop.f32.mrb[204].mxu1 }
 0x60c   : > { %4124 = vst [vmem:[%s7112_s26 + $0x148] sm:$0xff] %v4076_v38  ;;  %v4077_v19 = vmul.f32 %v7325_v56, %v3929_v37  ;;  %v3931_v28 = vpop.f32.mrb[205].mxu1 }
 0x60d   : > { %v4078_v10 = vmul.f32 %v7326_v58, %v3931_v28  ;;  %v3933_v45 = vpop.f32.mrb[206].mxu1 }
 0x60e   : > { %4125 = vst [vmem:[%s7112_s26 + $0x150] sm:$0xff] %v4077_v19  ;;  %v4080_v54 = vmul.f32 %v7327_v31, %v3933_v45  ;;  %v3935_v17 = vpop.f32.mrb[207].mxu1 }
 0x60f   : > { %4126 = vst [vmem:[%s7112_s26 + $0x158] sm:$0xff] %v4078_v10  ;;  %v4081_v16 = vmul.f32 %v7328_v36, %v3935_v17 }
 0x610   : > { %4128 = vst [vmem:[%s7112_s26 + $0x168] sm:$0xff] %v4080_v54 }
 0x611   : > { %4129 = vst [vmem:[%s7112_s26 + $0x170] sm:$0xff] %v4081_v16 }
 0x612 PF: > { %s19_s30 = sadd.s32 1, %s5394_s30  }
 0x613   : > { %p16_p4 = scmp.ge.s32.totalorder %s19_s30, 4  }
 0x615   :  { %18 = sbr.rel (!%p16_p4) target bundleno = 1 (0x1), region = 86 }

</bundles_post_ra>
